<compile_context>
chip_gen: v7x
topology: tpu7x:2x2x1
jax: 0.10.0
libtpu: 0.0.40
codegen_flags: <defaults>
</compile_context>

<pallas_src>
import functools
import math

import jax
import jax.numpy as jnp
from jax.experimental import pallas as pl
from jax.experimental.pallas import tpu as pltpu


def _encoder_layer_kernel(
    x_ref,                    # (1, S, D)      f32
    wq_ref, wk_ref, wv_ref,   # (H, D, hd)     bf16   (1/sqrt(hd) folded into wq)
    wo_ref,                   # (H, hd, D)     bf16
    w1_ref,                   # (D, d_ff)      bf16
    w2_ref,                   # (d_ff, D)      bf16
    qkvb_ref,                 # (3*H, hd)      f32    rows: bq (per head) | bk | bv
    vecs_ref,                 # (8, D)         f32    rows: bo, b2, g1, be1, g2, be2, 0, 0
    b1_ref,                   # (1, d_ff)      f32
    o_ref,                    # (1, S, D)      f32
    *, n_heads: int, eps: float = 1e-5,
):
    f32 = jnp.float32
    bf16 = jnp.bfloat16

    x = x_ref[0].astype(f32)                  # (S, D)
    S, D = x.shape
    x_bf = x.astype(bf16)

    qb = qkvb_ref[...]                        # (3*H, hd)
    vecs = vecs_ref[...]                      # (8, D)
    bo_row, b2_row = vecs[0:1], vecs[1:2]
    g1, be1 = vecs[2:3], vecs[3:4]
    g2, be2 = vecs[4:5], vecs[5:6]

    dn_nt = (((1,), (1,)), ((), ()))          # contract minor dims ("A @ B.T"), no batch

    # ---- multi-head self-attention, accumulated into a lane-dense (S, D) output ----
    attn = jnp.zeros((S, D), f32)
    for h in range(n_heads):                  # static unroll; no lane slicing, no concat
        q = jnp.dot(x_bf, wq_ref[h], preferred_element_type=f32) + qb[h:h + 1]
        k = jnp.dot(x_bf, wk_ref[h], preferred_element_type=f32) + qb[n_heads + h:n_heads + h + 1]
        v = jnp.dot(x_bf, wv_ref[h], preferred_element_type=f32) + qb[2 * n_heads + h:2 * n_heads + h + 1]
        s = jax.lax.dot_general(q.astype(bf16), k.astype(bf16), dn_nt,
                                preferred_element_type=f32)           # (S, S)
        s = s - jnp.max(s, axis=-1, keepdims=True)
        p = jnp.exp(s)
        p = p * pl.reciprocal(jnp.sum(p, axis=-1, keepdims=True), approx=True)
        ctx = jnp.dot(p.astype(bf16), v.astype(bf16),
                      preferred_element_type=f32)                     # (S, hd)
        attn = attn + jnp.dot(ctx.astype(bf16), wo_ref[h],
                              preferred_element_type=f32)             # (S, D) lane-dense
    attn = attn + bo_row

    # ---- residual + LayerNorm 1 ----
    h1 = x + attn
    mu1 = jnp.mean(h1, axis=-1, keepdims=True)
    var1 = jnp.mean((h1 - mu1) ** 2, axis=-1, keepdims=True)
    h1 = (h1 - mu1) * jax.lax.rsqrt(var1 + eps) * g1 + be1

    # ---- position-wise feed-forward (ReLU) ----
    f = jnp.dot(h1.astype(bf16), w1_ref[...], preferred_element_type=f32) + b1_ref[...]
    f = jnp.maximum(f, 0.0)
    f = jnp.dot(f.astype(bf16), w2_ref[...], preferred_element_type=f32) + b2_row

    # ---- residual + LayerNorm 2 ----
    h2 = h1 + f
    mu2 = jnp.mean(h2, axis=-1, keepdims=True)
    var2 = jnp.mean((h2 - mu2) ** 2, axis=-1, keepdims=True)
    out = (h2 - mu2) * jax.lax.rsqrt(var2 + eps) * g2 + be2

    o_ref[0] = out.astype(o_ref.dtype)


def encoder_layer_pallas(x, params, n_heads, *, single_buffer_weights=True):
    """x: (B, S, D) float32; params: dict of weights (see init_params)."""
    B, S, D = x.shape
    assert D % n_heads == 0
    hd = D // n_heads
    d_ff = params["w1"].shape[1]
    bf16, f32 = jnp.bfloat16, jnp.float32
    inv_sqrt_hd = 1.0 / math.sqrt(hd)

    # ---- trace-time parameter prep (plain XLA, outside the kernel) ----
    wq3 = (params["wq"] * inv_sqrt_hd).reshape(D, n_heads, hd).transpose(1, 0, 2).astype(bf16)
    wk3 = params["wk"].reshape(D, n_heads, hd).transpose(1, 0, 2).astype(bf16)
    wv3 = params["wv"].reshape(D, n_heads, hd).transpose(1, 0, 2).astype(bf16)
    wo3 = params["wo"].reshape(n_heads, hd, D).astype(bf16)
    w1 = params["w1"].astype(bf16)
    w2 = params["w2"].astype(bf16)

    qkv_bias = jnp.concatenate([
        (params["bq"][0] * inv_sqrt_hd).reshape(n_heads, hd),
        params["bk"][0].reshape(n_heads, hd),
        params["bv"][0].reshape(n_heads, hd),
    ], axis=0).astype(f32)                                            # (3*H, hd)

    vecs = jnp.concatenate([
        params["bo"], params["b2"],
        params["gamma1"], params["beta1"],
        params["gamma2"], params["beta2"],
        jnp.zeros((2, D), f32),
    ], axis=0).astype(f32)                                            # (8, D)
    b1 = params["b1"].astype(f32)                                     # (1, d_ff)

    def const_spec(shape):
        if single_buffer_weights:
            # Block index never changes across the grid -> single-buffer to halve VMEM use.
            return pl.BlockSpec(shape, lambda b: (0,) * len(shape),
                                pipeline_mode=pl.Buffered(1))
        return pl.BlockSpec(shape, lambda b: (0,) * len(shape))

    in_specs = [
        pl.BlockSpec((1, S, D), lambda b: (b, 0, 0)),                 # x
        const_spec((n_heads, D, hd)),                                 # wq3
        const_spec((n_heads, D, hd)),                                 # wk3
        const_spec((n_heads, D, hd)),                                 # wv3
        const_spec((n_heads, hd, D)),                                 # wo3
        const_spec((D, d_ff)),                                        # w1
        const_spec((d_ff, D)),                                        # w2
        const_spec((3 * n_heads, hd)),                                # packed q/k/v biases
        const_spec((8, D)),                                           # packed bo/b2/LN params
        const_spec((1, d_ff)),                                        # b1
    ]

    flops = B * (8 * S * D * D + 4 * S * S * D + 4 * S * D * d_ff)
    transcendentals = B * (n_heads * S * S + n_heads * S + 2 * S)
    bytes_accessed = (2 * B * S * D * 4                               # x in + out (f32)
                      + (4 * D * D + 2 * D * d_ff) * 2                # bf16 weights
                      + (3 * n_heads * hd + 8 * D + d_ff) * 4)        # packed params

    kernel = functools.partial(_encoder_layer_kernel, n_heads=n_heads)

    return pl.pallas_call(
        kernel,
        out_shape=jax.ShapeDtypeStruct((B, S, D), x.dtype),
        grid_spec=pltpu.PrefetchScalarGridSpec(
            num_scalar_prefetch=0,
            grid=(B,),
            in_specs=in_specs,
            out_specs=pl.BlockSpec((1, S, D), lambda b: (b, 0, 0)),
        ),
        compiler_params=pltpu.CompilerParams(
            dimension_semantics=("parallel",),
            vmem_limit_bytes=48 * 1024 * 1024,
        ),
        cost_estimate=pl.CostEstimate(
            flops=flops, transcendentals=transcendentals, bytes_accessed=bytes_accessed),
    )(x, wq3, wk3, wv3, wo3, w1, w2, qkv_bias, vecs, b1)


def init_params(key, d_model, d_ff):
    """Deterministic synthetic parameters (matches shapes of the PyTorch module)."""
    ks = jax.random.split(key, 8)
    scale = 0.1
    return {
        "wq": jax.random.normal(ks[0], (d_model, d_model), jnp.float32) * scale,
        "wk": jax.random.normal(ks[1], (d_model, d_model), jnp.float32) * scale,
        "wv": jax.random.normal(ks[2], (d_model, d_model), jnp.float32) * scale,
        "wo": jax.random.normal(ks[3], (d_model, d_model), jnp.float32) * scale,
        "bq": jax.random.normal(ks[4], (1, d_model), jnp.float32) * scale,
        "bk": jax.random.normal(ks[5], (1, d_model), jnp.float32) * scale,
        "bv": jax.random.normal(ks[6], (1, d_model), jnp.float32) * scale,
        "bo": jnp.zeros((1, d_model), jnp.float32),
        "w1": jax.random.normal(ks[7], (d_model, d_ff), jnp.float32) * scale,
        "b1": jnp.zeros((1, d_ff), jnp.float32),
        "w2": jax.random.normal(jax.random.fold_in(key, 99), (d_ff, d_model), jnp.float32) * scale,
        "b2": jnp.zeros((1, d_model), jnp.float32),
        "gamma1": jnp.ones((1, d_model), jnp.float32),
        "beta1": jnp.zeros((1, d_model), jnp.float32),
        "gamma2": jnp.ones((1, d_model), jnp.float32),
        "beta2": jnp.zeros((1, d_model), jnp.float32),
    }


def encoder_layer_ref(x, p, n_heads, eps=1e-5):
    """Pure-JAX (f32) reference for correctness checking."""
    B, S, D = x.shape
    hd = D // n_heads

    def mha(xb):
        q = xb @ p["wq"] + p["bq"][0]
        k = xb @ p["wk"] + p["bk"][0]
        v = xb @ p["wv"] + p["bv"][0]
        q = q.reshape(S, n_heads, hd).transpose(1, 0, 2)
        k = k.reshape(S, n_heads, hd).transpose(1, 0, 2)
        v = v.reshape(S, n_heads, hd).transpose(1, 0, 2)
        s = jnp.einsum("hqd,hkd->hqk", q, k) / math.sqrt(hd)
        a = jax.nn.softmax(s, axis=-1)
        c = jnp.einsum("hqk,hkd->hqd", a, v).transpose(1, 0, 2).reshape(S, D)
        return c @ p["wo"] + p["bo"][0]

    def ln(h, g, b):
        mu = h.mean(-1, keepdims=True)
        var = ((h - mu) ** 2).mean(-1, keepdims=True)
        return (h - mu) / jnp.sqrt(var + eps) * g[0] + b[0]

    def one(xb):
        h1 = ln(xb + mha(xb), p["gamma1"], p["beta1"])
        f = jnp.maximum(h1 @ p["w1"] + p["b1"][0], 0.0) @ p["w2"] + p["b2"][0]
        return ln(h1 + f, p["gamma2"], p["beta2"])

    return jax.vmap(one)(x)


if __name__ == "__main__":
    # d_model is a multiple of 128 so every matmul output / the final store is lane-dense.
    B, S, d_model, d_ff, n_heads = 2, 16, 128, 256, 4

    key = jax.random.PRNGKey(0)
    kx, kp = jax.random.split(key)
    x = jax.random.normal(kx, (B, S, d_model), jnp.float32)
    params = init_params(kp, d_model, d_ff)

    ref = encoder_layer_ref(x, params, n_heads)

    # Tolerance accounts for bf16 MXU inputs (f32 accumulation) + approximate reciprocal.
    TOL = 6e-2

    def _run(single_buffer):
        return jax.block_until_ready(
            encoder_layer_pallas(x, params, n_heads, single_buffer_weights=single_buffer))

    try:
        out = _run(True)
        ok = bool(jnp.allclose(out, ref, atol=TOL, rtol=TOL))
    except Exception:
        ok = False
    if not ok:
        # Fallback to default double-buffered weight specs if pl.Buffered(1) is unsupported.
        out = _run(False)

    assert out.shape == (B, S, d_model)
    assert jnp.allclose(out, ref, atol=TOL, rtol=TOL), "mismatch vs JAX reference"

    print("KERNEL_OK")
</pallas_src>

<mosaic_0001>
module attributes {stable_mosaic.version = 11 : i64} {
  func.func @_encoder_layer_kernel(%arg0: i32, %arg1: memref<1x16x128xf32, #tpu.memory_space<vmem>>, %arg2: memref<4x128x32xbf16, #tpu.memory_space<vmem>>, %arg3: memref<4x128x32xbf16, #tpu.memory_space<vmem>>, %arg4: memref<4x128x32xbf16, #tpu.memory_space<vmem>>, %arg5: memref<4x32x128xbf16, #tpu.memory_space<vmem>>, %arg6: memref<128x256xbf16, #tpu.memory_space<vmem>>, %arg7: memref<256x128xbf16, #tpu.memory_space<vmem>>, %arg8: memref<12x32xf32, #tpu.memory_space<vmem>>, %arg9: memref<8x128xf32, #tpu.memory_space<vmem>>, %arg10: memref<1x256xf32, #tpu.memory_space<vmem>>, %arg11: memref<1x16x128xf32, #tpu.memory_space<vmem>>) attributes {dimension_semantics = [#tpu.dimension_semantics<parallel>], iteration_bounds = array<i64: 2>, scalar_prefetch = 0 : i64, scratch_operands = 0 : i64, tpu.core_type = #tpu.core_type<tc>, window_params = [{transform_indices = @transform_0, window_bounds = array<i64: 1, 16, 128>}, {pipeline_mode = #tpu.pipeline_mode<synchronous>, transform_indices = @transform_1, window_bounds = array<i64: 4, 128, 32>}, {pipeline_mode = #tpu.pipeline_mode<synchronous>, transform_indices = @transform_2, window_bounds = array<i64: 4, 128, 32>}, {pipeline_mode = #tpu.pipeline_mode<synchronous>, transform_indices = @transform_3, window_bounds = array<i64: 4, 128, 32>}, {pipeline_mode = #tpu.pipeline_mode<synchronous>, transform_indices = @transform_4, window_bounds = array<i64: 4, 32, 128>}, {pipeline_mode = #tpu.pipeline_mode<synchronous>, transform_indices = @transform_5, window_bounds = array<i64: 128, 256>}, {pipeline_mode = #tpu.pipeline_mode<synchronous>, transform_indices = @transform_6, window_bounds = array<i64: 256, 128>}, {pipeline_mode = #tpu.pipeline_mode<synchronous>, transform_indices = @transform_7, window_bounds = array<i64: 12, 32>}, {pipeline_mode = #tpu.pipeline_mode<synchronous>, transform_indices = @transform_8, window_bounds = array<i64: 8, 128>}, {pipeline_mode = #tpu.pipeline_mode<synchronous>, transform_indices = @transform_9, window_bounds = array<i64: 1, 256>}, {transform_indices = @transform_10, window_bounds = array<i64: 1, 16, 128>}]} {
    %c0 = arith.constant 0 : index
    %c0_0 = arith.constant 0 : index
    %c0_1 = arith.constant 0 : index
    %0 = vector.load %arg1[%c0, %c0_0, %c0_1] : memref<1x16x128xf32, #tpu.memory_space<vmem>>, vector<1x16x128xf32>
    %1 = vector.shape_cast %0 : vector<1x16x128xf32> to vector<16x128xf32>
    %2 = arith.truncf %1 : vector<16x128xf32> to vector<16x128xbf16>
    %c0_2 = arith.constant 0 : index
    %c0_3 = arith.constant 0 : index
    %3 = vector.load %arg8[%c0_2, %c0_3] : memref<12x32xf32, #tpu.memory_space<vmem>>, vector<12x32xf32>
    %c0_4 = arith.constant 0 : index
    %c0_5 = arith.constant 0 : index
    %4 = vector.load %arg9[%c0_4, %c0_5] : memref<8x128xf32, #tpu.memory_space<vmem>>, vector<8x128xf32>
    %5 = vector.extract_strided_slice %4 {offsets = [0, 0], sizes = [1, 128], strides = [1, 1]} : vector<8x128xf32> to vector<1x128xf32>
    %6 = vector.extract_strided_slice %4 {offsets = [1, 0], sizes = [1, 128], strides = [1, 1]} : vector<8x128xf32> to vector<1x128xf32>
    %7 = vector.extract_strided_slice %4 {offsets = [2, 0], sizes = [1, 128], strides = [1, 1]} : vector<8x128xf32> to vector<1x128xf32>
    %8 = vector.extract_strided_slice %4 {offsets = [3, 0], sizes = [1, 128], strides = [1, 1]} : vector<8x128xf32> to vector<1x128xf32>
    %9 = vector.extract_strided_slice %4 {offsets = [4, 0], sizes = [1, 128], strides = [1, 1]} : vector<8x128xf32> to vector<1x128xf32>
    %10 = vector.extract_strided_slice %4 {offsets = [5, 0], sizes = [1, 128], strides = [1, 1]} : vector<8x128xf32> to vector<1x128xf32>
    %cst = arith.constant 0.000000e+00 : f32
    %11 = vector.broadcast %cst : f32 to vector<16x128xf32>
    %c0_6 = arith.constant 0 : index
    %c0_7 = arith.constant 0 : index
    %c0_8 = arith.constant 0 : index
    %12 = vector.load %arg2[%c0_6, %c0_7, %c0_8] : memref<4x128x32xbf16, #tpu.memory_space<vmem>>, vector<1x128x32xbf16>
    %13 = vector.shape_cast %12 : vector<1x128x32xbf16> to vector<128x32xbf16>
    %cst_9 = arith.constant dense<0.000000e+00> : vector<16x32xf32>
    %14 = tpu.matmul %2, %13, %cst_9 {dimension_numbers = #tpu.dot_dimension_numbers<[1], [0], [0], [1], [0, 0, 1, 1], [], []>} : vector<16x128xbf16>, vector<128x32xbf16>, vector<16x32xf32> -> vector<16x32xf32>
    %15 = vector.extract_strided_slice %3 {offsets = [0, 0], sizes = [1, 32], strides = [1, 1]} : vector<12x32xf32> to vector<1x32xf32>
    %16 = vector.broadcast %15 : vector<1x32xf32> to vector<16x32xf32>
    %17 = arith.addf %14, %16 : vector<16x32xf32>
    %c0_10 = arith.constant 0 : index
    %c0_11 = arith.constant 0 : index
    %c0_12 = arith.constant 0 : index
    %18 = vector.load %arg3[%c0_10, %c0_11, %c0_12] : memref<4x128x32xbf16, #tpu.memory_space<vmem>>, vector<1x128x32xbf16>
    %19 = vector.shape_cast %18 : vector<1x128x32xbf16> to vector<128x32xbf16>
    %cst_13 = arith.constant dense<0.000000e+00> : vector<16x32xf32>
    %20 = tpu.matmul %2, %19, %cst_13 {dimension_numbers = #tpu.dot_dimension_numbers<[1], [0], [0], [1], [0, 0, 1, 1], [], []>} : vector<16x128xbf16>, vector<128x32xbf16>, vector<16x32xf32> -> vector<16x32xf32>
    %21 = vector.extract_strided_slice %3 {offsets = [4, 0], sizes = [1, 32], strides = [1, 1]} : vector<12x32xf32> to vector<1x32xf32>
    %22 = vector.broadcast %21 : vector<1x32xf32> to vector<16x32xf32>
    %23 = arith.addf %20, %22 : vector<16x32xf32>
    %c0_14 = arith.constant 0 : index
    %c0_15 = arith.constant 0 : index
    %c0_16 = arith.constant 0 : index
    %24 = vector.load %arg4[%c0_14, %c0_15, %c0_16] : memref<4x128x32xbf16, #tpu.memory_space<vmem>>, vector<1x128x32xbf16>
    %25 = vector.shape_cast %24 : vector<1x128x32xbf16> to vector<128x32xbf16>
    %cst_17 = arith.constant dense<0.000000e+00> : vector<16x32xf32>
    %26 = tpu.matmul %2, %25, %cst_17 {dimension_numbers = #tpu.dot_dimension_numbers<[1], [0], [0], [1], [0, 0, 1, 1], [], []>} : vector<16x128xbf16>, vector<128x32xbf16>, vector<16x32xf32> -> vector<16x32xf32>
    %27 = vector.extract_strided_slice %3 {offsets = [8, 0], sizes = [1, 32], strides = [1, 1]} : vector<12x32xf32> to vector<1x32xf32>
    %28 = vector.broadcast %27 : vector<1x32xf32> to vector<16x32xf32>
    %29 = arith.addf %26, %28 : vector<16x32xf32>
    %30 = arith.truncf %17 : vector<16x32xf32> to vector<16x32xbf16>
    %31 = arith.truncf %23 : vector<16x32xf32> to vector<16x32xbf16>
    %cst_18 = arith.constant dense<0.000000e+00> : vector<16x16xf32>
    %32 = tpu.matmul %30, %31, %cst_18 {dimension_numbers = #tpu.dot_dimension_numbers<[1], [1], [0], [0], [0, 0, 1, 0], [], []>} : vector<16x32xbf16>, vector<16x32xbf16>, vector<16x16xf32> -> vector<16x16xf32>
    %cst_19 = arith.constant dense<0xFF800000> : vector<16xf32>
    %33 = vector.multi_reduction <maximumf>, %32, %cst_19 [1] : vector<16x16xf32> to vector<16xf32>
    %34 = vector.shape_cast %33 : vector<16xf32> to vector<16x1xf32>
    %35 = vector.broadcast %34 : vector<16x1xf32> to vector<16x16xf32>
    %36 = arith.subf %32, %35 : vector<16x16xf32>
    %37 = math.exp %36 : vector<16x16xf32>
    %cst_20 = arith.constant dense<0.000000e+00> : vector<16xf32>
    %38 = vector.multi_reduction <add>, %37, %cst_20 [1] : vector<16x16xf32> to vector<16xf32>
    %39 = vector.shape_cast %38 : vector<16xf32> to vector<16x1xf32>
    %40 = tpu.reciprocal %39 {approx = true} : vector<16x1xf32> -> vector<16x1xf32>
    %41 = vector.broadcast %40 : vector<16x1xf32> to vector<16x16xf32>
    %42 = arith.mulf %37, %41 : vector<16x16xf32>
    %43 = arith.truncf %42 : vector<16x16xf32> to vector<16x16xbf16>
    %44 = arith.truncf %29 : vector<16x32xf32> to vector<16x32xbf16>
    %cst_21 = arith.constant dense<0.000000e+00> : vector<16x32xf32>
    %45 = tpu.matmul %43, %44, %cst_21 {dimension_numbers = #tpu.dot_dimension_numbers<[1], [0], [0], [1], [0, 0, 1, 1], [], []>} : vector<16x16xbf16>, vector<16x32xbf16>, vector<16x32xf32> -> vector<16x32xf32>
    %46 = arith.truncf %45 : vector<16x32xf32> to vector<16x32xbf16>
    %c0_22 = arith.constant 0 : index
    %c0_23 = arith.constant 0 : index
    %c0_24 = arith.constant 0 : index
    %47 = vector.load %arg5[%c0_22, %c0_23, %c0_24] : memref<4x32x128xbf16, #tpu.memory_space<vmem>>, vector<1x32x128xbf16>
    %48 = vector.shape_cast %47 : vector<1x32x128xbf16> to vector<32x128xbf16>
    %cst_25 = arith.constant dense<0.000000e+00> : vector<16x128xf32>
    %49 = tpu.matmul %46, %48, %cst_25 {dimension_numbers = #tpu.dot_dimension_numbers<[1], [0], [0], [1], [0, 0, 1, 1], [], []>} : vector<16x32xbf16>, vector<32x128xbf16>, vector<16x128xf32> -> vector<16x128xf32>
    %50 = arith.addf %11, %49 : vector<16x128xf32>
    %c1 = arith.constant 1 : index
    %c0_26 = arith.constant 0 : index
    %c0_27 = arith.constant 0 : index
    %51 = vector.load %arg2[%c1, %c0_26, %c0_27] : memref<4x128x32xbf16, #tpu.memory_space<vmem>>, vector<1x128x32xbf16>
    %52 = vector.shape_cast %51 : vector<1x128x32xbf16> to vector<128x32xbf16>
    %cst_28 = arith.constant dense<0.000000e+00> : vector<16x32xf32>
    %53 = tpu.matmul %2, %52, %cst_28 {dimension_numbers = #tpu.dot_dimension_numbers<[1], [0], [0], [1], [0, 0, 1, 1], [], []>} : vector<16x128xbf16>, vector<128x32xbf16>, vector<16x32xf32> -> vector<16x32xf32>
    %54 = vector.extract_strided_slice %3 {offsets = [1, 0], sizes = [1, 32], strides = [1, 1]} : vector<12x32xf32> to vector<1x32xf32>
    %55 = vector.broadcast %54 : vector<1x32xf32> to vector<16x32xf32>
    %56 = arith.addf %53, %55 : vector<16x32xf32>
    %c1_29 = arith.constant 1 : index
    %c0_30 = arith.constant 0 : index
    %c0_31 = arith.constant 0 : index
    %57 = vector.load %arg3[%c1_29, %c0_30, %c0_31] : memref<4x128x32xbf16, #tpu.memory_space<vmem>>, vector<1x128x32xbf16>
    %58 = vector.shape_cast %57 : vector<1x128x32xbf16> to vector<128x32xbf16>
    %cst_32 = arith.constant dense<0.000000e+00> : vector<16x32xf32>
    %59 = tpu.matmul %2, %58, %cst_32 {dimension_numbers = #tpu.dot_dimension_numbers<[1], [0], [0], [1], [0, 0, 1, 1], [], []>} : vector<16x128xbf16>, vector<128x32xbf16>, vector<16x32xf32> -> vector<16x32xf32>
    %60 = vector.extract_strided_slice %3 {offsets = [5, 0], sizes = [1, 32], strides = [1, 1]} : vector<12x32xf32> to vector<1x32xf32>
    %61 = vector.broadcast %60 : vector<1x32xf32> to vector<16x32xf32>
    %62 = arith.addf %59, %61 : vector<16x32xf32>
    %c1_33 = arith.constant 1 : index
    %c0_34 = arith.constant 0 : index
    %c0_35 = arith.constant 0 : index
    %63 = vector.load %arg4[%c1_33, %c0_34, %c0_35] : memref<4x128x32xbf16, #tpu.memory_space<vmem>>, vector<1x128x32xbf16>
    %64 = vector.shape_cast %63 : vector<1x128x32xbf16> to vector<128x32xbf16>
    %cst_36 = arith.constant dense<0.000000e+00> : vector<16x32xf32>
    %65 = tpu.matmul %2, %64, %cst_36 {dimension_numbers = #tpu.dot_dimension_numbers<[1], [0], [0], [1], [0, 0, 1, 1], [], []>} : vector<16x128xbf16>, vector<128x32xbf16>, vector<16x32xf32> -> vector<16x32xf32>
    %66 = vector.extract_strided_slice %3 {offsets = [9, 0], sizes = [1, 32], strides = [1, 1]} : vector<12x32xf32> to vector<1x32xf32>
    %67 = vector.broadcast %66 : vector<1x32xf32> to vector<16x32xf32>
    %68 = arith.addf %65, %67 : vector<16x32xf32>
    %69 = arith.truncf %56 : vector<16x32xf32> to vector<16x32xbf16>
    %70 = arith.truncf %62 : vector<16x32xf32> to vector<16x32xbf16>
    %cst_37 = arith.constant dense<0.000000e+00> : vector<16x16xf32>
    %71 = tpu.matmul %69, %70, %cst_37 {dimension_numbers = #tpu.dot_dimension_numbers<[1], [1], [0], [0], [0, 0, 1, 0], [], []>} : vector<16x32xbf16>, vector<16x32xbf16>, vector<16x16xf32> -> vector<16x16xf32>
    %cst_38 = arith.constant dense<0xFF800000> : vector<16xf32>
    %72 = vector.multi_reduction <maximumf>, %71, %cst_38 [1] : vector<16x16xf32> to vector<16xf32>
    %73 = vector.shape_cast %72 : vector<16xf32> to vector<16x1xf32>
    %74 = vector.broadcast %73 : vector<16x1xf32> to vector<16x16xf32>
    %75 = arith.subf %71, %74 : vector<16x16xf32>
    %76 = math.exp %75 : vector<16x16xf32>
    %cst_39 = arith.constant dense<0.000000e+00> : vector<16xf32>
    %77 = vector.multi_reduction <add>, %76, %cst_39 [1] : vector<16x16xf32> to vector<16xf32>
    %78 = vector.shape_cast %77 : vector<16xf32> to vector<16x1xf32>
    %79 = tpu.reciprocal %78 {approx = true} : vector<16x1xf32> -> vector<16x1xf32>
    %80 = vector.broadcast %79 : vector<16x1xf32> to vector<16x16xf32>
    %81 = arith.mulf %76, %80 : vector<16x16xf32>
    %82 = arith.truncf %81 : vector<16x16xf32> to vector<16x16xbf16>
    %83 = arith.truncf %68 : vector<16x32xf32> to vector<16x32xbf16>
    %cst_40 = arith.constant dense<0.000000e+00> : vector<16x32xf32>
    %84 = tpu.matmul %82, %83, %cst_40 {dimension_numbers = #tpu.dot_dimension_numbers<[1], [0], [0], [1], [0, 0, 1, 1], [], []>} : vector<16x16xbf16>, vector<16x32xbf16>, vector<16x32xf32> -> vector<16x32xf32>
    %85 = arith.truncf %84 : vector<16x32xf32> to vector<16x32xbf16>
    %c1_41 = arith.constant 1 : index
    %c0_42 = arith.constant 0 : index
    %c0_43 = arith.constant 0 : index
    %86 = vector.load %arg5[%c1_41, %c0_42, %c0_43] : memref<4x32x128xbf16, #tpu.memory_space<vmem>>, vector<1x32x128xbf16>
    %87 = vector.shape_cast %86 : vector<1x32x128xbf16> to vector<32x128xbf16>
    %cst_44 = arith.constant dense<0.000000e+00> : vector<16x128xf32>
    %88 = tpu.matmul %85, %87, %cst_44 {dimension_numbers = #tpu.dot_dimension_numbers<[1], [0], [0], [1], [0, 0, 1, 1], [], []>} : vector<16x32xbf16>, vector<32x128xbf16>, vector<16x128xf32> -> vector<16x128xf32>
    %89 = arith.addf %50, %88 : vector<16x128xf32>
    %c2 = arith.constant 2 : index
    %c0_45 = arith.constant 0 : index
    %c0_46 = arith.constant 0 : index
    %90 = vector.load %arg2[%c2, %c0_45, %c0_46] : memref<4x128x32xbf16, #tpu.memory_space<vmem>>, vector<1x128x32xbf16>
    %91 = vector.shape_cast %90 : vector<1x128x32xbf16> to vector<128x32xbf16>
    %cst_47 = arith.constant dense<0.000000e+00> : vector<16x32xf32>
    %92 = tpu.matmul %2, %91, %cst_47 {dimension_numbers = #tpu.dot_dimension_numbers<[1], [0], [0], [1], [0, 0, 1, 1], [], []>} : vector<16x128xbf16>, vector<128x32xbf16>, vector<16x32xf32> -> vector<16x32xf32>
    %93 = vector.extract_strided_slice %3 {offsets = [2, 0], sizes = [1, 32], strides = [1, 1]} : vector<12x32xf32> to vector<1x32xf32>
    %94 = vector.broadcast %93 : vector<1x32xf32> to vector<16x32xf32>
    %95 = arith.addf %92, %94 : vector<16x32xf32>
    %c2_48 = arith.constant 2 : index
    %c0_49 = arith.constant 0 : index
    %c0_50 = arith.constant 0 : index
    %96 = vector.load %arg3[%c2_48, %c0_49, %c0_50] : memref<4x128x32xbf16, #tpu.memory_space<vmem>>, vector<1x128x32xbf16>
    %97 = vector.shape_cast %96 : vector<1x128x32xbf16> to vector<128x32xbf16>
    %cst_51 = arith.constant dense<0.000000e+00> : vector<16x32xf32>
    %98 = tpu.matmul %2, %97, %cst_51 {dimension_numbers = #tpu.dot_dimension_numbers<[1], [0], [0], [1], [0, 0, 1, 1], [], []>} : vector<16x128xbf16>, vector<128x32xbf16>, vector<16x32xf32> -> vector<16x32xf32>
    %99 = vector.extract_strided_slice %3 {offsets = [6, 0], sizes = [1, 32], strides = [1, 1]} : vector<12x32xf32> to vector<1x32xf32>
    %100 = vector.broadcast %99 : vector<1x32xf32> to vector<16x32xf32>
    %101 = arith.addf %98, %100 : vector<16x32xf32>
    %c2_52 = arith.constant 2 : index
    %c0_53 = arith.constant 0 : index
    %c0_54 = arith.constant 0 : index
    %102 = vector.load %arg4[%c2_52, %c0_53, %c0_54] : memref<4x128x32xbf16, #tpu.memory_space<vmem>>, vector<1x128x32xbf16>
    %103 = vector.shape_cast %102 : vector<1x128x32xbf16> to vector<128x32xbf16>
    %cst_55 = arith.constant dense<0.000000e+00> : vector<16x32xf32>
    %104 = tpu.matmul %2, %103, %cst_55 {dimension_numbers = #tpu.dot_dimension_numbers<[1], [0], [0], [1], [0, 0, 1, 1], [], []>} : vector<16x128xbf16>, vector<128x32xbf16>, vector<16x32xf32> -> vector<16x32xf32>
    %105 = vector.extract_strided_slice %3 {offsets = [10, 0], sizes = [1, 32], strides = [1, 1]} : vector<12x32xf32> to vector<1x32xf32>
    %106 = vector.broadcast %105 : vector<1x32xf32> to vector<16x32xf32>
    %107 = arith.addf %104, %106 : vector<16x32xf32>
    %108 = arith.truncf %95 : vector<16x32xf32> to vector<16x32xbf16>
    %109 = arith.truncf %101 : vector<16x32xf32> to vector<16x32xbf16>
    %cst_56 = arith.constant dense<0.000000e+00> : vector<16x16xf32>
    %110 = tpu.matmul %108, %109, %cst_56 {dimension_numbers = #tpu.dot_dimension_numbers<[1], [1], [0], [0], [0, 0, 1, 0], [], []>} : vector<16x32xbf16>, vector<16x32xbf16>, vector<16x16xf32> -> vector<16x16xf32>
    %cst_57 = arith.constant dense<0xFF800000> : vector<16xf32>
    %111 = vector.multi_reduction <maximumf>, %110, %cst_57 [1] : vector<16x16xf32> to vector<16xf32>
    %112 = vector.shape_cast %111 : vector<16xf32> to vector<16x1xf32>
    %113 = vector.broadcast %112 : vector<16x1xf32> to vector<16x16xf32>
    %114 = arith.subf %110, %113 : vector<16x16xf32>
    %115 = math.exp %114 : vector<16x16xf32>
    %cst_58 = arith.constant dense<0.000000e+00> : vector<16xf32>
    %116 = vector.multi_reduction <add>, %115, %cst_58 [1] : vector<16x16xf32> to vector<16xf32>
    %117 = vector.shape_cast %116 : vector<16xf32> to vector<16x1xf32>
    %118 = tpu.reciprocal %117 {approx = true} : vector<16x1xf32> -> vector<16x1xf32>
    %119 = vector.broadcast %118 : vector<16x1xf32> to vector<16x16xf32>
    %120 = arith.mulf %115, %119 : vector<16x16xf32>
    %121 = arith.truncf %120 : vector<16x16xf32> to vector<16x16xbf16>
    %122 = arith.truncf %107 : vector<16x32xf32> to vector<16x32xbf16>
    %cst_59 = arith.constant dense<0.000000e+00> : vector<16x32xf32>
    %123 = tpu.matmul %121, %122, %cst_59 {dimension_numbers = #tpu.dot_dimension_numbers<[1], [0], [0], [1], [0, 0, 1, 1], [], []>} : vector<16x16xbf16>, vector<16x32xbf16>, vector<16x32xf32> -> vector<16x32xf32>
    %124 = arith.truncf %123 : vector<16x32xf32> to vector<16x32xbf16>
    %c2_60 = arith.constant 2 : index
    %c0_61 = arith.constant 0 : index
    %c0_62 = arith.constant 0 : index
    %125 = vector.load %arg5[%c2_60, %c0_61, %c0_62] : memref<4x32x128xbf16, #tpu.memory_space<vmem>>, vector<1x32x128xbf16>
    %126 = vector.shape_cast %125 : vector<1x32x128xbf16> to vector<32x128xbf16>
    %cst_63 = arith.constant dense<0.000000e+00> : vector<16x128xf32>
    %127 = tpu.matmul %124, %126, %cst_63 {dimension_numbers = #tpu.dot_dimension_numbers<[1], [0], [0], [1], [0, 0, 1, 1], [], []>} : vector<16x32xbf16>, vector<32x128xbf16>, vector<16x128xf32> -> vector<16x128xf32>
    %128 = arith.addf %89, %127 : vector<16x128xf32>
    %c3 = arith.constant 3 : index
    %c0_64 = arith.constant 0 : index
    %c0_65 = arith.constant 0 : index
    %129 = vector.load %arg2[%c3, %c0_64, %c0_65] : memref<4x128x32xbf16, #tpu.memory_space<vmem>>, vector<1x128x32xbf16>
    %130 = vector.shape_cast %129 : vector<1x128x32xbf16> to vector<128x32xbf16>
    %cst_66 = arith.constant dense<0.000000e+00> : vector<16x32xf32>
    %131 = tpu.matmul %2, %130, %cst_66 {dimension_numbers = #tpu.dot_dimension_numbers<[1], [0], [0], [1], [0, 0, 1, 1], [], []>} : vector<16x128xbf16>, vector<128x32xbf16>, vector<16x32xf32> -> vector<16x32xf32>
    %132 = vector.extract_strided_slice %3 {offsets = [3, 0], sizes = [1, 32], strides = [1, 1]} : vector<12x32xf32> to vector<1x32xf32>
    %133 = vector.broadcast %132 : vector<1x32xf32> to vector<16x32xf32>
    %134 = arith.addf %131, %133 : vector<16x32xf32>
    %c3_67 = arith.constant 3 : index
    %c0_68 = arith.constant 0 : index
    %c0_69 = arith.constant 0 : index
    %135 = vector.load %arg3[%c3_67, %c0_68, %c0_69] : memref<4x128x32xbf16, #tpu.memory_space<vmem>>, vector<1x128x32xbf16>
    %136 = vector.shape_cast %135 : vector<1x128x32xbf16> to vector<128x32xbf16>
    %cst_70 = arith.constant dense<0.000000e+00> : vector<16x32xf32>
    %137 = tpu.matmul %2, %136, %cst_70 {dimension_numbers = #tpu.dot_dimension_numbers<[1], [0], [0], [1], [0, 0, 1, 1], [], []>} : vector<16x128xbf16>, vector<128x32xbf16>, vector<16x32xf32> -> vector<16x32xf32>
    %138 = vector.extract_strided_slice %3 {offsets = [7, 0], sizes = [1, 32], strides = [1, 1]} : vector<12x32xf32> to vector<1x32xf32>
    %139 = vector.broadcast %138 : vector<1x32xf32> to vector<16x32xf32>
    %140 = arith.addf %137, %139 : vector<16x32xf32>
    %c3_71 = arith.constant 3 : index
    %c0_72 = arith.constant 0 : index
    %c0_73 = arith.constant 0 : index
    %141 = vector.load %arg4[%c3_71, %c0_72, %c0_73] : memref<4x128x32xbf16, #tpu.memory_space<vmem>>, vector<1x128x32xbf16>
    %142 = vector.shape_cast %141 : vector<1x128x32xbf16> to vector<128x32xbf16>
    %cst_74 = arith.constant dense<0.000000e+00> : vector<16x32xf32>
    %143 = tpu.matmul %2, %142, %cst_74 {dimension_numbers = #tpu.dot_dimension_numbers<[1], [0], [0], [1], [0, 0, 1, 1], [], []>} : vector<16x128xbf16>, vector<128x32xbf16>, vector<16x32xf32> -> vector<16x32xf32>
    %144 = vector.extract_strided_slice %3 {offsets = [11, 0], sizes = [1, 32], strides = [1, 1]} : vector<12x32xf32> to vector<1x32xf32>
    %145 = vector.broadcast %144 : vector<1x32xf32> to vector<16x32xf32>
    %146 = arith.addf %143, %145 : vector<16x32xf32>
    %147 = arith.truncf %134 : vector<16x32xf32> to vector<16x32xbf16>
    %148 = arith.truncf %140 : vector<16x32xf32> to vector<16x32xbf16>
    %cst_75 = arith.constant dense<0.000000e+00> : vector<16x16xf32>
    %149 = tpu.matmul %147, %148, %cst_75 {dimension_numbers = #tpu.dot_dimension_numbers<[1], [1], [0], [0], [0, 0, 1, 0], [], []>} : vector<16x32xbf16>, vector<16x32xbf16>, vector<16x16xf32> -> vector<16x16xf32>
    %cst_76 = arith.constant dense<0xFF800000> : vector<16xf32>
    %150 = vector.multi_reduction <maximumf>, %149, %cst_76 [1] : vector<16x16xf32> to vector<16xf32>
    %151 = vector.shape_cast %150 : vector<16xf32> to vector<16x1xf32>
    %152 = vector.broadcast %151 : vector<16x1xf32> to vector<16x16xf32>
    %153 = arith.subf %149, %152 : vector<16x16xf32>
    %154 = math.exp %153 : vector<16x16xf32>
    %cst_77 = arith.constant dense<0.000000e+00> : vector<16xf32>
    %155 = vector.multi_reduction <add>, %154, %cst_77 [1] : vector<16x16xf32> to vector<16xf32>
    %156 = vector.shape_cast %155 : vector<16xf32> to vector<16x1xf32>
    %157 = tpu.reciprocal %156 {approx = true} : vector<16x1xf32> -> vector<16x1xf32>
    %158 = vector.broadcast %157 : vector<16x1xf32> to vector<16x16xf32>
    %159 = arith.mulf %154, %158 : vector<16x16xf32>
    %160 = arith.truncf %159 : vector<16x16xf32> to vector<16x16xbf16>
    %161 = arith.truncf %146 : vector<16x32xf32> to vector<16x32xbf16>
    %cst_78 = arith.constant dense<0.000000e+00> : vector<16x32xf32>
    %162 = tpu.matmul %160, %161, %cst_78 {dimension_numbers = #tpu.dot_dimension_numbers<[1], [0], [0], [1], [0, 0, 1, 1], [], []>} : vector<16x16xbf16>, vector<16x32xbf16>, vector<16x32xf32> -> vector<16x32xf32>
    %163 = arith.truncf %162 : vector<16x32xf32> to vector<16x32xbf16>
    %c3_79 = arith.constant 3 : index
    %c0_80 = arith.constant 0 : index
    %c0_81 = arith.constant 0 : index
    %164 = vector.load %arg5[%c3_79, %c0_80, %c0_81] : memref<4x32x128xbf16, #tpu.memory_space<vmem>>, vector<1x32x128xbf16>
    %165 = vector.shape_cast %164 : vector<1x32x128xbf16> to vector<32x128xbf16>
    %cst_82 = arith.constant dense<0.000000e+00> : vector<16x128xf32>
    %166 = tpu.matmul %163, %165, %cst_82 {dimension_numbers = #tpu.dot_dimension_numbers<[1], [0], [0], [1], [0, 0, 1, 1], [], []>} : vector<16x32xbf16>, vector<32x128xbf16>, vector<16x128xf32> -> vector<16x128xf32>
    %167 = arith.addf %128, %166 : vector<16x128xf32>
    %168 = vector.broadcast %5 : vector<1x128xf32> to vector<16x128xf32>
    %169 = arith.addf %167, %168 : vector<16x128xf32>
    %170 = arith.addf %1, %169 : vector<16x128xf32>
    %cst_83 = arith.constant dense<0.000000e+00> : vector<16xf32>
    %171 = vector.multi_reduction <add>, %170, %cst_83 [1] : vector<16x128xf32> to vector<16xf32>
    %172 = vector.shape_cast %171 : vector<16xf32> to vector<16x1xf32>
    %cst_84 = arith.constant 1.280000e+02 : f32
    %173 = vector.broadcast %cst_84 : f32 to vector<16x1xf32>
    %174 = arith.divf %172, %173 : vector<16x1xf32>
    %175 = vector.broadcast %174 : vector<16x1xf32> to vector<16x128xf32>
    %176 = arith.subf %170, %175 : vector<16x128xf32>
    %177 = arith.mulf %176, %176 : vector<16x128xf32>
    %cst_85 = arith.constant dense<0.000000e+00> : vector<16xf32>
    %178 = vector.multi_reduction <add>, %177, %cst_85 [1] : vector<16x128xf32> to vector<16xf32>
    %179 = vector.shape_cast %178 : vector<16xf32> to vector<16x1xf32>
    %cst_86 = arith.constant 1.280000e+02 : f32
    %180 = vector.broadcast %cst_86 : f32 to vector<16x1xf32>
    %181 = arith.divf %179, %180 : vector<16x1xf32>
    %182 = vector.broadcast %174 : vector<16x1xf32> to vector<16x128xf32>
    %183 = arith.subf %170, %182 : vector<16x128xf32>
    %cst_87 = arith.constant 9.99999974E-6 : f32
    %184 = vector.broadcast %cst_87 : f32 to vector<16x1xf32>
    %185 = arith.addf %181, %184 : vector<16x1xf32>
    %186 = math.rsqrt %185 : vector<16x1xf32>
    %187 = vector.broadcast %186 : vector<16x1xf32> to vector<16x128xf32>
    %188 = arith.mulf %183, %187 : vector<16x128xf32>
    %189 = vector.broadcast %7 : vector<1x128xf32> to vector<16x128xf32>
    %190 = arith.mulf %188, %189 : vector<16x128xf32>
    %191 = vector.broadcast %8 : vector<1x128xf32> to vector<16x128xf32>
    %192 = arith.addf %190, %191 : vector<16x128xf32>
    %193 = arith.truncf %192 : vector<16x128xf32> to vector<16x128xbf16>
    %c0_88 = arith.constant 0 : index
    %c0_89 = arith.constant 0 : index
    %194 = vector.load %arg6[%c0_88, %c0_89] : memref<128x256xbf16, #tpu.memory_space<vmem>>, vector<128x256xbf16>
    %cst_90 = arith.constant dense<0.000000e+00> : vector<16x256xf32>
    %195 = tpu.matmul %193, %194, %cst_90 {dimension_numbers = #tpu.dot_dimension_numbers<[1], [0], [0], [1], [0, 0, 1, 1], [], []>} : vector<16x128xbf16>, vector<128x256xbf16>, vector<16x256xf32> -> vector<16x256xf32>
    %c0_91 = arith.constant 0 : index
    %c0_92 = arith.constant 0 : index
    %196 = vector.load %arg10[%c0_91, %c0_92] : memref<1x256xf32, #tpu.memory_space<vmem>>, vector<1x256xf32>
    %197 = vector.broadcast %196 : vector<1x256xf32> to vector<16x256xf32>
    %198 = arith.addf %195, %197 : vector<16x256xf32>
    %cst_93 = arith.constant 0.000000e+00 : f32
    %199 = vector.broadcast %cst_93 : f32 to vector<16x256xf32>
    %200 = arith.maximumf %198, %199 : vector<16x256xf32>
    %201 = arith.truncf %200 : vector<16x256xf32> to vector<16x256xbf16>
    %c0_94 = arith.constant 0 : index
    %c0_95 = arith.constant 0 : index
    %202 = vector.load %arg7[%c0_94, %c0_95] : memref<256x128xbf16, #tpu.memory_space<vmem>>, vector<256x128xbf16>
    %cst_96 = arith.constant dense<0.000000e+00> : vector<16x128xf32>
    %203 = tpu.matmul %201, %202, %cst_96 {dimension_numbers = #tpu.dot_dimension_numbers<[1], [0], [0], [1], [0, 0, 1, 1], [], []>} : vector<16x256xbf16>, vector<256x128xbf16>, vector<16x128xf32> -> vector<16x128xf32>
    %204 = vector.broadcast %6 : vector<1x128xf32> to vector<16x128xf32>
    %205 = arith.addf %203, %204 : vector<16x128xf32>
    %206 = arith.addf %192, %205 : vector<16x128xf32>
    %cst_97 = arith.constant dense<0.000000e+00> : vector<16xf32>
    %207 = vector.multi_reduction <add>, %206, %cst_97 [1] : vector<16x128xf32> to vector<16xf32>
    %208 = vector.shape_cast %207 : vector<16xf32> to vector<16x1xf32>
    %cst_98 = arith.constant 1.280000e+02 : f32
    %209 = vector.broadcast %cst_98 : f32 to vector<16x1xf32>
    %210 = arith.divf %208, %209 : vector<16x1xf32>
    %211 = vector.broadcast %210 : vector<16x1xf32> to vector<16x128xf32>
    %212 = arith.subf %206, %211 : vector<16x128xf32>
    %213 = arith.mulf %212, %212 : vector<16x128xf32>
    %cst_99 = arith.constant dense<0.000000e+00> : vector<16xf32>
    %214 = vector.multi_reduction <add>, %213, %cst_99 [1] : vector<16x128xf32> to vector<16xf32>
    %215 = vector.shape_cast %214 : vector<16xf32> to vector<16x1xf32>
    %cst_100 = arith.constant 1.280000e+02 : f32
    %216 = vector.broadcast %cst_100 : f32 to vector<16x1xf32>
    %217 = arith.divf %215, %216 : vector<16x1xf32>
    %218 = vector.broadcast %210 : vector<16x1xf32> to vector<16x128xf32>
    %219 = arith.subf %206, %218 : vector<16x128xf32>
    %cst_101 = arith.constant 9.99999974E-6 : f32
    %220 = vector.broadcast %cst_101 : f32 to vector<16x1xf32>
    %221 = arith.addf %217, %220 : vector<16x1xf32>
    %222 = math.rsqrt %221 : vector<16x1xf32>
    %223 = vector.broadcast %222 : vector<16x1xf32> to vector<16x128xf32>
    %224 = arith.mulf %219, %223 : vector<16x128xf32>
    %225 = vector.broadcast %9 : vector<1x128xf32> to vector<16x128xf32>
    %226 = arith.mulf %224, %225 : vector<16x128xf32>
    %227 = vector.broadcast %10 : vector<1x128xf32> to vector<16x128xf32>
    %228 = arith.addf %226, %227 : vector<16x128xf32>
    %c0_102 = arith.constant 0 : index
    %c0_103 = arith.constant 0 : index
    %c0_104 = arith.constant 0 : index
    %229 = vector.load %arg11[%c0_102, %c0_103, %c0_104] : memref<1x16x128xf32, #tpu.memory_space<vmem>>, vector<1x16x128xf32>
    %230 = vector.shape_cast %229 : vector<1x16x128xf32> to vector<16x128xf32>
    %231 = vector.shape_cast %228 : vector<16x128xf32> to vector<1x16x128xf32>
    tpu.vector_store %arg11[%c0_102, %c0_103, %c0_104], %231 {strides = array<i32>} : memref<1x16x128xf32, #tpu.memory_space<vmem>>, vector<1x16x128xf32>,
    return
  }
  func.func @transform_0(%arg0: i32) -> (i32, i32, i32) {
    %c0_i32 = arith.constant 0 : i32
    %c0_i32_0 = arith.constant 0 : i32
    %c0_i32_1 = arith.constant 0 : i32
    return %arg0, %c0_i32, %c0_i32_0 : i32, i32, i32
  }
  func.func @transform_1(%arg0: i32) -> (i32, i32, i32) {
    %c0_i32 = arith.constant 0 : i32
    %c0_i32_0 = arith.constant 0 : i32
    %c0_i32_1 = arith.constant 0 : i32
    %c0_i32_2 = arith.constant 0 : i32
    return %c0_i32, %c0_i32_0, %c0_i32_1 : i32, i32, i32
  }
  func.func @transform_2(%arg0: i32) -> (i32, i32, i32) {
    %c0_i32 = arith.constant 0 : i32
    %c0_i32_0 = arith.constant 0 : i32
    %c0_i32_1 = arith.constant 0 : i32
    %c0_i32_2 = arith.constant 0 : i32
    return %c0_i32, %c0_i32_0, %c0_i32_1 : i32, i32, i32
  }
  func.func @transform_3(%arg0: i32) -> (i32, i32, i32) {
    %c0_i32 = arith.constant 0 : i32
    %c0_i32_0 = arith.constant 0 : i32
    %c0_i32_1 = arith.constant 0 : i32
    %c0_i32_2 = arith.constant 0 : i32
    return %c0_i32, %c0_i32_0, %c0_i32_1 : i32, i32, i32
  }
  func.func @transform_4(%arg0: i32) -> (i32, i32, i32) {
    %c0_i32 = arith.constant 0 : i32
    %c0_i32_0 = arith.constant 0 : i32
    %c0_i32_1 = arith.constant 0 : i32
    %c0_i32_2 = arith.constant 0 : i32
    return %c0_i32, %c0_i32_0, %c0_i32_1 : i32, i32, i32
  }
  func.func @transform_5(%arg0: i32) -> (i32, i32) {
    %c0_i32 = arith.constant 0 : i32
    %c0_i32_0 = arith.constant 0 : i32
    %c0_i32_1 = arith.constant 0 : i32
    return %c0_i32, %c0_i32_0 : i32, i32
  }
  func.func @transform_6(%arg0: i32) -> (i32, i32) {
    %c0_i32 = arith.constant 0 : i32
    %c0_i32_0 = arith.constant 0 : i32
    %c0_i32_1 = arith.constant 0 : i32
    return %c0_i32, %c0_i32_0 : i32, i32
  }
  func.func @transform_7(%arg0: i32) -> (i32, i32) {
    %c0_i32 = arith.constant 0 : i32
    %c0_i32_0 = arith.constant 0 : i32
    %c0_i32_1 = arith.constant 0 : i32
    return %c0_i32, %c0_i32_0 : i32, i32
  }
  func.func @transform_8(%arg0: i32) -> (i32, i32) {
    %c0_i32 = arith.constant 0 : i32
    %c0_i32_0 = arith.constant 0 : i32
    %c0_i32_1 = arith.constant 0 : i32
    return %c0_i32, %c0_i32_0 : i32, i32
  }
  func.func @transform_9(%arg0: i32) -> (i32, i32) {
    %c0_i32 = arith.constant 0 : i32
    %c0_i32_0 = arith.constant 0 : i32
    %c0_i32_1 = arith.constant 0 : i32
    return %c0_i32, %c0_i32_0 : i32, i32
  }
  func.func @transform_10(%arg0: i32) -> (i32, i32, i32) {
    %c0_i32 = arith.constant 0 : i32
    %c0_i32_0 = arith.constant 0 : i32
    %c0_i32_1 = arith.constant 0 : i32
    return %arg0, %c0_i32, %c0_i32_0 : i32, i32, i32
  }
}

module attributes {stable_mosaic.version = 11 : i64} {
  func.func @_encoder_layer_kernel(%arg0: i32, %arg1: memref<1x16x128xf32, #tpu.memory_space<vmem>>, %arg2: memref<4x128x32xbf16, #tpu.memory_space<vmem>>, %arg3: memref<4x128x32xbf16, #tpu.memory_space<vmem>>, %arg4: memref<4x128x32xbf16, #tpu.memory_space<vmem>>, %arg5: memref<4x32x128xbf16, #tpu.memory_space<vmem>>, %arg6: memref<128x256xbf16, #tpu.memory_space<vmem>>, %arg7: memref<256x128xbf16, #tpu.memory_space<vmem>>, %arg8: memref<12x32xf32, #tpu.memory_space<vmem>>, %arg9: memref<8x128xf32, #tpu.memory_space<vmem>>, %arg10: memref<1x256xf32, #tpu.memory_space<vmem>>, %arg11: memref<1x16x128xf32, #tpu.memory_space<vmem>>) attributes {dimension_semantics = [#tpu.dimension_semantics<parallel>], iteration_bounds = array<i64: 2>, scalar_prefetch = 0 : i64, scratch_operands = 0 : i64, tpu.core_type = #tpu.core_type<tc>, window_params = [{transform_indices = @transform_0, window_bounds = array<i64: 1, 16, 128>}, {pipeline_mode = #tpu.pipeline_mode<synchronous>, transform_indices = @transform_1, window_bounds = array<i64: 4, 128, 32>}, {pipeline_mode = #tpu.pipeline_mode<synchronous>, transform_indices = @transform_2, window_bounds = array<i64: 4, 128, 32>}, {pipeline_mode = #tpu.pipeline_mode<synchronous>, transform_indices = @transform_3, window_bounds = array<i64: 4, 128, 32>}, {pipeline_mode = #tpu.pipeline_mode<synchronous>, transform_indices = @transform_4, window_bounds = array<i64: 4, 32, 128>}, {pipeline_mode = #tpu.pipeline_mode<synchronous>, transform_indices = @transform_5, window_bounds = array<i64: 128, 256>}, {pipeline_mode = #tpu.pipeline_mode<synchronous>, transform_indices = @transform_6, window_bounds = array<i64: 256, 128>}, {pipeline_mode = #tpu.pipeline_mode<synchronous>, transform_indices = @transform_7, window_bounds = array<i64: 12, 32>}, {pipeline_mode = #tpu.pipeline_mode<synchronous>, transform_indices = @transform_8, window_bounds = array<i64: 8, 128>}, {pipeline_mode = #tpu.pipeline_mode<synchronous>, transform_indices = @transform_9, window_bounds = array<i64: 1, 256>}, {transform_indices = @transform_10, window_bounds = array<i64: 1, 16, 128>}]} {
    %c0 = arith.constant 0 : index
    %c0_0 = arith.constant 0 : index
    %c0_1 = arith.constant 0 : index
    %0 = vector.load %arg1[%c0, %c0_0, %c0_1] : memref<1x16x128xf32, #tpu.memory_space<vmem>>, vector<1x16x128xf32>
    %1 = vector.shape_cast %0 : vector<1x16x128xf32> to vector<16x128xf32>
    %2 = arith.truncf %1 : vector<16x128xf32> to vector<16x128xbf16>
    %c0_2 = arith.constant 0 : index
    %c0_3 = arith.constant 0 : index
    %3 = vector.load %arg8[%c0_2, %c0_3] : memref<12x32xf32, #tpu.memory_space<vmem>>, vector<12x32xf32>
    %c0_4 = arith.constant 0 : index
    %c0_5 = arith.constant 0 : index
    %4 = vector.load %arg9[%c0_4, %c0_5] : memref<8x128xf32, #tpu.memory_space<vmem>>, vector<8x128xf32>
    %5 = vector.extract_strided_slice %4 {offsets = [0, 0], sizes = [1, 128], strides = [1, 1]} : vector<8x128xf32> to vector<1x128xf32>
    %6 = vector.extract_strided_slice %4 {offsets = [1, 0], sizes = [1, 128], strides = [1, 1]} : vector<8x128xf32> to vector<1x128xf32>
    %7 = vector.extract_strided_slice %4 {offsets = [2, 0], sizes = [1, 128], strides = [1, 1]} : vector<8x128xf32> to vector<1x128xf32>
    %8 = vector.extract_strided_slice %4 {offsets = [3, 0], sizes = [1, 128], strides = [1, 1]} : vector<8x128xf32> to vector<1x128xf32>
    %9 = vector.extract_strided_slice %4 {offsets = [4, 0], sizes = [1, 128], strides = [1, 1]} : vector<8x128xf32> to vector<1x128xf32>
    %10 = vector.extract_strided_slice %4 {offsets = [5, 0], sizes = [1, 128], strides = [1, 1]} : vector<8x128xf32> to vector<1x128xf32>
    %cst = arith.constant 0.000000e+00 : f32
    %11 = vector.broadcast %cst : f32 to vector<16x128xf32>
    %c0_6 = arith.constant 0 : index
    %c0_7 = arith.constant 0 : index
    %c0_8 = arith.constant 0 : index
    %12 = vector.load %arg2[%c0_6, %c0_7, %c0_8] : memref<4x128x32xbf16, #tpu.memory_space<vmem>>, vector<1x128x32xbf16>
    %13 = vector.shape_cast %12 : vector<1x128x32xbf16> to vector<128x32xbf16>
    %cst_9 = arith.constant dense<0.000000e+00> : vector<16x32xf32>
    %14 = tpu.matmul %2, %13, %cst_9 {dimension_numbers = #tpu.dot_dimension_numbers<[1], [0], [0], [1], [0, 0, 1, 1], [], []>} : vector<16x128xbf16>, vector<128x32xbf16>, vector<16x32xf32> -> vector<16x32xf32>
    %15 = vector.extract_strided_slice %3 {offsets = [0, 0], sizes = [1, 32], strides = [1, 1]} : vector<12x32xf32> to vector<1x32xf32>
    %16 = vector.broadcast %15 : vector<1x32xf32> to vector<16x32xf32>
    %17 = arith.addf %14, %16 : vector<16x32xf32>
    %c0_10 = arith.constant 0 : index
    %c0_11 = arith.constant 0 : index
    %c0_12 = arith.constant 0 : index
    %18 = vector.load %arg3[%c0_10, %c0_11, %c0_12] : memref<4x128x32xbf16, #tpu.memory_space<vmem>>, vector<1x128x32xbf16>
    %19 = vector.shape_cast %18 : vector<1x128x32xbf16> to vector<128x32xbf16>
    %cst_13 = arith.constant dense<0.000000e+00> : vector<16x32xf32>
    %20 = tpu.matmul %2, %19, %cst_13 {dimension_numbers = #tpu.dot_dimension_numbers<[1], [0], [0], [1], [0, 0, 1, 1], [], []>} : vector<16x128xbf16>, vector<128x32xbf16>, vector<16x32xf32> -> vector<16x32xf32>
    %21 = vector.extract_strided_slice %3 {offsets = [4, 0], sizes = [1, 32], strides = [1, 1]} : vector<12x32xf32> to vector<1x32xf32>
    %22 = vector.broadcast %21 : vector<1x32xf32> to vector<16x32xf32>
    %23 = arith.addf %20, %22 : vector<16x32xf32>
    %c0_14 = arith.constant 0 : index
    %c0_15 = arith.constant 0 : index
    %c0_16 = arith.constant 0 : index
    %24 = vector.load %arg4[%c0_14, %c0_15, %c0_16] : memref<4x128x32xbf16, #tpu.memory_space<vmem>>, vector<1x128x32xbf16>
    %25 = vector.shape_cast %24 : vector<1x128x32xbf16> to vector<128x32xbf16>
    %cst_17 = arith.constant dense<0.000000e+00> : vector<16x32xf32>
    %26 = tpu.matmul %2, %25, %cst_17 {dimension_numbers = #tpu.dot_dimension_numbers<[1], [0], [0], [1], [0, 0, 1, 1], [], []>} : vector<16x128xbf16>, vector<128x32xbf16>, vector<16x32xf32> -> vector<16x32xf32>
    %27 = vector.extract_strided_slice %3 {offsets = [8, 0], sizes = [1, 32], strides = [1, 1]} : vector<12x32xf32> to vector<1x32xf32>
    %28 = vector.broadcast %27 : vector<1x32xf32> to vector<16x32xf32>
    %29 = arith.addf %26, %28 : vector<16x32xf32>
    %30 = arith.truncf %17 : vector<16x32xf32> to vector<16x32xbf16>
    %31 = arith.truncf %23 : vector<16x32xf32> to vector<16x32xbf16>
    %cst_18 = arith.constant dense<0.000000e+00> : vector<16x16xf32>
    %32 = tpu.matmul %30, %31, %cst_18 {dimension_numbers = #tpu.dot_dimension_numbers<[1], [1], [0], [0], [0, 0, 1, 0], [], []>} : vector<16x32xbf16>, vector<16x32xbf16>, vector<16x16xf32> -> vector<16x16xf32>
    %cst_19 = arith.constant dense<0xFF800000> : vector<16xf32>
    %33 = vector.multi_reduction <maximumf>, %32, %cst_19 [1] : vector<16x16xf32> to vector<16xf32>
    %34 = vector.shape_cast %33 : vector<16xf32> to vector<16x1xf32>
    %35 = vector.broadcast %34 : vector<16x1xf32> to vector<16x16xf32>
    %36 = arith.subf %32, %35 : vector<16x16xf32>
    %37 = math.exp %36 : vector<16x16xf32>
    %cst_20 = arith.constant dense<0.000000e+00> : vector<16xf32>
    %38 = vector.multi_reduction <add>, %37, %cst_20 [1] : vector<16x16xf32> to vector<16xf32>
    %39 = vector.shape_cast %38 : vector<16xf32> to vector<16x1xf32>
    %40 = tpu.reciprocal %39 {approx = true} : vector<16x1xf32> -> vector<16x1xf32>
    %41 = vector.broadcast %40 : vector<16x1xf32> to vector<16x16xf32>
    %42 = arith.mulf %37, %41 : vector<16x16xf32>
    %43 = arith.truncf %42 : vector<16x16xf32> to vector<16x16xbf16>
    %44 = arith.truncf %29 : vector<16x32xf32> to vector<16x32xbf16>
    %cst_21 = arith.constant dense<0.000000e+00> : vector<16x32xf32>
    %45 = tpu.matmul %43, %44, %cst_21 {dimension_numbers = #tpu.dot_dimension_numbers<[1], [0], [0], [1], [0, 0, 1, 1], [], []>} : vector<16x16xbf16>, vector<16x32xbf16>, vector<16x32xf32> -> vector<16x32xf32>
    %46 = arith.truncf %45 : vector<16x32xf32> to vector<16x32xbf16>
    %c0_22 = arith.constant 0 : index
    %c0_23 = arith.constant 0 : index
    %c0_24 = arith.constant 0 : index
    %47 = vector.load %arg5[%c0_22, %c0_23, %c0_24] : memref<4x32x128xbf16, #tpu.memory_space<vmem>>, vector<1x32x128xbf16>
    %48 = vector.shape_cast %47 : vector<1x32x128xbf16> to vector<32x128xbf16>
    %cst_25 = arith.constant dense<0.000000e+00> : vector<16x128xf32>
    %49 = tpu.matmul %46, %48, %cst_25 {dimension_numbers = #tpu.dot_dimension_numbers<[1], [0], [0], [1], [0, 0, 1, 1], [], []>} : vector<16x32xbf16>, vector<32x128xbf16>, vector<16x128xf32> -> vector<16x128xf32>
    %50 = arith.addf %11, %49 : vector<16x128xf32>
    %c1 = arith.constant 1 : index
    %c0_26 = arith.constant 0 : index
    %c0_27 = arith.constant 0 : index
    %51 = vector.load %arg2[%c1, %c0_26, %c0_27] : memref<4x128x32xbf16, #tpu.memory_space<vmem>>, vector<1x128x32xbf16>
    %52 = vector.shape_cast %51 : vector<1x128x32xbf16> to vector<128x32xbf16>
    %cst_28 = arith.constant dense<0.000000e+00> : vector<16x32xf32>
    %53 = tpu.matmul %2, %52, %cst_28 {dimension_numbers = #tpu.dot_dimension_numbers<[1], [0], [0], [1], [0, 0, 1, 1], [], []>} : vector<16x128xbf16>, vector<128x32xbf16>, vector<16x32xf32> -> vector<16x32xf32>
    %54 = vector.extract_strided_slice %3 {offsets = [1, 0], sizes = [1, 32], strides = [1, 1]} : vector<12x32xf32> to vector<1x32xf32>
    %55 = vector.broadcast %54 : vector<1x32xf32> to vector<16x32xf32>
    %56 = arith.addf %53, %55 : vector<16x32xf32>
    %c1_29 = arith.constant 1 : index
    %c0_30 = arith.constant 0 : index
    %c0_31 = arith.constant 0 : index
    %57 = vector.load %arg3[%c1_29, %c0_30, %c0_31] : memref<4x128x32xbf16, #tpu.memory_space<vmem>>, vector<1x128x32xbf16>
    %58 = vector.shape_cast %57 : vector<1x128x32xbf16> to vector<128x32xbf16>
    %cst_32 = arith.constant dense<0.000000e+00> : vector<16x32xf32>
    %59 = tpu.matmul %2, %58, %cst_32 {dimension_numbers = #tpu.dot_dimension_numbers<[1], [0], [0], [1], [0, 0, 1, 1], [], []>} : vector<16x128xbf16>, vector<128x32xbf16>, vector<16x32xf32> -> vector<16x32xf32>
    %60 = vector.extract_strided_slice %3 {offsets = [5, 0], sizes = [1, 32], strides = [1, 1]} : vector<12x32xf32> to vector<1x32xf32>
    %61 = vector.broadcast %60 : vector<1x32xf32> to vector<16x32xf32>
    %62 = arith.addf %59, %61 : vector<16x32xf32>
    %c1_33 = arith.constant 1 : index
    %c0_34 = arith.constant 0 : index
    %c0_35 = arith.constant 0 : index
    %63 = vector.load %arg4[%c1_33, %c0_34, %c0_35] : memref<4x128x32xbf16, #tpu.memory_space<vmem>>, vector<1x128x32xbf16>
    %64 = vector.shape_cast %63 : vector<1x128x32xbf16> to vector<128x32xbf16>
    %cst_36 = arith.constant dense<0.000000e+00> : vector<16x32xf32>
    %65 = tpu.matmul %2, %64, %cst_36 {dimension_numbers = #tpu.dot_dimension_numbers<[1], [0], [0], [1], [0, 0, 1, 1], [], []>} : vector<16x128xbf16>, vector<128x32xbf16>, vector<16x32xf32> -> vector<16x32xf32>
    %66 = vector.extract_strided_slice %3 {offsets = [9, 0], sizes = [1, 32], strides = [1, 1]} : vector<12x32xf32> to vector<1x32xf32>
    %67 = vector.broadcast %66 : vector<1x32xf32> to vector<16x32xf32>
    %68 = arith.addf %65, %67 : vector<16x32xf32>
    %69 = arith.truncf %56 : vector<16x32xf32> to vector<16x32xbf16>
    %70 = arith.truncf %62 : vector<16x32xf32> to vector<16x32xbf16>
    %cst_37 = arith.constant dense<0.000000e+00> : vector<16x16xf32>
    %71 = tpu.matmul %69, %70, %cst_37 {dimension_numbers = #tpu.dot_dimension_numbers<[1], [1], [0], [0], [0, 0, 1, 0], [], []>} : vector<16x32xbf16>, vector<16x32xbf16>, vector<16x16xf32> -> vector<16x16xf32>
    %cst_38 = arith.constant dense<0xFF800000> : vector<16xf32>
    %72 = vector.multi_reduction <maximumf>, %71, %cst_38 [1] : vector<16x16xf32> to vector<16xf32>
    %73 = vector.shape_cast %72 : vector<16xf32> to vector<16x1xf32>
    %74 = vector.broadcast %73 : vector<16x1xf32> to vector<16x16xf32>
    %75 = arith.subf %71, %74 : vector<16x16xf32>
    %76 = math.exp %75 : vector<16x16xf32>
    %cst_39 = arith.constant dense<0.000000e+00> : vector<16xf32>
    %77 = vector.multi_reduction <add>, %76, %cst_39 [1] : vector<16x16xf32> to vector<16xf32>
    %78 = vector.shape_cast %77 : vector<16xf32> to vector<16x1xf32>
    %79 = tpu.reciprocal %78 {approx = true} : vector<16x1xf32> -> vector<16x1xf32>
    %80 = vector.broadcast %79 : vector<16x1xf32> to vector<16x16xf32>
    %81 = arith.mulf %76, %80 : vector<16x16xf32>
    %82 = arith.truncf %81 : vector<16x16xf32> to vector<16x16xbf16>
    %83 = arith.truncf %68 : vector<16x32xf32> to vector<16x32xbf16>
    %cst_40 = arith.constant dense<0.000000e+00> : vector<16x32xf32>
    %84 = tpu.matmul %82, %83, %cst_40 {dimension_numbers = #tpu.dot_dimension_numbers<[1], [0], [0], [1], [0, 0, 1, 1], [], []>} : vector<16x16xbf16>, vector<16x32xbf16>, vector<16x32xf32> -> vector<16x32xf32>
    %85 = arith.truncf %84 : vector<16x32xf32> to vector<16x32xbf16>
    %c1_41 = arith.constant 1 : index
    %c0_42 = arith.constant 0 : index
    %c0_43 = arith.constant 0 : index
    %86 = vector.load %arg5[%c1_41, %c0_42, %c0_43] : memref<4x32x128xbf16, #tpu.memory_space<vmem>>, vector<1x32x128xbf16>
    %87 = vector.shape_cast %86 : vector<1x32x128xbf16> to vector<32x128xbf16>
    %cst_44 = arith.constant dense<0.000000e+00> : vector<16x128xf32>
    %88 = tpu.matmul %85, %87, %cst_44 {dimension_numbers = #tpu.dot_dimension_numbers<[1], [0], [0], [1], [0, 0, 1, 1], [], []>} : vector<16x32xbf16>, vector<32x128xbf16>, vector<16x128xf32> -> vector<16x128xf32>
    %89 = arith.addf %50, %88 : vector<16x128xf32>
    %c2 = arith.constant 2 : index
    %c0_45 = arith.constant 0 : index
    %c0_46 = arith.constant 0 : index
    %90 = vector.load %arg2[%c2, %c0_45, %c0_46] : memref<4x128x32xbf16, #tpu.memory_space<vmem>>, vector<1x128x32xbf16>
    %91 = vector.shape_cast %90 : vector<1x128x32xbf16> to vector<128x32xbf16>
    %cst_47 = arith.constant dense<0.000000e+00> : vector<16x32xf32>
    %92 = tpu.matmul %2, %91, %cst_47 {dimension_numbers = #tpu.dot_dimension_numbers<[1], [0], [0], [1], [0, 0, 1, 1], [], []>} : vector<16x128xbf16>, vector<128x32xbf16>, vector<16x32xf32> -> vector<16x32xf32>
    %93 = vector.extract_strided_slice %3 {offsets = [2, 0], sizes = [1, 32], strides = [1, 1]} : vector<12x32xf32> to vector<1x32xf32>
    %94 = vector.broadcast %93 : vector<1x32xf32> to vector<16x32xf32>
    %95 = arith.addf %92, %94 : vector<16x32xf32>
    %c2_48 = arith.constant 2 : index
    %c0_49 = arith.constant 0 : index
    %c0_50 = arith.constant 0 : index
    %96 = vector.load %arg3[%c2_48, %c0_49, %c0_50] : memref<4x128x32xbf16, #tpu.memory_space<vmem>>, vector<1x128x32xbf16>
    %97 = vector.shape_cast %96 : vector<1x128x32xbf16> to vector<128x32xbf16>
    %cst_51 = arith.constant dense<0.000000e+00> : vector<16x32xf32>
    %98 = tpu.matmul %2, %97, %cst_51 {dimension_numbers = #tpu.dot_dimension_numbers<[1], [0], [0], [1], [0, 0, 1, 1], [], []>} : vector<16x128xbf16>, vector<128x32xbf16>, vector<16x32xf32> -> vector<16x32xf32>
    %99 = vector.extract_strided_slice %3 {offsets = [6, 0], sizes = [1, 32], strides = [1, 1]} : vector<12x32xf32> to vector<1x32xf32>
    %100 = vector.broadcast %99 : vector<1x32xf32> to vector<16x32xf32>
    %101 = arith.addf %98, %100 : vector<16x32xf32>
    %c2_52 = arith.constant 2 : index
    %c0_53 = arith.constant 0 : index
    %c0_54 = arith.constant 0 : index
    %102 = vector.load %arg4[%c2_52, %c0_53, %c0_54] : memref<4x128x32xbf16, #tpu.memory_space<vmem>>, vector<1x128x32xbf16>
    %103 = vector.shape_cast %102 : vector<1x128x32xbf16> to vector<128x32xbf16>
    %cst_55 = arith.constant dense<0.000000e+00> : vector<16x32xf32>
    %104 = tpu.matmul %2, %103, %cst_55 {dimension_numbers = #tpu.dot_dimension_numbers<[1], [0], [0], [1], [0, 0, 1, 1], [], []>} : vector<16x128xbf16>, vector<128x32xbf16>, vector<16x32xf32> -> vector<16x32xf32>
    %105 = vector.extract_strided_slice %3 {offsets = [10, 0], sizes = [1, 32], strides = [1, 1]} : vector<12x32xf32> to vector<1x32xf32>
    %106 = vector.broadcast %105 : vector<1x32xf32> to vector<16x32xf32>
    %107 = arith.addf %104, %106 : vector<16x32xf32>
    %108 = arith.truncf %95 : vector<16x32xf32> to vector<16x32xbf16>
    %109 = arith.truncf %101 : vector<16x32xf32> to vector<16x32xbf16>
    %cst_56 = arith.constant dense<0.000000e+00> : vector<16x16xf32>
    %110 = tpu.matmul %108, %109, %cst_56 {dimension_numbers = #tpu.dot_dimension_numbers<[1], [1], [0], [0], [0, 0, 1, 0], [], []>} : vector<16x32xbf16>, vector<16x32xbf16>, vector<16x16xf32> -> vector<16x16xf32>
    %cst_57 = arith.constant dense<0xFF800000> : vector<16xf32>
    %111 = vector.multi_reduction <maximumf>, %110, %cst_57 [1] : vector<16x16xf32> to vector<16xf32>
    %112 = vector.shape_cast %111 : vector<16xf32> to vector<16x1xf32>
    %113 = vector.broadcast %112 : vector<16x1xf32> to vector<16x16xf32>
    %114 = arith.subf %110, %113 : vector<16x16xf32>
    %115 = math.exp %114 : vector<16x16xf32>
    %cst_58 = arith.constant dense<0.000000e+00> : vector<16xf32>
    %116 = vector.multi_reduction <add>, %115, %cst_58 [1] : vector<16x16xf32> to vector<16xf32>
    %117 = vector.shape_cast %116 : vector<16xf32> to vector<16x1xf32>
    %118 = tpu.reciprocal %117 {approx = true} : vector<16x1xf32> -> vector<16x1xf32>
    %119 = vector.broadcast %118 : vector<16x1xf32> to vector<16x16xf32>
    %120 = arith.mulf %115, %119 : vector<16x16xf32>
    %121 = arith.truncf %120 : vector<16x16xf32> to vector<16x16xbf16>
    %122 = arith.truncf %107 : vector<16x32xf32> to vector<16x32xbf16>
    %cst_59 = arith.constant dense<0.000000e+00> : vector<16x32xf32>
    %123 = tpu.matmul %121, %122, %cst_59 {dimension_numbers = #tpu.dot_dimension_numbers<[1], [0], [0], [1], [0, 0, 1, 1], [], []>} : vector<16x16xbf16>, vector<16x32xbf16>, vector<16x32xf32> -> vector<16x32xf32>
    %124 = arith.truncf %123 : vector<16x32xf32> to vector<16x32xbf16>
    %c2_60 = arith.constant 2 : index
    %c0_61 = arith.constant 0 : index
    %c0_62 = arith.constant 0 : index
    %125 = vector.load %arg5[%c2_60, %c0_61, %c0_62] : memref<4x32x128xbf16, #tpu.memory_space<vmem>>, vector<1x32x128xbf16>
    %126 = vector.shape_cast %125 : vector<1x32x128xbf16> to vector<32x128xbf16>
    %cst_63 = arith.constant dense<0.000000e+00> : vector<16x128xf32>
    %127 = tpu.matmul %124, %126, %cst_63 {dimension_numbers = #tpu.dot_dimension_numbers<[1], [0], [0], [1], [0, 0, 1, 1], [], []>} : vector<16x32xbf16>, vector<32x128xbf16>, vector<16x128xf32> -> vector<16x128xf32>
    %128 = arith.addf %89, %127 : vector<16x128xf32>
    %c3 = arith.constant 3 : index
    %c0_64 = arith.constant 0 : index
    %c0_65 = arith.constant 0 : index
    %129 = vector.load %arg2[%c3, %c0_64, %c0_65] : memref<4x128x32xbf16, #tpu.memory_space<vmem>>, vector<1x128x32xbf16>
    %130 = vector.shape_cast %129 : vector<1x128x32xbf16> to vector<128x32xbf16>
    %cst_66 = arith.constant dense<0.000000e+00> : vector<16x32xf32>
    %131 = tpu.matmul %2, %130, %cst_66 {dimension_numbers = #tpu.dot_dimension_numbers<[1], [0], [0], [1], [0, 0, 1, 1], [], []>} : vector<16x128xbf16>, vector<128x32xbf16>, vector<16x32xf32> -> vector<16x32xf32>
    %132 = vector.extract_strided_slice %3 {offsets = [3, 0], sizes = [1, 32], strides = [1, 1]} : vector<12x32xf32> to vector<1x32xf32>
    %133 = vector.broadcast %132 : vector<1x32xf32> to vector<16x32xf32>
    %134 = arith.addf %131, %133 : vector<16x32xf32>
    %c3_67 = arith.constant 3 : index
    %c0_68 = arith.constant 0 : index
    %c0_69 = arith.constant 0 : index
    %135 = vector.load %arg3[%c3_67, %c0_68, %c0_69] : memref<4x128x32xbf16, #tpu.memory_space<vmem>>, vector<1x128x32xbf16>
    %136 = vector.shape_cast %135 : vector<1x128x32xbf16> to vector<128x32xbf16>
    %cst_70 = arith.constant dense<0.000000e+00> : vector<16x32xf32>
    %137 = tpu.matmul %2, %136, %cst_70 {dimension_numbers = #tpu.dot_dimension_numbers<[1], [0], [0], [1], [0, 0, 1, 1], [], []>} : vector<16x128xbf16>, vector<128x32xbf16>, vector<16x32xf32> -> vector<16x32xf32>
    %138 = vector.extract_strided_slice %3 {offsets = [7, 0], sizes = [1, 32], strides = [1, 1]} : vector<12x32xf32> to vector<1x32xf32>
    %139 = vector.broadcast %138 : vector<1x32xf32> to vector<16x32xf32>
    %140 = arith.addf %137, %139 : vector<16x32xf32>
    %c3_71 = arith.constant 3 : index
    %c0_72 = arith.constant 0 : index
    %c0_73 = arith.constant 0 : index
    %141 = vector.load %arg4[%c3_71, %c0_72, %c0_73] : memref<4x128x32xbf16, #tpu.memory_space<vmem>>, vector<1x128x32xbf16>
    %142 = vector.shape_cast %141 : vector<1x128x32xbf16> to vector<128x32xbf16>
    %cst_74 = arith.constant dense<0.000000e+00> : vector<16x32xf32>
    %143 = tpu.matmul %2, %142, %cst_74 {dimension_numbers = #tpu.dot_dimension_numbers<[1], [0], [0], [1], [0, 0, 1, 1], [], []>} : vector<16x128xbf16>, vector<128x32xbf16>, vector<16x32xf32> -> vector<16x32xf32>
    %144 = vector.extract_strided_slice %3 {offsets = [11, 0], sizes = [1, 32], strides = [1, 1]} : vector<12x32xf32> to vector<1x32xf32>
    %145 = vector.broadcast %144 : vector<1x32xf32> to vector<16x32xf32>
    %146 = arith.addf %143, %145 : vector<16x32xf32>
    %147 = arith.truncf %134 : vector<16x32xf32> to vector<16x32xbf16>
    %148 = arith.truncf %140 : vector<16x32xf32> to vector<16x32xbf16>
    %cst_75 = arith.constant dense<0.000000e+00> : vector<16x16xf32>
    %149 = tpu.matmul %147, %148, %cst_75 {dimension_numbers = #tpu.dot_dimension_numbers<[1], [1], [0], [0], [0, 0, 1, 0], [], []>} : vector<16x32xbf16>, vector<16x32xbf16>, vector<16x16xf32> -> vector<16x16xf32>
    %cst_76 = arith.constant dense<0xFF800000> : vector<16xf32>
    %150 = vector.multi_reduction <maximumf>, %149, %cst_76 [1] : vector<16x16xf32> to vector<16xf32>
    %151 = vector.shape_cast %150 : vector<16xf32> to vector<16x1xf32>
    %152 = vector.broadcast %151 : vector<16x1xf32> to vector<16x16xf32>
    %153 = arith.subf %149, %152 : vector<16x16xf32>
    %154 = math.exp %153 : vector<16x16xf32>
    %cst_77 = arith.constant dense<0.000000e+00> : vector<16xf32>
    %155 = vector.multi_reduction <add>, %154, %cst_77 [1] : vector<16x16xf32> to vector<16xf32>
    %156 = vector.shape_cast %155 : vector<16xf32> to vector<16x1xf32>
    %157 = tpu.reciprocal %156 {approx = true} : vector<16x1xf32> -> vector<16x1xf32>
    %158 = vector.broadcast %157 : vector<16x1xf32> to vector<16x16xf32>
    %159 = arith.mulf %154, %158 : vector<16x16xf32>
    %160 = arith.truncf %159 : vector<16x16xf32> to vector<16x16xbf16>
    %161 = arith.truncf %146 : vector<16x32xf32> to vector<16x32xbf16>
    %cst_78 = arith.constant dense<0.000000e+00> : vector<16x32xf32>
    %162 = tpu.matmul %160, %161, %cst_78 {dimension_numbers = #tpu.dot_dimension_numbers<[1], [0], [0], [1], [0, 0, 1, 1], [], []>} : vector<16x16xbf16>, vector<16x32xbf16>, vector<16x32xf32> -> vector<16x32xf32>
    %163 = arith.truncf %162 : vector<16x32xf32> to vector<16x32xbf16>
    %c3_79 = arith.constant 3 : index
    %c0_80 = arith.constant 0 : index
    %c0_81 = arith.constant 0 : index
    %164 = vector.load %arg5[%c3_79, %c0_80, %c0_81] : memref<4x32x128xbf16, #tpu.memory_space<vmem>>, vector<1x32x128xbf16>
    %165 = vector.shape_cast %164 : vector<1x32x128xbf16> to vector<32x128xbf16>
    %cst_82 = arith.constant dense<0.000000e+00> : vector<16x128xf32>
    %166 = tpu.matmul %163, %165, %cst_82 {dimension_numbers = #tpu.dot_dimension_numbers<[1], [0], [0], [1], [0, 0, 1, 1], [], []>} : vector<16x32xbf16>, vector<32x128xbf16>, vector<16x128xf32> -> vector<16x128xf32>
    %167 = arith.addf %128, %166 : vector<16x128xf32>
    %168 = vector.broadcast %5 : vector<1x128xf32> to vector<16x128xf32>
    %169 = arith.addf %167, %168 : vector<16x128xf32>
    %170 = arith.addf %1, %169 : vector<16x128xf32>
    %cst_83 = arith.constant dense<0.000000e+00> : vector<16xf32>
    %171 = vector.multi_reduction <add>, %170, %cst_83 [1] : vector<16x128xf32> to vector<16xf32>
    %172 = vector.shape_cast %171 : vector<16xf32> to vector<16x1xf32>
    %cst_84 = arith.constant 1.280000e+02 : f32
    %173 = vector.broadcast %cst_84 : f32 to vector<16x1xf32>
    %174 = arith.divf %172, %173 : vector<16x1xf32>
    %175 = vector.broadcast %174 : vector<16x1xf32> to vector<16x128xf32>
    %176 = arith.subf %170, %175 : vector<16x128xf32>
    %177 = arith.mulf %176, %176 : vector<16x128xf32>
    %cst_85 = arith.constant dense<0.000000e+00> : vector<16xf32>
    %178 = vector.multi_reduction <add>, %177, %cst_85 [1] : vector<16x128xf32> to vector<16xf32>
    %179 = vector.shape_cast %178 : vector<16xf32> to vector<16x1xf32>
    %cst_86 = arith.constant 1.280000e+02 : f32
    %180 = vector.broadcast %cst_86 : f32 to vector<16x1xf32>
    %181 = arith.divf %179, %180 : vector<16x1xf32>
    %182 = vector.broadcast %174 : vector<16x1xf32> to vector<16x128xf32>
    %183 = arith.subf %170, %182 : vector<16x128xf32>
    %cst_87 = arith.constant 9.99999974E-6 : f32
    %184 = vector.broadcast %cst_87 : f32 to vector<16x1xf32>
    %185 = arith.addf %181, %184 : vector<16x1xf32>
    %186 = math.rsqrt %185 : vector<16x1xf32>
    %187 = vector.broadcast %186 : vector<16x1xf32> to vector<16x128xf32>
    %188 = arith.mulf %183, %187 : vector<16x128xf32>
    %189 = vector.broadcast %7 : vector<1x128xf32> to vector<16x128xf32>
    %190 = arith.mulf %188, %189 : vector<16x128xf32>
    %191 = vector.broadcast %8 : vector<1x128xf32> to vector<16x128xf32>
    %192 = arith.addf %190, %191 : vector<16x128xf32>
    %193 = arith.truncf %192 : vector<16x128xf32> to vector<16x128xbf16>
    %c0_88 = arith.constant 0 : index
    %c0_89 = arith.constant 0 : index
    %194 = vector.load %arg6[%c0_88, %c0_89] : memref<128x256xbf16, #tpu.memory_space<vmem>>, vector<128x256xbf16>
    %cst_90 = arith.constant dense<0.000000e+00> : vector<16x256xf32>
    %195 = tpu.matmul %193, %194, %cst_90 {dimension_numbers = #tpu.dot_dimension_numbers<[1], [0], [0], [1], [0, 0, 1, 1], [], []>} : vector<16x128xbf16>, vector<128x256xbf16>, vector<16x256xf32> -> vector<16x256xf32>
    %c0_91 = arith.constant 0 : index
    %c0_92 = arith.constant 0 : index
    %196 = vector.load %arg10[%c0_91, %c0_92] : memref<1x256xf32, #tpu.memory_space<vmem>>, vector<1x256xf32>
    %197 = vector.broadcast %196 : vector<1x256xf32> to vector<16x256xf32>
    %198 = arith.addf %195, %197 : vector<16x256xf32>
    %cst_93 = arith.constant 0.000000e+00 : f32
    %199 = vector.broadcast %cst_93 : f32 to vector<16x256xf32>
    %200 = arith.maximumf %198, %199 : vector<16x256xf32>
    %201 = arith.truncf %200 : vector<16x256xf32> to vector<16x256xbf16>
    %c0_94 = arith.constant 0 : index
    %c0_95 = arith.constant 0 : index
    %202 = vector.load %arg7[%c0_94, %c0_95] : memref<256x128xbf16, #tpu.memory_space<vmem>>, vector<256x128xbf16>
    %cst_96 = arith.constant dense<0.000000e+00> : vector<16x128xf32>
    %203 = tpu.matmul %201, %202, %cst_96 {dimension_numbers = #tpu.dot_dimension_numbers<[1], [0], [0], [1], [0, 0, 1, 1], [], []>} : vector<16x256xbf16>, vector<256x128xbf16>, vector<16x128xf32> -> vector<16x128xf32>
    %204 = vector.broadcast %6 : vector<1x128xf32> to vector<16x128xf32>
    %205 = arith.addf %203, %204 : vector<16x128xf32>
    %206 = arith.addf %192, %205 : vector<16x128xf32>
    %cst_97 = arith.constant dense<0.000000e+00> : vector<16xf32>
    %207 = vector.multi_reduction <add>, %206, %cst_97 [1] : vector<16x128xf32> to vector<16xf32>
    %208 = vector.shape_cast %207 : vector<16xf32> to vector<16x1xf32>
    %cst_98 = arith.constant 1.280000e+02 : f32
    %209 = vector.broadcast %cst_98 : f32 to vector<16x1xf32>
    %210 = arith.divf %208, %209 : vector<16x1xf32>
    %211 = vector.broadcast %210 : vector<16x1xf32> to vector<16x128xf32>
    %212 = arith.subf %206, %211 : vector<16x128xf32>
    %213 = arith.mulf %212, %212 : vector<16x128xf32>
    %cst_99 = arith.constant dense<0.000000e+00> : vector<16xf32>
    %214 = vector.multi_reduction <add>, %213, %cst_99 [1] : vector<16x128xf32> to vector<16xf32>
    %215 = vector.shape_cast %214 : vector<16xf32> to vector<16x1xf32>
    %cst_100 = arith.constant 1.280000e+02 : f32
    %216 = vector.broadcast %cst_100 : f32 to vector<16x1xf32>
    %217 = arith.divf %215, %216 : vector<16x1xf32>
    %218 = vector.broadcast %210 : vector<16x1xf32> to vector<16x128xf32>
    %219 = arith.subf %206, %218 : vector<16x128xf32>
    %cst_101 = arith.constant 9.99999974E-6 : f32
    %220 = vector.broadcast %cst_101 : f32 to vector<16x1xf32>
    %221 = arith.addf %217, %220 : vector<16x1xf32>
    %222 = math.rsqrt %221 : vector<16x1xf32>
    %223 = vector.broadcast %222 : vector<16x1xf32> to vector<16x128xf32>
    %224 = arith.mulf %219, %223 : vector<16x128xf32>
    %225 = vector.broadcast %9 : vector<1x128xf32> to vector<16x128xf32>
    %226 = arith.mulf %224, %225 : vector<16x128xf32>
    %227 = vector.broadcast %10 : vector<1x128xf32> to vector<16x128xf32>
    %228 = arith.addf %226, %227 : vector<16x128xf32>
    %c0_102 = arith.constant 0 : index
    %c0_103 = arith.constant 0 : index
    %c0_104 = arith.constant 0 : index
    %229 = vector.load %arg11[%c0_102, %c0_103, %c0_104] : memref<1x16x128xf32, #tpu.memory_space<vmem>>, vector<1x16x128xf32>
    %230 = vector.shape_cast %229 : vector<1x16x128xf32> to vector<16x128xf32>
    %231 = vector.shape_cast %228 : vector<16x128xf32> to vector<1x16x128xf32>
    tpu.vector_store %arg11[%c0_102, %c0_103, %c0_104], %231 {strides = array<i32>} : memref<1x16x128xf32, #tpu.memory_space<vmem>>, vector<1x16x128xf32>,
    return
  }
  func.func @transform_0(%arg0: i32) -> (i32, i32, i32) {
    %c0_i32 = arith.constant 0 : i32
    %c0_i32_0 = arith.constant 0 : i32
    %c0_i32_1 = arith.constant 0 : i32
    return %arg0, %c0_i32, %c0_i32_0 : i32, i32, i32
  }
  func.func @transform_1(%arg0: i32) -> (i32, i32, i32) {
    %c0_i32 = arith.constant 0 : i32
    %c0_i32_0 = arith.constant 0 : i32
    %c0_i32_1 = arith.constant 0 : i32
    %c0_i32_2 = arith.constant 0 : i32
    return %c0_i32, %c0_i32_0, %c0_i32_1 : i32, i32, i32
  }
  func.func @transform_2(%arg0: i32) -> (i32, i32, i32) {
    %c0_i32 = arith.constant 0 : i32
    %c0_i32_0 = arith.constant 0 : i32
    %c0_i32_1 = arith.constant 0 : i32
    %c0_i32_2 = arith.constant 0 : i32
    return %c0_i32, %c0_i32_0, %c0_i32_1 : i32, i32, i32
  }
  func.func @transform_3(%arg0: i32) -> (i32, i32, i32) {
    %c0_i32 = arith.constant 0 : i32
    %c0_i32_0 = arith.constant 0 : i32
    %c0_i32_1 = arith.constant 0 : i32
    %c0_i32_2 = arith.constant 0 : i32
    return %c0_i32, %c0_i32_0, %c0_i32_1 : i32, i32, i32
  }
  func.func @transform_4(%arg0: i32) -> (i32, i32, i32) {
    %c0_i32 = arith.constant 0 : i32
    %c0_i32_0 = arith.constant 0 : i32
    %c0_i32_1 = arith.constant 0 : i32
    %c0_i32_2 = arith.constant 0 : i32
    return %c0_i32, %c0_i32_0, %c0_i32_1 : i32, i32, i32
  }
  func.func @transform_5(%arg0: i32) -> (i32, i32) {
    %c0_i32 = arith.constant 0 : i32
    %c0_i32_0 = arith.constant 0 : i32
    %c0_i32_1 = arith.constant 0 : i32
    return %c0_i32, %c0_i32_0 : i32, i32
  }
  func.func @transform_6(%arg0: i32) -> (i32, i32) {
    %c0_i32 = arith.constant 0 : i32
    %c0_i32_0 = arith.constant 0 : i32
    %c0_i32_1 = arith.constant 0 : i32
    return %c0_i32, %c0_i32_0 : i32, i32
  }
  func.func @transform_7(%arg0: i32) -> (i32, i32) {
    %c0_i32 = arith.constant 0 : i32
    %c0_i32_0 = arith.constant 0 : i32
    %c0_i32_1 = arith.constant 0 : i32
    return %c0_i32, %c0_i32_0 : i32, i32
  }
  func.func @transform_8(%arg0: i32) -> (i32, i32) {
    %c0_i32 = arith.constant 0 : i32
    %c0_i32_0 = arith.constant 0 : i32
    %c0_i32_1 = arith.constant 0 : i32
    return %c0_i32, %c0_i32_0 : i32, i32
  }
  func.func @transform_9(%arg0: i32) -> (i32, i32) {
    %c0_i32 = arith.constant 0 : i32
    %c0_i32_0 = arith.constant 0 : i32
    %c0_i32_1 = arith.constant 0 : i32
    return %c0_i32, %c0_i32_0 : i32, i32
  }
  func.func @transform_10(%arg0: i32) -> (i32, i32, i32) {
    %c0_i32 = arith.constant 0 : i32
    %c0_i32_0 = arith.constant 0 : i32
    %c0_i32_1 = arith.constant 0 : i32
    return %arg0, %c0_i32, %c0_i32_0 : i32, i32, i32
  }
}

</mosaic_0001>

<bundles_post_ra>
// kernel: tpu_custom_call.1
= control target key start
LH: loop header
LB: loop body
LE: loop exit
PB: predicated region body
PF: predicated region fallthrough
CT: control target
= control target key end

     0   :  { %15 = vsyncpa [#allocation3], 0  ;;  %s4869_s0 = inlined_call_operand.vmem [shape: f32[2,16,128], index: 0, kind: input, shape index: {}]   ;;  %s4870_s1 = inlined_call_operand.vmem [shape: bf16[4,128,32], index: 1, kind: input, shape index: {}]   ;;  %s4871_s2 = inlined_call_operand.vmem [shape: bf16[4,128,32], index: 2, kind: input, shape index: {}]   ;;  %s4872_s3 = inlined_call_operand.vmem [shape: bf16[4,128,32], index: 3, kind: input, shape index: {}]   ;;  %s4873_s4 = inlined_call_operand.vmem [shape: bf16[4,32,128], index: 4, kind: input, shape index: {}]   ;;  %s4874_s5 = inlined_call_operand.vmem [shape: bf16[128,256], index: 5, kind: input, shape index: {}]   ;;  %s4875_s6 = inlined_call_operand.vmem [shape: bf16[256,128], index: 6, kind: input, shape index: {}]   ;;  %s4876_s7 = inlined_call_operand.vmem [shape: f32[12,32], index: 7, kind: input, shape index: {}]   ;;  %s4877_s8 = inlined_call_operand.vmem [shape: f32[8,128], index: 8, kind: input, shape index: {}]   ;;  %s4878_s9 = inlined_call_operand.vmem [shape: f32[1,256], index: 9, kind: input, shape index: {}]   ;;  %s4879_s10 = inlined_call_operand.hbm [shape: f32[2,16,128], index: 10, kind: output, shape index: {}]  }
   0x1   :  { %17 = vsyncpa [#allocation3 + $0x1], 0  ;;  %s4042_s13 = smov 0   ;;  %s4044_s14 = smov 0  }
   0x2   :  { %s4046_s15 = smov 0   ;;  %s4048_s16 = smov 0  }
   0x3 LB: > { %s4063_s17 = sadd.s32 4294967295, %s3979_s16   ;;  %s2891_s18 = sadd.s32 4294967294, %s3979_s16   ;;  %s3979_s16 = sphi %s4048_s16, %s4885_s16   ;;  %s3975_s15 = sphi %s4046_s15, %s4884_s15   ;;  %s3971_s14 = sphi %s4044_s14, %s4883_s14   ;;  %s3967_s13 = sphi %s4042_s13, %s4882_s13  }
   0x4   : > { %s4067_s19 = sadd.s32 1, %s3979_s16   ;;  %s245_s20 = sadd.s32 1, %s3975_s15 }
   0x5   : > { %s242_s21 = ssub.s32 %s3979_s16, %s4067_s19  ;;  %p255_p0 = scmp.ne.s32.totalorder %s3975_s15, %s3971_s14 }
   0x6   : > { %p243_p1 = scmp.eq.s32.totalorder %s242_s21, 0  ;;  %p256_p2 = scmp.eq.s32.totalorder %s4063_s17, 1 }
   0x7   : > { %p261_p3 = scmp.ne.s32.totalorder %s3971_s14, %s3967_s13  ;;  %p262_p4 = scmp.eq.s32.totalorder %s2891_s18, 1 }
   0x8   : > { %s4078_s22 = scalar_select %p243_p1, %s3975_s15, %s245_s20  }
   0x9   : > { %p4080_p5 = por %p256_p2, %p255_p0  ;;  %p4084_p6 = por %p262_p4, %p261_p3 }
   0xa   : > { %p2894_p7 = scmp.ge.s32.totalorder %s3979_s16, 1  ;;  %p315_p8 = scmp.lt.s32.totalorder %s3979_s16, 3 }
   0xc   : > { %p316_p9 = pnand %p2894_p7, %p315_p8 }
   0xd   : > { %v3731_v0 = vld [vmem:[%s4871_s2] sm:$0xff] (!%p316_p9)   ;;  %v3981_v1 = vmov (!%p316_p9), 0.0   ;;  %v3732_v2 = vld [vmem:[%s4871_s2 + $0x8] sm:$0xff] (!%p316_p9)   ;;  %vm3982_vm0 = vmmov (!%p316_p9), 0   ;;  %v3734_v5 = vld [vmem:[%s4871_s2 + $0x10] sm:$0xff] (!%p316_p9)   ;;  %p353_p10 = scmp.lt.s32.totalorder (!%p316_p9), %s4063_s17, 1  ;;  %v381_v20 = vlaneseq (!%p316_p9) }
   0xe   : > { %319 = sbr.rel (%p316_p9) target bundleno = 5094 (0x13e6), region = 60  ;;  %3387 = vmatprep.subr.bf16.mxu1 (!%p316_p9), %v3981_v1  ;;  %3367 = vmatprep.subr.bf16.mxu0 (!%p316_p9), %v3981_v1  ;;  %v3733_v3 = vld [vmem:[%s4870_s1] sm:$0xff] (!%p316_p9)   ;;  %v3735_v4 = vld [vmem:[%s4870_s1 + $0x8] sm:$0xff] (!%p316_p9)   ;;  %v3737_v6 = vld [vmem:[%s4870_s1 + $0x10] sm:$0xff] (!%p316_p9)   ;;  %vm694_vm1 = vcmask (!%p316_p9), 261120   ;;  %vm742_vm2 = vcmask (!%p316_p9), 130048  }
   0xf   : > { %3388 = vmatpush3.bf16.msra.mxu1 (!%p316_p9), %v3731_v0  ;;  %3403 = vmatprep.mubr.msk.bf16.mxu1 (!%p316_p9), %vm3982_vm0, %v3981_v1  ;;  %v3736_v7 = vld [vmem:[%s4871_s2 + $0x18] sm:$0xff] (!%p316_p9)   ;;  %v3738_v9 = vld [vmem:[%s4871_s2 + $0x20] sm:$0xff] (!%p316_p9)   ;;  %v3740_v11 = vld [vmem:[%s4871_s2 + $0x28] sm:$0xff] (!%p316_p9)   ;;  %v4177_v21 = vshrl.u32 (!%p316_p9), %v381_v20, 7  ;;  %s350_s12 = sand.u32 (!%p316_p9), 1, %s3971_s14   ;;  %s3984_s29 = smov (!%p316_p9), [#allocation2]  }
  0x10   : > { %3389 = vmatprep.subr.bf16.mxu1 (!%p316_p9), %v3981_v1  ;;  %3383 = vmatprep.mubr.msk.bf16.mxu0 (!%p316_p9), %vm3982_vm0, %v3981_v1  ;;  %v3739_v8 = vld [vmem:[%s4870_s1 + $0x18] sm:$0xff] (!%p316_p9)   ;;  %v3741_v10 = vld [vmem:[%s4870_s1 + $0x20] sm:$0xff] (!%p316_p9)   ;;  %v3743_v12 = vld [vmem:[%s4870_s1 + $0x28] sm:$0xff] (!%p316_p9)   ;;  %s2895_s18 = sshll.u32 (!%p316_p9), %s350_s12, 4  ;;  %s3921_s11 = sshll.u32 (!%p316_p9), %s3984_s29, 4  ;;  %s3922_s11 = int_to_ptr.vmem [resolvable:$false] %s3921_s11 }
  0x11   : > { %3368 = vmatpush3.bf16.msra.mxu0 (!%p316_p9), %v3733_v3  ;;  %v3742_v13 = vld [vmem:[%s4871_s2 + $0x30] sm:$0xff] (!%p316_p9)   ;;  %v3744_v15 = vld [vmem:[%s4871_s2 + $0x38] sm:$0xff] (!%p316_p9)   ;;  %v492_v22 = vsub.s32 (!%p316_p9), 4, %v4177_v21  ;;  %v4181_v23 = vsub.s32 (!%p316_p9), 0, %v4177_v21  ;;  %v4186_v24 = vld [vmem:[%s4876_s7] sm:$0xff] (!%p316_p9)  ;;  %s352_s21 = scalar_lea.vmem (!%p316_p9), [#allocation2], %s2895_s18 }
  0x12   : > { %3369 = vmatprep.subr.bf16.mxu0 (!%p316_p9), %v3981_v1  ;;  %v3745_v14 = vld [vmem:[%s4870_s1 + $0x30] sm:$0xff] (!%p316_p9)   ;;  %v3746_v18 = vld [vmem:[%s4870_s1 + $0x38] sm:$0xff] (!%p316_p9)   ;;  %v3747_v42 = vld [vmem:[%s4872_s3] sm:$0xff] (!%p316_p9)   ;;  %s2829_s25 = sshll.u32 (!%p316_p9), %s352_s21, 4  ;;  %s3923_s18 = scalar_lea.vmem (!%p316_p9), %s3922_s11, 512  ;;  %s4826_s25 = int_to_ptr.vmem [resolvable:$true] %s2829_s25 }
  0x13   : > { %3390 = vmatpush3.bf16.msra.mxu1 (!%p316_p9), %v3732_v2  ;;  %v493_v25 = vrot.slane (!%p316_p9), %v4186_v24, %v492_v22  ;;  %v384_v26 = vrot.slane (!%p316_p9), %v4186_v24, %v4181_v23  ;;  %v3748_v43 = vld [vmem:[%s4872_s3 + $0x8] sm:$0xff] (!%p316_p9)   ;;  %v3749_v44 = vld [vmem:[%s4872_s3 + $0x10] sm:$0xff] (!%p316_p9)   ;;  %v3750_v45 = vld [vmem:[%s4872_s3 + $0x18] sm:$0xff] (!%p316_p9)   ;;  %p3924_p0 = scmp.lt.s32.totalorder (!%p316_p9), %s4826_s25, %s3922_s11 }
  0x14   : > { %3391 = vmatprep.subr.bf16.mxu1 (!%p316_p9), %v3981_v1  ;;  %v3751_v46 = vld [vmem:[%s4872_s3 + $0x20] sm:$0xff] (!%p316_p9)   ;;  %v3752_v47 = vld [vmem:[%s4872_s3 + $0x28] sm:$0xff] (!%p316_p9)   ;;  %v3753_v48 = vld [vmem:[%s4872_s3 + $0x30] sm:$0xff] (!%p316_p9)  }
  0x15   : > { %3370 = vmatpush3.bf16.msra.mxu0 %v3735_v4  ;;  %s354_s30 = scalar_select %p353_p10, %s4063_s17, 1  ;;  %v3754_v49 = vld [vmem:[%s4872_s3 + $0x38] sm:$0xff]   ;;  %v4240_v4 = vld [vmem:[%s4876_s7 + $0x8] sm:$0xf] }
  0x16   : > { %3371 = vmatprep.subr.bf16.mxu0 %v3981_v1  ;;  %v3767_v20 = vld [vmem:[%s4871_s2 + $0x78] sm:$0xff]  }
  0x17   : > { %3392 = vmatpush3.bf16.msra.mxu1 %v3734_v5  ;;  %s3207_s26 = sshll.u32 %s354_s30, 4  ;;  %s3208_s30 = sshll.u32 %s4063_s17, 8 }
  0x18   : > { %3393 = vmatprep.subr.bf16.mxu1 %v3981_v1  ;;  %s4150_s20 = scalar_lea.vmem %s4869_s0, %s3207_s26  ;;  %s4824_s28 = scalar_lea.hbm %s4879_s10, %s3208_s30 }
  0x19   : > { %3372 = vmatpush3.bf16.msra.mxu0 %v3737_v6  ;;  %v359_v16 = vld [vmem:[%s4150_s20] sm:$0xff]  ;;  %v360_v17 = vld [vmem:[%s4150_s20 + $0x8] sm:$0xff]  ;;  %s3917_s17 = scalar_lea.vmem %s4826_s25, 256 }
  0x1a   : > { %3373 = vmatprep.subr.bf16.mxu0 %v3981_v1  ;;  %v4166_v19 = vpack.c.bf16 %v360_v17, %v359_v16  ;;  %v3755_v6 = vld [vmem:[%s4871_s2 + $0x40] sm:$0xff]   ;;  %v3763_v17 = vld [vmem:[%s4871_s2 + $0x68] sm:$0xff]   ;;  %p3918_p11 = scmp.ne.s32.totalorder %s4826_s25, %s3917_s17  ;;  %p3925_p1 = scmp.lt.s32.totalorder %s3923_s18, %s3917_s17 }
  0x1b   : > { %3394 = vmatpush3.bf16.msra.mxu1 %v3736_v7  ;;  %v602_v7 = vrot.slane %v4240_v4, %v4181_v23  ;;  %v3761_v16 = vld [vmem:[%s4871_s2 + $0x60] sm:$0xff]  }
  0x1c   : > { %3395 = vmatprep.subr.bf16.mxu1 %v3981_v1  ;;  %p3919_p12 = pnand %p3918_p11, %p4080_p5  ;;  %p3926_p2 = por %p3925_p1, %p3924_p0 }
  0x1d   : > { %3374 = vmatpush3.bf16.msra.mxu0 %v3739_v8 }
  0x1e   : > { %3375 = vmatprep.subr.bf16.mxu0 %v3981_v1  ;;  %p3920_p13 = pneg %p3919_p12 }
  0x1f   : > { %3396 = vmatpush3.bf16.msra.mxu1 %v3738_v9 }
  0x20   : > { %3397 = vmatprep.subr.bf16.mxu1 %v3981_v1  ;;  %p3927_p3 = pnand %p3926_p2, %p3920_p13 }
  0x21   : > { %3376 = vmatpush3.bf16.msra.mxu0 %v3741_v10 }
  0x22   : > { %3377 = vmatprep.subr.bf16.mxu0 %v3981_v1 }
  0x23   : > { %3398 = vmatpush3.bf16.msra.mxu1 %v3740_v11 }
  0x24   : > { %3399 = vmatprep.subr.bf16.mxu1 %v3981_v1 }
  0x25   : > { %3378 = vmatpush3.bf16.msra.mxu0 %v3743_v12  ;;  %v3756_v12 = vld [vmem:[%s4871_s2 + $0x48] sm:$0xff]  }
  0x26   : > { %3379 = vmatprep.subr.bf16.mxu0 %v3981_v1 }
  0x27   : > { %3400 = vmatpush3.bf16.msra.mxu1 %v3742_v13 }
  0x28   : > { %3401 = vmatprep.subr.bf16.mxu1 %v3981_v1 }
  0x29   : > { %3380 = vmatpush3.bf16.msra.mxu0 %v3745_v14  ;;  %v3757_v14 = vld [vmem:[%s4871_s2 + $0x50] sm:$0xff]  }
  0x2a   : > { %3381 = vmatprep.subr.bf16.mxu0 %v3981_v1 }
  0x2b   : > { %3402 = vmatpush3.bf16.msra.mxu1 %v3744_v15  ;;  %v3759_v15 = vld [vmem:[%s4871_s2 + $0x58] sm:$0xff]  }
  0x2c   : > { %3427 = vmatprep.subr.bf16.mxu1 %v3981_v1 }
  0x2d   : > { %3382 = vmatpush3.bf16.msra.mxu0 %v3746_v18  ;;  %v3765_v18 = vld [vmem:[%s4871_s2 + $0x70] sm:$0xff]  }
  0x2e   : > { %3404 = vmatmul.mubr.bf16.vlgmr.msra.gmra.mrb[0].mxu1 %v4166_v19  ;;  %3407 = vmatprep.subr.bf16.mxu0 %v3981_v1 }
  0x2f   : > { %3429 = vmatprep.mubr.msk.bf16.mxu1 %vm3982_vm0, %v3981_v1 }
  0x30   : > { %3384 = vmatmul.mubr.bf16.vlgmr.msra.gmra.mrb[0].mxu0 %v4166_v19 }
  0x31   : > { %3423 = vmatprep.mubr.msk.bf16.mxu0 %vm3982_vm0, %v3981_v1  ;;  %3408 = vmatpush3.bf16.msra.mxu0 %v3747_v42  ;;  %v3773_v42 = vld [vmem:[%s4872_s3 + $0x50] sm:$0xff]  }
  0x32   : > { %3409 = vmatprep.subr.bf16.mxu0 %v3981_v1 }
  0x35   : > { %3410 = vmatpush3.bf16.msra.mxu0 %v3748_v43  ;;  %v3774_v43 = vld [vmem:[%s4872_s3 + $0x58] sm:$0xff]  }
  0x36   : > { %3411 = vmatprep.subr.bf16.mxu0 %v3981_v1 }
  0x39   : > { %3412 = vmatpush3.bf16.msra.mxu0 %v3749_v44  ;;  %v3775_v44 = vld [vmem:[%s4872_s3 + $0x60] sm:$0xff]  }
  0x3a   : > { %3413 = vmatprep.subr.bf16.mxu0 %v3981_v1 }
  0x3d   : > { %3414 = vmatpush3.bf16.msra.mxu0 %v3750_v45  ;;  %v3776_v45 = vld [vmem:[%s4872_s3 + $0x68] sm:$0xff]  }
  0x3e   : > { %3415 = vmatprep.subr.bf16.mxu0 %v3981_v1 }
  0x41   : > { %3416 = vmatpush3.bf16.msra.mxu0 %v3751_v46  ;;  %v3777_v46 = vld [vmem:[%s4872_s3 + $0x70] sm:$0xff]  }
  0x42   : > { %3417 = vmatprep.subr.bf16.mxu0 %v3981_v1 }
  0x45   : > { %3418 = vmatpush3.bf16.msra.mxu0 %v3752_v47  ;;  %v3778_v47 = vld [vmem:[%s4872_s3 + $0x78] sm:$0xff]  }
  0x46   : > { %3419 = vmatprep.subr.bf16.mxu0 %v3981_v1 }
  0x49   : > { %3420 = vmatpush3.bf16.msra.mxu0 %v3753_v48  ;;  %v3779_v48 = vld [vmem:[%s4873_s4] sm:$0xff]  }
  0x4a   : > { %3421 = vmatprep.subr.bf16.mxu0 %v3981_v1 }
  0x4d   : > { %3422 = vmatpush3.bf16.msra.mxu0 %v3754_v49  ;;  %v3780_v49 = vld [vmem:[%s4873_s4 + $0x8] sm:$0xff]  }
  0x4e   : > { %3459 = vmatprep.subr.bf16.mxu0 %v3981_v1 }
  0x50   : > { %3424 = vmatmul.mubr.bf16.vlgmr.msra.gmra.mrb[4].mxu0 %v4166_v19 }
  0x51   : > { %3475 = vmatprep.mubr.msk.bf16.mxu0 %vm3982_vm0, %v3981_v1  ;;  %3460 = vmatpush3.bf16.msra.mxu0 %v3755_v6 }
  0x52   : > { %3461 = vmatprep.subr.bf16.mxu0 %v3981_v1 }
  0x55   : > { %3462 = vmatpush3.bf16.msra.mxu0 %v3756_v12 }
  0x56   : > { %3463 = vmatprep.subr.bf16.mxu0 %v3981_v1 }
  0x59   : > { %3464 = vmatpush3.bf16.msra.mxu0 %v3757_v14 }
  0x5a   : > { %3465 = vmatprep.subr.bf16.mxu0 %v3981_v1 }
  0x5d   : > { %3466 = vmatpush3.bf16.msra.mxu0 %v3759_v15 }
  0x5e   : > { %3467 = vmatprep.subr.bf16.mxu0 %v3981_v1 }
  0x61   : > { %3468 = vmatpush3.bf16.msra.mxu0 %v3761_v16 }
  0x62   : > { %3469 = vmatprep.subr.bf16.mxu0 %v3981_v1 }
  0x65   : > { %3470 = vmatpush3.bf16.msra.mxu0 %v3763_v17 }
  0x66   : > { %3471 = vmatprep.subr.bf16.mxu0 %v3981_v1 }
  0x69   : > { %3472 = vmatpush3.bf16.msra.mxu0 %v3765_v18 }
  0x6a   : > { %3473 = vmatprep.subr.bf16.mxu0 %v3981_v1 }
  0x6d   : > { %3474 = vmatpush3.bf16.msra.mxu0 %v3767_v20 }
  0x6e   : > { %3499 = vmatprep.subr.bf16.mxu0 %v3981_v1 }
  0x70   : > { %3476 = vmatmul.mubr.bf16.vlgmr.msra.gmra.mrb[8].mxu0 %v4166_v19 }
  0x71   : > { %3501 = vmatprep.mubr.msk.bf16.mxu0 %vm3982_vm0, %v3981_v1 }
 0x101   : > { %v576_v27 = vpop.f32.mrb[0].mxu1 }
 0x102   : > { %v3405_v28 = vpop.f32.mrb[1].mxu1  ;;  %v577_v31 = vadd.f32 %v576_v27, %v493_v25 }
 0x103   : > { %v579_v29 = vpop.f32.mrb[2].mxu1  ;;  %v467_v30 = vpop.f32.mrb[0].mxu0 }
 0x104   : > { %v580_v32 = vadd.f32 %v579_v29, %v493_v25  ;;  %v3406_v33 = vpop.f32.mrb[3].mxu1  ;;  %v468_v34 = vadd.f32 %v467_v30, %v384_v26  ;;  %v3385_v35 = vpop.f32.mrb[1].mxu0 }
 0x105   : > { %v470_v36 = vpop.f32.mrb[2].mxu0  ;;  %v3760_v33 = vld [vmem:[%s4870_s1 + $0x48] sm:$0xff]   ;;  %v3764_v35 = vld [vmem:[%s4870_s1 + $0x58] sm:$0xff]  }
 0x106   : > { %v693_v37 = vpack.c.bf16 %v580_v32, %v577_v31  ;;  %v471_v38 = vadd.f32 %v470_v36, %v384_v26  ;;  %v3386_v39 = vpop.f32.mrb[3].mxu0  ;;  %v3758_v31 = vld [vmem:[%s4870_s1 + $0x40] sm:$0xff]  }
 0x107   : > { %v3766_v36 = vld [vmem:[%s4870_s1 + $0x60] sm:$0xff]   ;;  %v3770_v39 = vld [vmem:[%s4870_s1 + $0x78] sm:$0xff]  }
 0x108   : > { %v692_v40 = vpack.c.bf16 %v471_v38, %v468_v34  ;;  %v699_v41 = vsel %vm694_vm1, %v693_v37, 0  ;;  %v3762_v34 = vld [vmem:[%s4870_s1 + $0x50] sm:$0xff]   ;;  %v3768_v37 = vld [vmem:[%s4870_s1 + $0x68] sm:$0xff]  }
 0x109   : > { %3428 = vmatpush3.bf16.xpose.msra.mxu1 %v699_v41  ;;  %v3769_v38 = vld [vmem:[%s4870_s1 + $0x70] sm:$0xff]   ;;  %v3772_v41 = vld [vmem:[%s4872_s3 + $0x48] sm:$0xff]  }
 0x10a   : > { %3433 = vmatprep.subr.bf16.mxu1 %v3981_v1 }
 0x110   : > { %3430 = vmatmul.mubr.msk.bf16.vlgmr.msra.gmra.mrb[4].mxu1 %vm694_vm1, %v692_v40  ;;  %v3771_v40 = vld [vmem:[%s4872_s3 + $0x40] sm:$0xff]  }
 0x111   : > { %3435 = vmatprep.mubr.msk.bf16.mxu1 %vm3982_vm0, %v3981_v1 }
 0x123   : > { %v685_v3 = vpop.f32.mrb[4].mxu0 }
 0x124   : > { %v3425_v5 = vpop.f32.mrb[5].mxu0  ;;  %v686_v10 = vadd.f32 %v685_v3, %v602_v7 }
 0x125   : > { %v688_v8 = vpop.f32.mrb[6].mxu0 }
 0x126   : > { %v3426_v9 = vpop.f32.mrb[7].mxu0  ;;  %v689_v11 = vadd.f32 %v688_v8, %v602_v7 }
 0x128   : > { %v766_v13 = vpack.c.bf16 %v689_v11, %v686_v10 }
 0x12a   : > { %3434 = vmatpush3.bf16.msra.mxu1 %v766_v13 }
 0x12b   : > { %3439 = vmatprep.subr.bf16.mxu1 %v3981_v1 }
 0x1e3   : > { %v735_v50 = vpop.f32.mrb[4].mxu1 }
 0x1e4   : > { %v3431_v51 = vpop.f32.mrb[5].mxu1  ;;  %v743_v52 = vsel %vm742_vm2, %v735_v50, -inf }
 0x1e5   : > { %744 = vmax.xlane.f32.xlu0 %v743_v52  ;;  %v738_v53 = vpop.f32.mrb[6].mxu1  ;;  %v1029_v52 = vpop.f32.mrb[8].mxu0 }
 0x1e6   : > { %v3432_v54 = vpop.f32.mrb[7].mxu1  ;;  %v746_v55 = vsel %vm742_vm2, %v738_v53, -inf }
 0x1e7   : > { %v3477_v54 = vpop.f32.mrb[9].mxu0 }
 0x1e8   : > { %v3782_v54 = vld [vmem:[%s4873_s4 + $0x10] sm:$0xff]  }
 0x1e9   : > { %747 = vmax.xlane.f32.xlu0 %v746_v55  ;;  %v1032_v55 = vpop.f32.mrb[10].mxu0 }
 0x272   : > { %v745_v56 = vpop.xlane.xlu0 %744 }
 0x273   : > { %v749_v57 = vsub.f32 %v735_v50, %v745_v56  ;;  %v945_v50 = vsub.s32 5, %v4177_v21 }
 0x275   : > { %v751_v58 = vmul.f32 1.442695, %v749_v57  ;;  %v946_v51 = vrot.slane %v4186_v24, %v945_v50  ;;  %v3478_v57 = vpop.f32.mrb[11].mxu0 }
 0x276   : > { %v748_v59 = vpop.xlane.xlu0 %747  ;;  %v3785_v57 = vld [vmem:[%s4871_s2 + $0x90] sm:$0xff]  }
 0x277   : > { %3875 = vpow2.f32 %v751_v58  ;;  %v750_v60 = vsub.f32 %v738_v53, %v748_v59  ;;  %v1030_v53 = vadd.f32 %v1029_v52, %v946_v51  ;;  %v1033_v56 = vadd.f32 %v1032_v55, %v946_v51 }
 0x279   : > { %v753_v61 = vmul.f32 1.442695, %v750_v60  ;;  %v1147_v58 = vpack.c.bf16 %v1033_v56, %v1030_v53  ;;  %v3784_v56 = vld [vmem:[%s4873_s4 + $0x18] sm:$0xff]  }
 0x27b   : > { %3877 = vpow2.f32 %v753_v61  ;;  %v1152_v59 = vsel %vm694_vm1, %v1147_v58, 0  ;;  %v3787_v58 = vld [vmem:[%s4871_s2 + $0x98] sm:$0xff]  }
 0x27c   : > { %3500 = vmatpush3.bf16.xpose.msra.mxu0 %v1152_v59  ;;  %v3789_v59 = vld [vmem:[%s4871_s2 + $0xa0] sm:$0xff]  }
 0x27d   : > { %3505 = vmatprep.subr.bf16.mxu0 %v3981_v1 }
 0x281   : > { %v3876_v62 = vpop.eup %3875 }
 0x282   : > { %v755_v63 = vsel %vm742_vm2, %v3876_v62, 0.0 }
 0x283   : > { %756 = vadd.xlane.f32.xlu1 %v755_v63 }
 0x285   : > { %v3878_v0 = vpop.eup %3877 }
 0x286   : > { %v758_v2 = vsel %vm742_vm2, %v3878_v0, 0.0 }
 0x287   : > { %759 = vadd.xlane.f32.xlu1 %v758_v2  ;;  %v4371_v2 = vsub.s32 1, %v4177_v21 }
 0x289   : > { %v836_v3 = vrot.slane %v4186_v24, %v4371_v2  ;;  %v1056_v12 = vrot.slane %v4240_v4, %v4371_v2 }
 0x310   : > { %v757_v25 = vpop.xlane.xlu1 %756 }
 0x311   : > { %3879 = vrcp.f32 %v757_v25 }
 0x314   : > { %v760_v26 = vpop.xlane.xlu1 %759 }
 0x315   : > { %3881 = vrcp.f32 %v760_v26 }
 0x31b   : > { %v3880_v27 = vpop.eup %3879 }
 0x31c   : > { %v763_v29 = vmul.f32 %v3880_v27, %v3876_v62 }
 0x31f   : > { %v3882_v28 = vpop.eup %3881 }
 0x320   : > { %v764_v30 = vmul.f32 %v3882_v28, %v3878_v0 }
 0x322   : > { %v765_v32 = vpack.c.bf16 %v764_v30, %v763_v29 }
 0x324   : > { %3436 = vmatmul.mubr.msk.bf16.vlgmr.msra.gmra.mrb[8].mxu1 %vm742_vm2, %v765_v32 }
 0x325   : > { %3440 = vmatpush3.bf16.msra.mxu1 %v3758_v31  ;;  %3455 = vmatprep.mubr.msk.bf16.mxu1 %vm3982_vm0, %v3981_v1 }
 0x326   : > { %3441 = vmatprep.subr.bf16.mxu1 %v3981_v1 }
 0x329   : > { %3442 = vmatpush3.bf16.msra.mxu1 %v3760_v33 }
 0x32a   : > { %3443 = vmatprep.subr.bf16.mxu1 %v3981_v1 }
 0x32d   : > { %3444 = vmatpush3.bf16.msra.mxu1 %v3762_v34 }
 0x32e   : > { %3445 = vmatprep.subr.bf16.mxu1 %v3981_v1 }
 0x331   : > { %3446 = vmatpush3.bf16.msra.mxu1 %v3764_v35 }
 0x332   : > { %3447 = vmatprep.subr.bf16.mxu1 %v3981_v1 }
 0x335   : > { %3448 = vmatpush3.bf16.msra.mxu1 %v3766_v36 }
 0x336   : > { %3449 = vmatprep.subr.bf16.mxu1 %v3981_v1 }
 0x339   : > { %3450 = vmatpush3.bf16.msra.mxu1 %v3768_v37 }
 0x33a   : > { %3451 = vmatprep.subr.bf16.mxu1 %v3981_v1 }
 0x33d   : > { %3452 = vmatpush3.bf16.msra.mxu1 %v3769_v38 }
 0x33e   : > { %3453 = vmatprep.subr.bf16.mxu1 %v3981_v1 }
 0x341   : > { %3454 = vmatpush3.bf16.msra.mxu1 %v3770_v39 }
 0x342   : > { %3479 = vmatprep.subr.bf16.mxu1 %v3981_v1 }
 0x344   : > { %3456 = vmatmul.mubr.bf16.vlgmr.msra.gmra.mrb[12].mxu1 %v4166_v19 }
 0x345   : > { %3480 = vmatpush3.bf16.msra.mxu1 %v3771_v40  ;;  %3495 = vmatprep.mubr.msk.bf16.mxu1 %vm3982_vm0, %v3981_v1 }
 0x346   : > { %3481 = vmatprep.subr.bf16.mxu1 %v3981_v1 }
 0x349   : > { %3482 = vmatpush3.bf16.msra.mxu1 %v3772_v41 }
 0x34a   : > { %3483 = vmatprep.subr.bf16.mxu1 %v3981_v1 }
 0x34d   : > { %3484 = vmatpush3.bf16.msra.mxu1 %v3773_v42 }
 0x34e   : > { %3485 = vmatprep.subr.bf16.mxu1 %v3981_v1 }
 0x351   : > { %3486 = vmatpush3.bf16.msra.mxu1 %v3774_v43 }
 0x352   : > { %3487 = vmatprep.subr.bf16.mxu1 %v3981_v1 }
 0x355   : > { %3488 = vmatpush3.bf16.msra.mxu1 %v3775_v44 }
 0x356   : > { %3489 = vmatprep.subr.bf16.mxu1 %v3981_v1 }
 0x359   : > { %3490 = vmatpush3.bf16.msra.mxu1 %v3776_v45  ;;  %v3781_v45 = vld [vmem:[%s4871_s2 + $0x80] sm:$0xff]  }
 0x35a   : > { %3491 = vmatprep.subr.bf16.mxu1 %v3981_v1 }
 0x35d   : > { %3492 = vmatpush3.bf16.msra.mxu1 %v3777_v46  ;;  %v3783_v46 = vld [vmem:[%s4871_s2 + $0x88] sm:$0xff]  }
 0x35e   : > { %3493 = vmatprep.subr.bf16.mxu1 %v3981_v1 }
 0x361   : > { %3494 = vmatpush3.bf16.msra.mxu1 %v3778_v47 }
 0x362   : > { %3519 = vmatprep.subr.bf16.mxu1 %v3981_v1 }
 0x364   : > { %3496 = vmatmul.mubr.bf16.vlgmr.msra.gmra.mrb[16].mxu1 %v4166_v19 }
 0x365   : > { %3520 = vmatpush3.bf16.msra.mxu1 %v3779_v48  ;;  %3523 = vmatprep.mubr.msk.bf16.mxu1 %vm3982_vm0, %v3981_v1 }
 0x366   : > { %3521 = vmatprep.subr.bf16.mxu1 %v3981_v1 }
 0x369   : > { %3522 = vmatpush3.bf16.msra.mxu1 %v3780_v49 }
 0x36a   : > { %3547 = vmatprep.subr.bf16.mxu1 %v3981_v1 }
 0x3f7   : > { %v804_v60 = vpop.f32.mrb[8].mxu1 }
 0x3f8   : > { %v3437_v61 = vpop.f32.mrb[9].mxu1 }
 0x3f9   : > { %v807_v62 = vpop.f32.mrb[10].mxu1  ;;  %v3793_v61 = vld [vmem:[%s4871_s2 + $0xb0] sm:$0xff]  }
 0x3fa   : > { %v811_v63 = vpack.c.bf16 %v807_v62, %v804_v60  ;;  %v3438_v0 = vpop.f32.mrb[11].mxu1  ;;  %v3791_v60 = vld [vmem:[%s4871_s2 + $0xa8] sm:$0xff]   ;;  %v3795_v62 = vld [vmem:[%s4871_s2 + $0xb8] sm:$0xff]  }
 0x3fc   : > { %3524 = vmatmul.mubr.msk.bf16.vlgmr.msra.gmra.mrb[20].mxu1 %vm694_vm1, %v811_v63 }
 0x3fd   : > { %3563 = vmatprep.mubr.msk.bf16.mxu1 %vm3982_vm0, %v3981_v1  ;;  %3548 = vmatpush3.bf16.msra.mxu1 %v3781_v45 }
 0x3fe   : > { %3549 = vmatprep.subr.bf16.mxu1 %v3981_v1 }
 0x401   : > { %3550 = vmatpush3.bf16.msra.mxu1 %v3783_v46  ;;  %v3800_v46 = vld [vmem:[%s4872_s3 + $0x88] sm:$0xff]  }
 0x402   : > { %3551 = vmatprep.subr.bf16.mxu1 %v3981_v1 }
 0x405   : > { %3552 = vmatpush3.bf16.msra.mxu1 %v3785_v57 }
 0x406   : > { %3553 = vmatprep.subr.bf16.mxu1 %v3981_v1 }
 0x409   : > { %3554 = vmatpush3.bf16.msra.mxu1 %v3787_v58 }
 0x40a   : > { %3555 = vmatprep.subr.bf16.mxu1 %v3981_v1 }
 0x40d   : > { %3556 = vmatpush3.bf16.msra.mxu1 %v3789_v59 }
 0x40e   : > { %3557 = vmatprep.subr.bf16.mxu1 %v3981_v1 }
 0x411   : > { %3558 = vmatpush3.bf16.msra.mxu1 %v3791_v60 }
 0x412   : > { %3559 = vmatprep.subr.bf16.mxu1 %v3981_v1 }
 0x415   : > { %3560 = vmatpush3.bf16.msra.mxu1 %v3793_v61 }
 0x416   : > { %3561 = vmatprep.subr.bf16.mxu1 %v3981_v1 }
 0x417   : > { %v919_v5 = vpop.f32.mrb[12].mxu1 }
 0x418   : > { %v3457_v6 = vpop.f32.mrb[13].mxu1  ;;  %v920_v8 = vadd.f32 %v919_v5, %v836_v3  ;;  %v3786_v5 = vld [vmem:[%s4870_s1 + $0x80] sm:$0xff]  }
 0x419   : > { %v922_v7 = vpop.f32.mrb[14].mxu1  ;;  %3562 = vmatpush3.bf16.msra.mxu1 %v3795_v62 }
 0x41a   : > { %v923_v9 = vadd.f32 %v922_v7, %v836_v3  ;;  %v3458_v10 = vpop.f32.mrb[15].mxu1  ;;  %3587 = vmatprep.subr.bf16.mxu1 %v3981_v1 }
 0x41b   : > { %v3792_v10 = vld [vmem:[%s4870_s1 + $0x98] sm:$0xff]  }
 0x41c   : > { %v1146_v11 = vpack.c.bf16 %v923_v9, %v920_v8  ;;  %3564 = vmatmul.mubr.bf16.vlgmr.msra.gmra.mrb[24].mxu1 %v4166_v19  ;;  %v3788_v8 = vld [vmem:[%s4870_s1 + $0x88] sm:$0xff]   ;;  %v3790_v9 = vld [vmem:[%s4870_s1 + $0x90] sm:$0xff]  }
 0x41d   : > { %3589 = vmatprep.mubr.msk.bf16.mxu1 %vm3982_vm0, %v3981_v1 }
 0x41e   : > { %3502 = vmatmul.mubr.msk.bf16.vlgmr.msra.gmra.mrb[12].mxu0 %vm694_vm1, %v1146_v11  ;;  %v3794_v11 = vld [vmem:[%s4870_s1 + $0xa0] sm:$0xff]  }
 0x41f   : > { %3507 = vmatprep.mubr.msk.bf16.mxu0 %vm3982_vm0, %v3981_v1 }
 0x437   : > { %v1139_v13 = vpop.f32.mrb[16].mxu1 }
 0x438   : > { %v1140_v14 = vadd.f32 %v1139_v13, %v1056_v12  ;;  %v3497_v15 = vpop.f32.mrb[17].mxu1  ;;  %v3797_v13 = vld [vmem:[%s4870_s1 + $0xb0] sm:$0xff]  }
 0x439   : > { %v1142_v16 = vpop.f32.mrb[18].mxu1  ;;  %v1510_v15 = vsub.s32 6, %v4177_v21 }
 0x43a   : > { %v1143_v17 = vadd.f32 %v1142_v16, %v1056_v12  ;;  %v3498_v18 = vpop.f32.mrb[19].mxu1  ;;  %v3796_v12 = vld [vmem:[%s4870_s1 + $0xa8] sm:$0xff]  }
 0x43b   : > { %v1511_v16 = vrot.slane %v4186_v24, %v1510_v15 }
 0x43c   : > { %v1218_v20 = vpack.c.bf16 %v1143_v17, %v1140_v14  ;;  %v3798_v14 = vld [vmem:[%s4870_s1 + $0xb8] sm:$0xff]  }
 0x43e   : > { %3506 = vmatpush3.bf16.msra.mxu0 %v1218_v20 }
 0x43f   : > { %3511 = vmatprep.subr.bf16.mxu0 %v3981_v1 }
 0x4cf   : > { %v4381_v25 = vpop.f32.mrb[20].mxu1 }
 0x4d0   : > { %v3525_v26 = vpop.f32.mrb[21].mxu1 }
 0x4d1   : > { %v4383_v27 = vpop.f32.mrb[22].mxu1 }
 0x4d2   : > { %v3526_v28 = vpop.f32.mrb[23].mxu1 }
 0x4ef   : > { %v1594_v17 = vpop.f32.mrb[24].mxu1 }
 0x4f0   : > { %v1595_v18 = vadd.f32 %v1594_v17, %v1511_v16  ;;  %v3565_v20 = vpop.f32.mrb[25].mxu1  ;;  %v3807_v17 = vld [vmem:[%s4871_s2 + $0xc0] sm:$0xff]  }
 0x4f1   : > { %v1188_v29 = vpop.f32.mrb[12].mxu0  ;;  %v1597_v26 = vpop.f32.mrb[26].mxu1 }
 0x4f2   : > { %v3503_v30 = vpop.f32.mrb[13].mxu0  ;;  %v1195_v31 = vsel %vm742_vm2, %v1188_v29, -inf  ;;  %v1598_v28 = vadd.f32 %v1597_v26, %v1511_v16 }
 0x4f3   : > { %1196 = vmax.xlane.f32.xlu0 %v1195_v31  ;;  %v1191_v32 = vpop.f32.mrb[14].mxu0 }
 0x4f4   : > { %v3504_v33 = vpop.f32.mrb[15].mxu0  ;;  %v1198_v34 = vsel %vm742_vm2, %v1191_v32, -inf  ;;  %v1712_v30 = vpack.c.bf16 %v1598_v28, %v1595_v18  ;;  %v3809_v18 = vld [vmem:[%s4871_s2 + $0xc8] sm:$0xff]  }
 0x4f5   : > { %1199 = vmax.xlane.f32.xlu1 %v1198_v34 }
 0x4f6   : > { %v1717_v31 = vsel %vm694_vm1, %v1712_v30, 0 }
 0x4f7   : > { %3588 = vmatpush3.bf16.xpose.msra.mxu1 %v1717_v31 }
 0x4f8   : > { %3593 = vmatprep.subr.bf16.mxu1 %v3981_v1 }
 0x580   : > { %v1197_v35 = vpop.xlane.xlu0 %1196 }
 0x581   : > { %v1201_v36 = vsub.f32 %v1188_v29, %v1197_v35  ;;  %v3566_v29 = vpop.f32.mrb[27].mxu1 }
 0x582   : > { %v1200_v37 = vpop.xlane.xlu1 %1199 }
 0x583   : > { %v1203_v38 = vmul.f32 1.442695, %v1201_v36  ;;  %v1202_v39 = vsub.f32 %v1191_v32, %v1200_v37 }
 0x585   : > { %3883 = vpow2.f32 %v1203_v38  ;;  %v1205_v40 = vmul.f32 1.442695, %v1202_v39  ;;  %v4484_v38 = vsub.s32 2, %v4177_v21 }
 0x587   : > { %3885 = vpow2.f32 %v1205_v40  ;;  %v1401_v39 = vrot.slane %v4186_v24, %v4484_v38 }
 0x58f   : > { %v3884_v41 = vpop.eup %3883 }
 0x590   : > { %v1207_v42 = vsel %vm742_vm2, %v3884_v41, 0.0 }
 0x591   : > { %v3886_v43 = vpop.eup %3885  ;;  %1208 = vadd.xlane.f32.xlu0 %v1207_v42 }
 0x592   : > { %v1210_v44 = vsel %vm742_vm2, %v3886_v43, 0.0 }
 0x593   : > { %1211 = vadd.xlane.f32.xlu1 %v1210_v44 }
 0x61e   : > { %v1209_v47 = vpop.xlane.xlu0 %1208 }
 0x61f   : > { %3887 = vrcp.f32 %v1209_v47  ;;  %v3801_v47 = vld [vmem:[%s4872_s3 + $0x90] sm:$0xff]  }
 0x620   : > { %v1212_v48 = vpop.xlane.xlu1 %1211 }
 0x621   : > { %3889 = vrcp.f32 %v1212_v48  ;;  %v3802_v48 = vld [vmem:[%s4872_s3 + $0x98] sm:$0xff]  }
 0x629   : > { %v3888_v49 = vpop.eup %3887 }
 0x62a   : > { %v1215_v52 = vmul.f32 %v3888_v49, %v3884_v41  ;;  %v3803_v49 = vld [vmem:[%s4872_s3 + $0xa0] sm:$0xff]  }
 0x62b   : > { %v3890_v51 = vpop.eup %3889 }
 0x62c   : > { %v1216_v53 = vmul.f32 %v3890_v51, %v3886_v43  ;;  %v3804_v51 = vld [vmem:[%s4872_s3 + $0xa8] sm:$0xff]  }
 0x62e   : > { %v1217_v55 = vpack.c.bf16 %v1216_v53, %v1215_v52  ;;  %v3805_v52 = vld [vmem:[%s4872_s3 + $0xb0] sm:$0xff]   ;;  %v3806_v53 = vld [vmem:[%s4872_s3 + $0xb8] sm:$0xff]  }
 0x630   : > { %3508 = vmatmul.mubr.msk.bf16.vlgmr.msra.gmra.mrb[16].mxu0 %vm742_vm2, %v1217_v55 }
 0x631   : > { %3512 = vmatpush3.bf16.msra.mxu0 %v3782_v54  ;;  %3515 = vmatprep.mubr.msk.bf16.mxu0 %vm3982_vm0, %v3981_v1 }
 0x632   : > { %3513 = vmatprep.subr.bf16.mxu0 %v3981_v1 }
 0x635   : > { %3514 = vmatpush3.bf16.msra.mxu0 %v3784_v56 }
 0x636   : > { %3527 = vmatprep.subr.bf16.mxu0 %v3981_v1 }
 0x703   : > { %v1256_v63 = vpop.f32.mrb[16].mxu0 }
 0x704   : > { %v3509_v0 = vpop.f32.mrb[17].mxu0 }
 0x705   : > { %v1259_v3 = vpop.f32.mrb[18].mxu0 }
 0x706   : > { %v1263_v6 = vpack.c.bf16 %v1259_v3, %v1256_v63  ;;  %v3510_v7 = vpop.f32.mrb[19].mxu0 }
 0x708   : > { %3516 = vmatmul.mubr.msk.bf16.vlgmr.msra.gmra.mrb[20].mxu0 %vm694_vm1, %v1263_v6 }
 0x709   : > { %3528 = vmatpush3.bf16.msra.mxu0 %v3786_v5  ;;  %3543 = vmatprep.mubr.msk.bf16.mxu0 %vm3982_vm0, %v3981_v1 }
 0x70a   : > { %3529 = vmatprep.subr.bf16.mxu0 %v3981_v1 }
 0x70d   : > { %3530 = vmatpush3.bf16.msra.mxu0 %v3788_v8 }
 0x70e   : > { %3531 = vmatprep.subr.bf16.mxu0 %v3981_v1 }
 0x711   : > { %3532 = vmatpush3.bf16.msra.mxu0 %v3790_v9 }
 0x712   : > { %3533 = vmatprep.subr.bf16.mxu0 %v3981_v1 }
 0x715   : > { %3534 = vmatpush3.bf16.msra.mxu0 %v3792_v10 }
 0x716   : > { %3535 = vmatprep.subr.bf16.mxu0 %v3981_v1 }
 0x719   : > { %3536 = vmatpush3.bf16.msra.mxu0 %v3794_v11  ;;  %v1621_v11 = vrot.slane %v4240_v4, %v4484_v38 }
 0x71a   : > { %3537 = vmatprep.subr.bf16.mxu0 %v3981_v1 }
 0x71d   : > { %3538 = vmatpush3.bf16.msra.mxu0 %v3796_v12 }
 0x71e   : > { %3539 = vmatprep.subr.bf16.mxu0 %v3981_v1 }
 0x721   : > { %3540 = vmatpush3.bf16.msra.mxu0 %v3797_v13 }
 0x722   : > { %3541 = vmatprep.subr.bf16.mxu0 %v3981_v1 }
 0x725   : > { %3542 = vmatpush3.bf16.msra.mxu0 %v3798_v14 }
 0x726   : > { %3567 = vmatprep.subr.bf16.mxu0 %v3981_v1 }
 0x728   : > { %3544 = vmatmul.mubr.bf16.vlgmr.msra.gmra.mrb[24].mxu0 %v4166_v19 }
 0x729   : > { %3583 = vmatprep.mubr.msk.bf16.mxu0 %vm3982_vm0, %v3981_v1 }
 0x7db   : > { %v1318_v32 = vpop.f32.mrb[20].mxu0 }
 0x7dc   : > { %v4478_v33 = vadd.f32 %v4381_v25, %v1318_v32  ;;  %v3517_v34 = vpop.f32.mrb[21].mxu0  ;;  %v3808_v32 = vld [vmem:[%s4873_s4 + $0x20] sm:$0xff]  }
 0x7dd   : > { %v1321_v35 = vpop.f32.mrb[22].mxu0 }
 0x7de   : > { %v4481_v36 = vadd.f32 %v4383_v27, %v1321_v35  ;;  %v3518_v37 = vpop.f32.mrb[23].mxu0  ;;  %v3799_v27 = vld [vmem:[%s4872_s3 + $0x80] sm:$0xff]   ;;  %v3810_v35 = vld [vmem:[%s4873_s4 + $0x28] sm:$0xff]  }
 0x7df   : > { %3568 = vmatpush3.bf16.msra.mxu0 %v3799_v27  ;;  %v3811_v37 = vld [vmem:[%s4871_s2 + $0xd0] sm:$0xff]   ;;  %v3812_v27 = vld [vmem:[%s4870_s1 + $0xc0] sm:$0xff]  }
 0x7e0   : > { %3569 = vmatprep.subr.bf16.mxu0 %v3981_v1 }
 0x7e3   : > { %3570 = vmatpush3.bf16.msra.mxu0 %v3800_v46 }
 0x7e4   : > { %3571 = vmatprep.subr.bf16.mxu0 %v3981_v1 }
 0x7e7   : > { %3572 = vmatpush3.bf16.msra.mxu0 %v3801_v47 }
 0x7e8   : > { %3573 = vmatprep.subr.bf16.mxu0 %v3981_v1 }
 0x7eb   : > { %3574 = vmatpush3.bf16.msra.mxu0 %v3802_v48  ;;  %v3814_v48 = vld [vmem:[%s4870_s1 + $0xc8] sm:$0xff]  }
 0x7ec   : > { %3575 = vmatprep.subr.bf16.mxu0 %v3981_v1 }
 0x7ef   : > { %3576 = vmatpush3.bf16.msra.mxu0 %v3803_v49  ;;  %v3816_v49 = vld [vmem:[%s4870_s1 + $0xd0] sm:$0xff]  }
 0x7f0   : > { %3577 = vmatprep.subr.bf16.mxu0 %v3981_v1 }
 0x7f3   : > { %3578 = vmatpush3.bf16.msra.mxu0 %v3804_v51  ;;  %v3818_v51 = vld [vmem:[%s4870_s1 + $0xd8] sm:$0xff]  }
 0x7f4   : > { %3579 = vmatprep.subr.bf16.mxu0 %v3981_v1 }
 0x7f7   : > { %3580 = vmatpush3.bf16.msra.mxu0 %v3805_v52  ;;  %v3820_v52 = vld [vmem:[%s4870_s1 + $0xe0] sm:$0xff]  }
 0x7f8   : > { %3581 = vmatprep.subr.bf16.mxu0 %v3981_v1 }
 0x7fb   : > { %v1484_v40 = vpop.f32.mrb[24].mxu0  ;;  %3582 = vmatpush3.bf16.msra.mxu0 %v3806_v53  ;;  %v3822_v53 = vld [vmem:[%s4870_s1 + $0xe8] sm:$0xff]  }
 0x7fc   : > { %v3545_v41 = vpop.f32.mrb[25].mxu0  ;;  %v1485_v43 = vadd.f32 %v1484_v40, %v1401_v39  ;;  %3627 = vmatprep.subr.bf16.mxu0 %v3981_v1  ;;  %v3815_v40 = vld [vmem:[%s4871_s2 + $0xe0] sm:$0xff]  }
 0x7fd   : > { %v1487_v42 = vpop.f32.mrb[26].mxu0  ;;  %v3817_v41 = vld [vmem:[%s4871_s2 + $0xe8] sm:$0xff]  }
 0x7fe   : > { %v1488_v44 = vadd.f32 %v1487_v42, %v1401_v39  ;;  %v3546_v45 = vpop.f32.mrb[27].mxu0  ;;  %3584 = vmatmul.mubr.bf16.vlgmr.msra.gmra.mrb[28].mxu0 %v4166_v19  ;;  %v3813_v39 = vld [vmem:[%s4871_s2 + $0xd8] sm:$0xff]   ;;  %v3819_v42 = vld [vmem:[%s4871_s2 + $0xf0] sm:$0xff]  }
 0x7ff   : > { %3643 = vmatprep.mubr.msk.bf16.mxu0 %vm3982_vm0, %v3981_v1  ;;  %3628 = vmatpush3.bf16.msra.mxu0 %v3807_v17 }
 0x800   : > { %v1711_v25 = vpack.c.bf16 %v1488_v44, %v1485_v43  ;;  %3629 = vmatprep.subr.bf16.mxu0 %v3981_v1  ;;  %v3821_v43 = vld [vmem:[%s4871_s2 + $0xf8] sm:$0xff]  }
 0x802   : > { %3590 = vmatmul.mubr.msk.bf16.vlgmr.msra.gmra.mrb[28].mxu1 %vm694_vm1, %v1711_v25 }
 0x803   : > { %3595 = vmatprep.mubr.msk.bf16.mxu1 %vm3982_vm0, %v3981_v1  ;;  %3630 = vmatpush3.bf16.msra.mxu0 %v3809_v18 }
 0x804   : > { %3631 = vmatprep.subr.bf16.mxu0 %v3981_v1 }
 0x807   : > { %3632 = vmatpush3.bf16.msra.mxu0 %v3811_v37 }
 0x808   : > { %3633 = vmatprep.subr.bf16.mxu0 %v3981_v1 }
 0x80b   : > { %3634 = vmatpush3.bf16.msra.mxu0 %v3813_v39 }
 0x80c   : > { %3635 = vmatprep.subr.bf16.mxu0 %v3981_v1 }
 0x80f   : > { %3636 = vmatpush3.bf16.msra.mxu0 %v3815_v40 }
 0x810   : > { %3637 = vmatprep.subr.bf16.mxu0 %v3981_v1 }
 0x813   : > { %3638 = vmatpush3.bf16.msra.mxu0 %v3817_v41 }
 0x814   : > { %3639 = vmatprep.subr.bf16.mxu0 %v3981_v1 }
 0x817   : > { %3640 = vmatpush3.bf16.msra.mxu0 %v3819_v42 }
 0x818   : > { %3641 = vmatprep.subr.bf16.mxu0 %v3981_v1 }
 0x81b   : > { %3642 = vmatpush3.bf16.msra.mxu0 %v3821_v43 }
 0x81c   : > { %3667 = vmatprep.subr.bf16.mxu0 %v3981_v1 }
 0x81e   : > { %3644 = vmatmul.mubr.bf16.vlgmr.msra.gmra.mrb[32].mxu0 %v4166_v19 }
 0x81f   : > { %3669 = vmatprep.mubr.msk.bf16.mxu0 %vm3982_vm0, %v3981_v1 }
 0x8d1   : > { %v1704_v9 = vpop.f32.mrb[28].mxu0 }
 0x8d2   : > { %v3585_v10 = vpop.f32.mrb[29].mxu0  ;;  %v1705_v14 = vadd.f32 %v1704_v9, %v1621_v11 }
 0x8d3   : > { %v1707_v12 = vpop.f32.mrb[30].mxu0 }
 0x8d4   : > { %v3586_v13 = vpop.f32.mrb[31].mxu0  ;;  %v1708_v15 = vadd.f32 %v1707_v12, %v1621_v11  ;;  %v4628_v11 = vsub.s32 3, %v4177_v21 }
 0x8d5   : > { %v1753_v54 = vpop.f32.mrb[28].mxu1 }
 0x8d6   : > { %v3591_v55 = vpop.f32.mrb[29].mxu1  ;;  %v1760_v56 = vsel %vm742_vm2, %v1753_v54, -inf  ;;  %v1783_v16 = vpack.c.bf16 %v1708_v15, %v1705_v14  ;;  %v1912_v12 = vrot.slane %v4186_v24, %v4628_v11 }
 0x8d7   : > { %1761 = vmax.xlane.f32.xlu0 %v1760_v56  ;;  %v1756_v57 = vpop.f32.mrb[30].mxu1  ;;  %v3824_v55 = vld [vmem:[%s4870_s1 + $0xf8] sm:$0xff]   ;;  %v2021_v56 = vsub.s32 7, %v4177_v21 }
 0x8d8   : > { %v3592_v58 = vpop.f32.mrb[31].mxu1  ;;  %v1763_v59 = vsel %vm742_vm2, %v1756_v57, -inf  ;;  %3594 = vmatpush3.bf16.msra.mxu1 %v1783_v16 }
 0x8d9   : > { %1764 = vmax.xlane.f32.xlu1 %v1763_v59  ;;  %3599 = vmatprep.subr.bf16.mxu1 %v3981_v1 }
 0x8f1   : > { %v2105_v58 = vpop.f32.mrb[32].mxu0 }
 0x964   : > { %v1762_v60 = vpop.xlane.xlu0 %1761 }
 0x965   : > { %v1766_v61 = vsub.f32 %v1753_v54, %v1762_v60  ;;  %v3823_v54 = vld [vmem:[%s4870_s1 + $0xf0] sm:$0xff]   ;;  %v3645_v60 = vpop.f32.mrb[33].mxu0 }
 0x966   : > { %v1765_v62 = vpop.xlane.xlu1 %1764 }
 0x967   : > { %v1768_v63 = vmul.f32 1.442695, %v1766_v61  ;;  %v1767_v0 = vsub.f32 %v1756_v57, %v1765_v62  ;;  %v2022_v57 = vrot.slane %v4186_v24, %v2021_v56  ;;  %v2108_v61 = vpop.f32.mrb[34].mxu0  ;;  %v3826_v24 = vld [vmem:[%s4872_s3 + $0xc8] sm:$0xff]  }
 0x969   : > { %3891 = vpow2.f32 %v1768_v63  ;;  %v1770_v3 = vmul.f32 1.442695, %v1767_v0  ;;  %v2106_v59 = vadd.f32 %v2105_v58, %v2022_v57  ;;  %v2109_v62 = vadd.f32 %v2108_v61, %v2022_v57  ;;  %v3646_v63 = vpop.f32.mrb[35].mxu0 }
 0x96b   : > { %3893 = vpow2.f32 %v1770_v3  ;;  %v2223_v0 = vpack.c.bf16 %v2109_v62, %v2106_v59 }
 0x96d   : > { %v2228_v3 = vsel %vm694_vm1, %v2223_v0, 0  ;;  %v3834_v0 = vld [vmem:[%s4873_s4 + $0x38] sm:$0xff]  }
 0x96e   : > { %3668 = vmatpush3.bf16.xpose.msra.mxu0 %v2228_v3 }
 0x96f   : > { %3673 = vmatprep.subr.bf16.mxu0 %v3981_v1 }
 0x973   : > { %v3892_v5 = vpop.eup %3891 }
 0x974   : > { %v1772_v6 = vsel %vm742_vm2, %v3892_v5, 0.0 }
 0x975   : > { %v3894_v7 = vpop.eup %3893  ;;  %1773 = vadd.xlane.f32.xlu0 %v1772_v6 }
 0x976   : > { %v1775_v8 = vsel %vm742_vm2, %v3894_v7, 0.0 }
 0x977   : > { %1776 = vadd.xlane.f32.xlu1 %v1775_v8 }
 0xa02   : > { %v1774_v20 = vpop.xlane.xlu0 %1773 }
 0xa03   : > { %3895 = vrcp.f32 %v1774_v20  ;;  %v3827_v20 = vld [vmem:[%s4872_s3 + $0xd0] sm:$0xff]  }
 0xa04   : > { %v1777_v26 = vpop.xlane.xlu1 %1776 }
 0xa05   : > { %3897 = vrcp.f32 %v1777_v26  ;;  %v3828_v26 = vld [vmem:[%s4872_s3 + $0xd8] sm:$0xff]  }
 0xa0d   : > { %v3896_v28 = vpop.eup %3895 }
 0xa0e   : > { %v1780_v30 = vmul.f32 %v3896_v28, %v3892_v5  ;;  %v3829_v28 = vld [vmem:[%s4872_s3 + $0xe0] sm:$0xff]  }
 0xa0f   : > { %v3898_v29 = vpop.eup %3897 }
 0xa10   : > { %v1781_v31 = vmul.f32 %v3898_v29, %v3894_v7  ;;  %v3830_v29 = vld [vmem:[%s4872_s3 + $0xe8] sm:$0xff]  }
 0xa12   : > { %v1782_v34 = vpack.c.bf16 %v1781_v31, %v1780_v30  ;;  %v3831_v30 = vld [vmem:[%s4872_s3 + $0xf0] sm:$0xff]   ;;  %v3832_v31 = vld [vmem:[%s4872_s3 + $0xf8] sm:$0xff]  }
 0xa14   : > { %3596 = vmatmul.mubr.msk.bf16.vlgmr.msra.gmra.mrb[32].mxu1 %vm742_vm2, %v1782_v34 }
 0xa15   : > { %3600 = vmatpush3.bf16.msra.mxu1 %v3808_v32  ;;  %3603 = vmatprep.mubr.msk.bf16.mxu1 %vm3982_vm0, %v3981_v1 }
 0xa16   : > { %3601 = vmatprep.subr.bf16.mxu1 %v3981_v1 }
 0xa19   : > { %3602 = vmatpush3.bf16.msra.mxu1 %v3810_v35 }
 0xa1a   : > { %3607 = vmatprep.subr.bf16.mxu1 %v3981_v1 }
 0xae7   : > { %v1821_v44 = vpop.f32.mrb[32].mxu1 }
 0xae8   : > { %v3597_v45 = vpop.f32.mrb[33].mxu1 }
 0xae9   : > { %v1824_v25 = vpop.f32.mrb[34].mxu1 }
 0xaea   : > { %v1828_v46 = vpack.c.bf16 %v1824_v25, %v1821_v44  ;;  %v3598_v47 = vpop.f32.mrb[35].mxu1 }
 0xaec   : > { %3604 = vmatmul.mubr.msk.bf16.vlgmr.msra.gmra.mrb[36].mxu1 %vm694_vm1, %v1828_v46 }
 0xaed   : > { %3608 = vmatpush3.bf16.msra.mxu1 %v3812_v27  ;;  %3623 = vmatprep.mubr.msk.bf16.mxu1 %vm3982_vm0, %v3981_v1 }
 0xaee   : > { %3609 = vmatprep.subr.bf16.mxu1 %v3981_v1 }
 0xaf1   : > { %3610 = vmatpush3.bf16.msra.mxu1 %v3814_v48 }
 0xaf2   : > { %3611 = vmatprep.subr.bf16.mxu1 %v3981_v1 }
 0xaf5   : > { %3612 = vmatpush3.bf16.msra.mxu1 %v3816_v49 }
 0xaf6   : > { %3613 = vmatprep.subr.bf16.mxu1 %v3981_v1 }
 0xaf9   : > { %3614 = vmatpush3.bf16.msra.mxu1 %v3818_v51  ;;  %v2132_v51 = vrot.slane %v4240_v4, %v4628_v11  ;;  %v3833_v4 = vld [vmem:[%s4873_s4 + $0x30] sm:$0xff]  }
 0xafa   : > { %3615 = vmatprep.subr.bf16.mxu1 %v3981_v1 }
 0xafd   : > { %3616 = vmatpush3.bf16.msra.mxu1 %v3820_v52 }
 0xafe   : > { %3617 = vmatprep.subr.bf16.mxu1 %v3981_v1 }
 0xb01   : > { %3618 = vmatpush3.bf16.msra.mxu1 %v3822_v53 }
 0xb02   : > { %3619 = vmatprep.subr.bf16.mxu1 %v3981_v1 }
 0xb05   : > { %3620 = vmatpush3.bf16.msra.mxu1 %v3823_v54 }
 0xb06   : > { %3621 = vmatprep.subr.bf16.mxu1 %v3981_v1 }
 0xb09   : > { %3622 = vmatpush3.bf16.msra.mxu1 %v3824_v55 }
 0xb0a   : > { %3647 = vmatprep.subr.bf16.mxu1 %v3981_v1 }
 0xb0c   : > { %3624 = vmatmul.mubr.bf16.vlgmr.msra.gmra.mrb[40].mxu1 %v4166_v19 }
 0xb0d   : > { %3663 = vmatprep.mubr.msk.bf16.mxu1 %vm3982_vm0, %v3981_v1 }
 0xbbf   : > { %v1883_v5 = vpop.f32.mrb[36].mxu1 }
 0xbc0   : > { %v4622_v6 = vadd.f32 %v1883_v5, %v4478_v33  ;;  %v3605_v7 = vpop.f32.mrb[37].mxu1 }
 0xbc1   : > { %v1886_v8 = vpop.f32.mrb[38].mxu1 }
 0xbc2   : > { %v4625_v9 = vadd.f32 %v1886_v8, %v4481_v36  ;;  %v3606_v10 = vpop.f32.mrb[39].mxu1  ;;  %v3825_v36 = vld [vmem:[%s4872_s3 + $0xc0] sm:$0xff]  }
 0xbc3   : > { %3648 = vmatpush3.bf16.msra.mxu1 %v3825_v36 }
 0xbc4   : > { %3649 = vmatprep.subr.bf16.mxu1 %v3981_v1 }
 0xbc7   : > { %3650 = vmatpush3.bf16.msra.mxu1 %v3826_v24  ;;  %v3915_v24 = vld [vmem:[%s4150_s20] sm:$0xff] }
 0xbc8   : > { %3651 = vmatprep.subr.bf16.mxu1 %v3981_v1 }
 0xbcb   : > { %3652 = vmatpush3.bf16.msra.mxu1 %v3827_v20 }
 0xbcc   : > { %3653 = vmatprep.subr.bf16.mxu1 %v3981_v1 }
 0xbcf   : > { %3654 = vmatpush3.bf16.msra.mxu1 %v3828_v26  ;;  %v3916_v26 = vld [vmem:[%s4150_s20 + $0x8] sm:$0xff]  ;;  %s4828_s20 = scalar_lea.sflag [#allocation3], %s350_s12 }
 0xbd0   : > { %3655 = vmatprep.subr.bf16.mxu1 %v3981_v1 }
 0xbd3   : > { %3656 = vmatpush3.bf16.msra.mxu1 %v3829_v28 }
 0xbd4   : > { %3657 = vmatprep.subr.bf16.mxu1 %v3981_v1 }
 0xbd7   : > { %3658 = vmatpush3.bf16.msra.mxu1 %v3830_v29  ;;  %v3835_v29 = vld [vmem:[%s4874_s5] ss:$8 sps:$4 sm:$0xff]  }
 0xbd8   : > { %3659 = vmatprep.subr.bf16.mxu1 %v3981_v1 }
 0xbdb   : > { %3660 = vmatpush3.bf16.msra.mxu1 %v3831_v30  ;;  %v3838_v30 = vld [vmem:[%s4874_s5 + $0x10] ss:$8 sps:$4 sm:$0xff]  }
 0xbdc   : > { %3661 = vmatprep.subr.bf16.mxu1 %v3981_v1 }
 0xbdf   : > { %v1995_v13 = vpop.f32.mrb[40].mxu1  ;;  %3662 = vmatpush3.bf16.msra.mxu1 %v3832_v31 }
 0xbe0   : > { %v3625_v14 = vpop.f32.mrb[41].mxu1  ;;  %v1996_v16 = vadd.f32 %v1995_v13, %v1912_v12 }
 0xbe1   : > { %v1998_v15 = vpop.f32.mrb[42].mxu1 }
 0xbe2   : > { %v1999_v17 = vadd.f32 %v1998_v15, %v1912_v12  ;;  %v3626_v18 = vpop.f32.mrb[43].mxu1  ;;  %3664 = vmatmul.mubr.bf16.vlgmr.msra.gmra.mrb[44].mxu1 %v4166_v19  ;;  %v4688_v12 = vld [vmem:[%s4877_s8] sm:$0xff] }
 0xbe4   : > { %v2222_v33 = vpack.c.bf16 %v1999_v17, %v1996_v16 }
 0xbe6   : > { %3670 = vmatmul.mubr.msk.bf16.vlgmr.msra.gmra.mrb[36].mxu0 %vm694_vm1, %v2222_v33 }
 0xbe7   : > { %3675 = vmatprep.mubr.msk.bf16.mxu0 %vm3982_vm0, %v3981_v1 }
 0xcb5   : > { %v2215_v48 = vpop.f32.mrb[44].mxu1 }
 0xcb6   : > { %v3665_v49 = vpop.f32.mrb[45].mxu1  ;;  %v2216_v54 = vadd.f32 %v2215_v48, %v2132_v51  ;;  %v3853_v48 = vld [vmem:[%s4874_s5 + $0x60] ss:$8 sps:$4 sm:$0xff]  }
 0xcb7   : > { %v2218_v52 = vpop.f32.mrb[46].mxu1  ;;  %v3858_v49 = vld [vmem:[%s4874_s5 + $0x74] ss:$8 sps:$4 sm:$0xff]  }
 0xcb8   : > { %v3666_v53 = vpop.f32.mrb[47].mxu1  ;;  %v2219_v55 = vadd.f32 %v2218_v52, %v2132_v51  ;;  %v3856_v51 = vld [vmem:[%s4874_s5 + $0x70] ss:$8 sps:$4 sm:$0xff]   ;;  %v3983_v52 = vmov 0  }
 0xcb9   : > { %v2264_v32 = vpop.f32.mrb[36].mxu0  ;;  %v3859_v53 = vld [vmem:[%s4875_s6 + $0x40] sm:$0xff]  }
 0xcba   : > { %v3671_v34 = vpop.f32.mrb[37].mxu0  ;;  %v2271_v35 = vsel %vm742_vm2, %v2264_v32, -inf  ;;  %v2294_v56 = vpack.c.bf16 %v2219_v55, %v2216_v54  ;;  %v3860_v54 = vld [vmem:[%s4875_s6] sm:$0xff]   ;;  %v3861_v55 = vld [vmem:[%s4875_s6 + $0x48] sm:$0xff]   ;;  %3345 = vmatprep.subr.bf16.mxu1 %v3859_v53 }
 0xcbb   : > { %2272 = vmax.xlane.f32.xlu0 %v2271_v35  ;;  %v2267_v37 = vpop.f32.mrb[38].mxu0  ;;  %3346 = vmatpush3.bf16.msra.mxu1 %v3860_v54 }
 0xcbc   : > { %v3672_v39 = vpop.f32.mrb[39].mxu0  ;;  %v2274_v40 = vsel %vm742_vm2, %v2267_v37, -inf  ;;  %3674 = vmatpush3.bf16.msra.mxu0 %v2294_v56  ;;  %v3862_v56 = vld [vmem:[%s4875_s6 + $0x8] sm:$0xff]   ;;  %3347 = vmatprep.subr.bf16.mxu1 %v3861_v55 }
 0xcbd   : > { %2275 = vmax.xlane.f32.xlu1 %v2274_v40  ;;  %3679 = vmatprep.subr.bf16.mxu0 %v3981_v1 }
 0xcbf   : > { %3348 = vmatpush3.bf16.msra.mxu1 %v3862_v56 }
 0xd48   : > { %v2273_v41 = vpop.xlane.xlu0 %2272 }
 0xd49   : > { %v2277_v42 = vsub.f32 %v2264_v32, %v2273_v41 }
 0xd4a   : > { %v2276_v43 = vpop.xlane.xlu1 %2275 }
 0xd4b   : > { %v2279_v44 = vmul.f32 1.442695, %v2277_v42  ;;  %v2278_v45 = vsub.f32 %v2267_v37, %v2276_v43  ;;  %v3843_v42 = vld [vmem:[%s4874_s5 + $0x24] ss:$8 sps:$4 sm:$0xff]   ;;  %v3841_v43 = vld [vmem:[%s4874_s5 + $0x20] ss:$8 sps:$4 sm:$0xff]  }
 0xd4d   : > { %3899 = vpow2.f32 %v2279_v44  ;;  %v2281_v25 = vmul.f32 1.442695, %v2278_v45  ;;  %v3846_v44 = vld [vmem:[%s4874_s5 + $0x34] ss:$8 sps:$4 sm:$0xff]   ;;  %v3844_v45 = vld [vmem:[%s4874_s5 + $0x30] ss:$8 sps:$4 sm:$0xff]  }
 0xd4f   : > { %3901 = vpow2.f32 %v2281_v25  ;;  %v3849_v25 = vld [vmem:[%s4874_s5 + $0x44] ss:$8 sps:$4 sm:$0xff]  }
 0xd57   : > { %v3900_v27 = vpop.eup %3899 }
 0xd58   : > { %v2283_v19 = vsel %vm742_vm2, %v3900_v27, 0.0 }
 0xd59   : > { %v3902_v46 = vpop.eup %3901  ;;  %2284 = vadd.xlane.f32.xlu0 %v2283_v19  ;;  %v3852_v19 = vld [vmem:[%s4874_s5 + $0x54] ss:$8 sps:$4 sm:$0xff]  }
 0xd5a   : > { %v2286_v47 = vsel %vm742_vm2, %v3902_v46, 0.0 }
 0xd5b   : > { %2287 = vadd.xlane.f32.xlu1 %v2286_v47  ;;  %v3855_v47 = vld [vmem:[%s4874_s5 + $0x64] ss:$8 sps:$4 sm:$0xff]  }
 0xde6   : > { %v2285_v57 = vpop.xlane.xlu0 %2284 }
 0xde7   : > { %3903 = vrcp.f32 %v2285_v57  ;;  %v3863_v57 = vld [vmem:[%s4875_s6 + $0x50] sm:$0xff]  }
 0xde8   : > { %v2288_v58 = vpop.xlane.xlu1 %2287  ;;  %3349 = vmatprep.subr.bf16.mxu1 %v3863_v57 }
 0xde9   : > { %3905 = vrcp.f32 %v2288_v58  ;;  %v3864_v58 = vld [vmem:[%s4875_s6 + $0x10] sm:$0xff]  }
 0xdea   : > { %3350 = vmatpush3.bf16.msra.mxu1 %v3864_v58 }
 0xdf1   : > { %v3904_v59 = vpop.eup %3903 }
 0xdf2   : > { %v2291_v61 = vmul.f32 %v3904_v59, %v3900_v27  ;;  %v3847_v27 = vld [vmem:[%s4874_s5 + $0x40] ss:$8 sps:$4 sm:$0xff]   ;;  %v3865_v59 = vld [vmem:[%s4875_s6 + $0x58] sm:$0xff]  }
 0xdf3   : > { %v3906_v60 = vpop.eup %3905  ;;  %3351 = vmatprep.subr.bf16.mxu1 %v3865_v59 }
 0xdf4   : > { %v2292_v62 = vmul.f32 %v3906_v60, %v3902_v46  ;;  %v3850_v46 = vld [vmem:[%s4874_s5 + $0x50] ss:$8 sps:$4 sm:$0xff]  }
 0xdf5   : > { %v3866_v60 = vld [vmem:[%s4875_s6 + $0x18] sm:$0xff]  }
 0xdf6   : > { %v2293_v63 = vpack.c.bf16 %v2292_v62, %v2291_v61  ;;  %v3867_v61 = vld [vmem:[%s4875_s6 + $0x60] sm:$0xff]   ;;  %3352 = vmatpush3.bf16.msra.mxu1 %v3866_v60 }
 0xdf7   : > { %v3868_v62 = vld [vmem:[%s4875_s6 + $0x20] sm:$0xff]   ;;  %3353 = vmatprep.subr.bf16.mxu1 %v3867_v61 }
 0xdf8   : > { %3676 = vmatmul.mubr.msk.bf16.vlgmr.msra.gmra.mrb[40].mxu0 %vm742_vm2, %v2293_v63 }
 0xdf9   : > { %3680 = vmatpush3.bf16.msra.mxu0 %v3833_v4  ;;  %3683 = vmatprep.mubr.msk.bf16.mxu0 %vm3982_vm0, %v3981_v1  ;;  %v3869_v4 = vld [vmem:[%s4875_s6 + $0x68] sm:$0xff]  }
 0xdfa   : > { %3681 = vmatprep.subr.bf16.mxu0 %v3981_v1  ;;  %v2406_v1 = vrot.slane %v4688_v12, %v4181_v23  ;;  %3354 = vmatpush3.bf16.msra.mxu1 %v3868_v62 }
 0xdfb   : > { %3355 = vmatprep.subr.bf16.mxu1 %v3869_v4 }
 0xdfd   : > { %3682 = vmatpush3.bf16.msra.mxu0 %v3834_v0 }
 0xecb   : > { %v2332_v3 = vpop.f32.mrb[40].mxu0 }
 0xecc   : > { %v3677_v5 = vpop.f32.mrb[41].mxu0 }
 0xecd   : > { %v2335_v7 = vpop.f32.mrb[42].mxu0 }
 0xece   : > { %v2339_v8 = vpack.c.bf16 %v2335_v7, %v2332_v3  ;;  %v3678_v10 = vpop.f32.mrb[43].mxu0 }
 0xecf   : > { %v2437_v10 = vrot.slane %v4688_v12, %v4484_v38  ;;  %v3871_v38 = vld [vmem:[%s4875_s6 + $0x70] sm:$0xff]  }
 0xed0   : > { %3684 = vmatmul.mubr.msk.bf16.vlgmr.msra.gmra.mrb[44].mxu0 %vm694_vm1, %v2339_v8 }
 0xed1   : > { %2587 = vmatprep.mubr.bf16.mxu0 %v3983_v52 }
 0xfa3   : > { %v2394_v13 = vpop.f32.mrb[44].mxu0 }
 0xfa4   : > { %v2401_v14 = vadd.f32 %v2394_v13, %v4622_v6  ;;  %v3685_v15 = vpop.f32.mrb[45].mxu0  ;;  %v3837_v6 = vld [vmem:[%s4874_s5 + $0x4] ss:$8 sps:$4 sm:$0xff]  }
 0xfa5   : > { %v2397_v16 = vpop.f32.mrb[46].mxu0  ;;  %2555 = vmatprep.subr.bf16.mxu0 %v3837_v6 }
 0xfa6   : > { %v2407_v17 = vadd.f32 %v2406_v1, %v2401_v14  ;;  %v2402_v18 = vadd.f32 %v2397_v16, %v4625_v9  ;;  %v3686_v33 = vpop.f32.mrb[47].mxu0  ;;  %v3840_v9 = vld [vmem:[%s4874_s5 + $0x14] ss:$8 sps:$4 sm:$0xff]   ;;  %2556 = vmatpush1.bf16.msra.mxu0 %v3835_v29  ;;  %v2463_v29 = vld [vmem:[%s4878_s9] sm:$0x3] }
 0xfa7   : > { %2557 = vmatprep.subr.bf16.mxu0 %v3840_v9  ;;  %v2468_v6 = vrot.slane %v2463_v29, %v4181_v23  ;;  %v2472_v9 = vrot.slane %v2463_v29, %v4371_v2  ;;  %v2639_v23 = vrot.slane %v4688_v12, %v4371_v2 }
 0xfa8   : > { %v2408_v36 = vadd.f32 %v2406_v1, %v2402_v18  ;;  %v2409_v20 = vadd.f32 %v3915_v24, %v2407_v17  ;;  %v2443_v17 = vrot.slane %v4688_v12, %v4628_v11  ;;  %v3873_v11 = vld [vmem:[%s4875_s6 + $0x78] sm:$0xff]  }
 0xfaa   : > { %2411 = vadd.xlane.f32.xlu0 %v2409_v20  ;;  %v2410_v28 = vadd.f32 %v3916_v26, %v2408_v36  ;;  %2558 = vmatpush1.bf16.msra.mxu0 %v3838_v30  ;;  %v3872_v26 = vld [vmem:[%s4875_s6 + $0x30] sm:$0xff]  }
 0xfab   : > { %2559 = vmatprep.subr.bf16.mxu0 %v3843_v42 }
 0xfac   : > { %2413 = vadd.xlane.f32.xlu1 %v2410_v28 }
 0xfae   : > { %2560 = vmatpush1.bf16.msra.mxu0 %v3841_v43 }
 0xfaf   : > { %2561 = vmatprep.subr.bf16.mxu0 %v3846_v44 }
 0xfb2   : > { %2562 = vmatpush1.bf16.msra.mxu0 %v3844_v45 }
 0xfb3   : > { %2563 = vmatprep.subr.bf16.mxu0 %v3849_v25 }
 0xfb6   : > { %2564 = vmatpush1.bf16.msra.mxu0 %v3847_v27 }
 0xfb7   : > { %2565 = vmatprep.subr.bf16.mxu0 %v3852_v19 }
 0xfba   : > { %2566 = vmatpush1.bf16.msra.mxu0 %v3850_v46 }
 0xfbb   : > { %2567 = vmatprep.subr.bf16.mxu0 %v3855_v47 }
 0xfbe   : > { %2568 = vmatpush1.bf16.msra.mxu0 %v3853_v48 }
 0xfbf   : > { %2569 = vmatprep.subr.bf16.mxu0 %v3858_v49 }
 0xfc2   : > { %2570 = vmatpush1.bf16.msra.mxu0 %v3856_v51 }
0x1037   : > { %v2412_v31 = vpop.xlane.xlu0 %2411 }
0x1038   : > { %v2416_v32 = vmul.f32 0.0078125, %v2412_v31 }
0x1039   : > { %v2414_v34 = vpop.xlane.xlu1 %2413 }
0x103a   : > { %v4708_v35 = vsub.f32 %v2409_v20, %v2416_v32  ;;  %v2417_v37 = vmul.f32 0.0078125, %v2414_v34  ;;  %v3870_v20 = vld [vmem:[%s4875_s6 + $0x28] sm:$0xff]  }
0x103b   : > { %3356 = vmatpush3.bf16.msra.mxu1 %v3870_v20 }
0x103c   : > { %v4710_v39 = vsub.f32 %v2410_v28, %v2417_v37  ;;  %v2420_v40 = vmul.f32 %v4708_v35, %v4708_v35  ;;  %3357 = vmatprep.subr.bf16.mxu1 %v3871_v38  ;;  %v3874_v28 = vld [vmem:[%s4875_s6 + $0x38] sm:$0xff]  }
0x103e   : > { %2422 = vadd.xlane.f32.xlu0 %v2420_v40  ;;  %v2421_v41 = vmul.f32 %v4710_v39, %v4710_v39 }
0x103f   : > { %3358 = vmatpush3.bf16.msra.mxu1 %v3872_v26 }
0x1040   : > { %2424 = vadd.xlane.f32.xlu1 %v2421_v41  ;;  %3359 = vmatprep.subr.bf16.mxu1 %v3873_v11 }
0x1043   : > { %3360 = vmatpush3.bf16.msra.mxu1 %v3874_v28 }
0x10cb   : > { %v2423_v63 = vpop.xlane.xlu0 %2422 }
0x10cc   : > { %v2426_v0 = vmul.f32 0.0078125, %v2423_v63 }
0x10cd   : > { %v2425_v3 = vpop.xlane.xlu1 %2424 }
0x10ce   : > { %v2428_v5 = vadd.f32 1e-05, %v2426_v0  ;;  %v2427_v7 = vmul.f32 0.0078125, %v2425_v3 }
0x10d0   : > { %3907 = vrsqrt.f32 %v2428_v5  ;;  %v2429_v8 = vadd.f32 1e-05, %v2427_v7  ;;  %v2804_v7 = vrot.slane %v4688_v12, %v492_v22 }
0x10d2   : > { %3909 = vrsqrt.f32 %v2429_v8 }
0x10da   : > { %v3908_v1 = vpop.eup %3907 }
0x10db   : > { %v2432_v13 = vmul.f32 %v3908_v1, %v4708_v35 }
0x10dc   : > { %v3910_v14 = vpop.eup %3909 }
0x10dd   : > { %v2433_v15 = vmul.f32 %v3910_v14, %v4710_v39  ;;  %v2438_v16 = vmul.f32 %v2437_v10, %v2432_v13 }
0x10df   : > { %v2439_v18 = vmul.f32 %v2437_v10, %v2433_v15  ;;  %v2444_v33 = vadd.f32 %v2443_v17, %v2438_v16  ;;  %v2810_v10 = vrot.slane %v4688_v12, %v945_v50 }
0x10e1   : > { %v2445_v36 = vadd.f32 %v2443_v17, %v2439_v18 }
0x10e3   : > { %v2446_v24 = vpack.c.bf16 %v2445_v36, %v2444_v33 }
0x10e5   : > { %2588 = vmatmul.mubr.bf16.vlgmr.msra.gmra.mrb[48].mxu0 %v2446_v24 }
0x11b8   : > { %v2589_v30 = vpop.f32.mrb[48].mxu0 }
0x11b9   : > { %v2590_v31 = vadd.f32 %v2589_v30, %v2468_v6  ;;  %v2591_v32 = vpop.f32.mrb[49].mxu0 }
0x11ba   : > { %v2592_v34 = vadd.f32 %v2591_v32, %v2472_v9  ;;  %v2593_v35 = vpop.f32.mrb[50].mxu0 }
0x11bb   : > { %v2594_v37 = vadd.f32 %v2593_v35, %v2468_v6  ;;  %v2595_v39 = vpop.f32.mrb[51].mxu0  ;;  %v2598_v41 = vmax.f32 %v2590_v31, 0.0 }
0x11bc   : > { %v2596_v40 = vadd.f32 %v2595_v39, %v2472_v9  ;;  %v2599_v43 = vmax.f32 %v2592_v34, 0.0 }
0x11bd   : > { %v2600_v42 = vmax.f32 %v2594_v37, 0.0 }
0x11be   : > { %v2601_v44 = vmax.f32 %v2596_v40, 0.0 }
0x11bf   : > { %v2602_v45 = vpack.c.bf16 %v2600_v42, %v2598_v41 }
0x11c0   : > { %v2603_v25 = vpack.c.bf16 %v2601_v44, %v2599_v43 }
0x11c2   : > { %2768 = vmatprep.mubr.bf16.mxu1 %v2603_v25 }
0x11c3   : > { %2769 = vmatmul.mubr.bf16.vlgmr.msra.gmra.mrb[48].mxu1 %v2602_v45 }
0x1296   : > { %v3361_v27 = vpop.f32.mrb[48].mxu1 }
0x1297   : > { %v3362_v19 = vpop.f32.mrb[49].mxu1 }
0x1298   : > { %v3363_v46 = vadd.f32 %v3362_v19, %v3361_v27  ;;  %v3364_v47 = vpop.f32.mrb[50].mxu1 }
0x1299   : > { %v3365_v48 = vpop.f32.mrb[51].mxu1 }
0x129a   : > { %v2771_v49 = vadd.f32 %v3363_v46, %v2639_v23  ;;  %v3366_v51 = vadd.f32 %v3365_v48, %v3364_v47 }
0x129c   : > { %v2774_v52 = vadd.f32 %v3366_v51, %v2639_v23  ;;  %v2777_v53 = vadd.f32 %v2771_v49, %v2444_v33 }
0x129e   : > { %2779 = vadd.xlane.f32.xlu0 %v2777_v53  ;;  %v2778_v54 = vadd.f32 %v2774_v52, %v2445_v36 }
0x12a0   : > { %2781 = vadd.xlane.f32.xlu1 %v2778_v54 }
0x132b   : > { %v2780_v55 = vpop.xlane.xlu0 %2779 }
0x132c   : > { %v2783_v56 = vmul.f32 0.0078125, %v2780_v55 }
0x132d   : > { %v2782_v57 = vpop.xlane.xlu1 %2781 }
0x132e   : > { %v2785_v58 = vsub.f32 %v2777_v53, %v2783_v56  ;;  %v2784_v59 = vmul.f32 0.0078125, %v2782_v57 }
0x1330   : > { %v2786_v60 = vsub.f32 %v2778_v54, %v2784_v59  ;;  %v2787_v61 = vmul.f32 %v2785_v58, %v2785_v58 }
0x1332   : > { %2789 = vadd.xlane.f32.xlu0 %v2787_v61  ;;  %v2788_v2 = vmul.f32 %v2786_v60, %v2786_v60 }
0x1334   : > { %2791 = vadd.xlane.f32.xlu1 %v2788_v2 }
0x13bf   : > { %v2790_v62 = vpop.xlane.xlu0 %2789 }
0x13c0   : > { %v2793_v4 = vmul.f32 0.0078125, %v2790_v62 }
0x13c1   : > { %v2792_v63 = vpop.xlane.xlu1 %2791 }
0x13c2   : > { %v2795_v0 = vadd.f32 1e-05, %v2793_v4  ;;  %v2794_v3 = vmul.f32 0.0078125, %v2792_v63 }
0x13c4   : > { %3911 = vrsqrt.f32 %v2795_v0  ;;  %v2796_v5 = vadd.f32 1e-05, %v2794_v3 }
0x13c6   : > { %3913 = vrsqrt.f32 %v2796_v5 }
0x13ce   : > { %v3912_v8 = vpop.eup %3911 }
0x13cf   : > { %v2799_v1 = vmul.f32 %v3912_v8, %v2785_v58 }
0x13d0   : > { %v3914_v13 = vpop.eup %3913 }
0x13d1   : > { %v2805_v14 = vmul.f32 %v2804_v7, %v2799_v1  ;;  %v2800_v15 = vmul.f32 %v3914_v13, %v2786_v60 }
0x13d3   : > { %v2806_v16 = vmul.f32 %v2804_v7, %v2800_v15  ;;  %v2811_v17 = vadd.f32 %v2810_v10, %v2805_v14 }
0x13d5   : > { %v2812_v21 = vadd.f32 %v2810_v10, %v2806_v16  ;;  %2813 = vst [vmem:[%s352_s21] sm:$0xff] %v2811_v17 }
0x13d7   : > { %2814 = vst [vmem:[%s352_s21 + $0x8] sm:$0xff] %v2812_v21 }
0x13d8   : > { %3930 = shalt.err (!%p3927_p3)
}
0x13d9   : > { %s3931_s12 = scalar_lea.hbm %s4824_s28, 256  ;;  %s3935_s27 = scalar_lea.hbm %s4879_s10, 512 }
0x13da   : > { %p3932_p4 = scmp.ne.s32.totalorder %s4824_s28, %s3931_s12  ;;  %p3936_p9 = scmp.lt.u32.totalorder %s4824_s28, %s4879_s10 }
0x13db   : > { %p3937_p10 = scmp.lt.u32.totalorder %s3935_s27, %s3931_s12  ;;  %p3939_p12 = scmp.lt.u32.totalorder %s3931_s12, %s4824_s28 }
0x13dc   : > { %p3933_p7 = pnand %p3932_p4, %p4080_p5 }
0x13dd   : > { %p3938_p11 = por %p3937_p10, %p3936_p9 }
0x13de   : > { %p3934_p8 = pneg %p3933_p7 }
0x13df   : > { %p3940_p13 = por %p3939_p12, %p3938_p11 }
0x13e1   : > { %p3941_p0 = pnand %p3940_p13, %p3934_p8 }
0x13e3   : > { %3944 = shalt.err (!%p3941_p0)
}
0x13e4   : > { %s3985_s17 = smov 128   ;;  %s3986_s11 = smov 8  }
0x13e5   : > { %3687 = dma.vmem_to_hbm [thread:$0]  (%p4080_p5), %s4826_s25, 256, %s4824_s28, %s4828_s20, %s3985_s17, %s3985_s17, %s3986_s11  }
0x13e6 PF: > { %p3693_p1 = scmp.ge.s32.totalorder %s3979_s16, 2  ;;  %s2844_s18 = sand.u32 1, %s3967_s13  }
0x13e7   : > { %s2845_s12 = scalar_lea.sflag [#allocation3], %s2844_s18 }
0x13e8   : > { %p3690_p2 = pnand %p3693_p1, %p4084_p6 }
0x13ea   : > { %3962 = dma.done.wait (!%p3690_p2), %s2845_s12, 256  }
0x13eb   : > { %3964 = vsyncadd (!%p3690_p2), %s2845_s12, 4294967040  ;;  %p20_p3 = scmp.ge.s32.totalorder %s4067_s19, 4   ;;  %s4882_s13 = smov %s3971_s14 }
0x13ec   : > { %s4883_s14 = smov %s3975_s15  ;;  %s4884_s15 = smov %s4078_s22 }
0x13ed   : > { %s4885_s16 = smov %s4067_s19  ;;  %22 = sbr.rel (!%p20_p3) target bundleno = 3 (0x3), region = 107 }
0x13f4   :  { %2850 = vsyncpa [#allocation3], 1 }
0x13f5   :  { %2852 = vsyncpa [#allocation3 + $0x1], 1 }

// kernel: tpu_custom_call.1
= control target key start
LH: loop header
LB: loop body
LE: loop exit
PB: predicated region body
PF: predicated region fallthrough
CT: control target
= control target key end

     0   :  { %15 = vsyncpa [#allocation3], 0  ;;  %s4869_s0 = inlined_call_operand.vmem [shape: f32[2,16,128], index: 0, kind: input, shape index: {}]   ;;  %s4870_s1 = inlined_call_operand.vmem [shape: bf16[4,128,32], index: 1, kind: input, shape index: {}]   ;;  %s4871_s2 = inlined_call_operand.vmem [shape: bf16[4,128,32], index: 2, kind: input, shape index: {}]   ;;  %s4872_s3 = inlined_call_operand.vmem [shape: bf16[4,128,32], index: 3, kind: input, shape index: {}]   ;;  %s4873_s4 = inlined_call_operand.vmem [shape: bf16[4,32,128], index: 4, kind: input, shape index: {}]   ;;  %s4874_s5 = inlined_call_operand.vmem [shape: bf16[128,256], index: 5, kind: input, shape index: {}]   ;;  %s4875_s6 = inlined_call_operand.vmem [shape: bf16[256,128], index: 6, kind: input, shape index: {}]   ;;  %s4876_s7 = inlined_call_operand.vmem [shape: f32[12,32], index: 7, kind: input, shape index: {}]   ;;  %s4877_s8 = inlined_call_operand.vmem [shape: f32[8,128], index: 8, kind: input, shape index: {}]   ;;  %s4878_s9 = inlined_call_operand.vmem [shape: f32[1,256], index: 9, kind: input, shape index: {}]   ;;  %s4879_s10 = inlined_call_operand.hbm [shape: f32[2,16,128], index: 10, kind: output, shape index: {}]  }
   0x1   :  { %17 = vsyncpa [#allocation3 + $0x1], 0  ;;  %s4042_s13 = smov 0   ;;  %s4044_s14 = smov 0  }
   0x2   :  { %s4046_s15 = smov 0   ;;  %s4048_s16 = smov 0  }
   0x3 LB: > { %s4063_s17 = sadd.s32 4294967295, %s3979_s16   ;;  %s2891_s18 = sadd.s32 4294967294, %s3979_s16   ;;  %s3979_s16 = sphi %s4048_s16, %s4885_s16   ;;  %s3975_s15 = sphi %s4046_s15, %s4884_s15   ;;  %s3971_s14 = sphi %s4044_s14, %s4883_s14   ;;  %s3967_s13 = sphi %s4042_s13, %s4882_s13  }
   0x4   : > { %s4067_s19 = sadd.s32 1, %s3979_s16   ;;  %s245_s20 = sadd.s32 1, %s3975_s15 }
   0x5   : > { %s242_s21 = ssub.s32 %s3979_s16, %s4067_s19  ;;  %p255_p0 = scmp.ne.s32.totalorder %s3975_s15, %s3971_s14 }
   0x6   : > { %p243_p1 = scmp.eq.s32.totalorder %s242_s21, 0  ;;  %p256_p2 = scmp.eq.s32.totalorder %s4063_s17, 1 }
   0x7   : > { %p261_p3 = scmp.ne.s32.totalorder %s3971_s14, %s3967_s13  ;;  %p262_p4 = scmp.eq.s32.totalorder %s2891_s18, 1 }
   0x8   : > { %s4078_s22 = scalar_select %p243_p1, %s3975_s15, %s245_s20  }
   0x9   : > { %p4080_p5 = por %p256_p2, %p255_p0  ;;  %p4084_p6 = por %p262_p4, %p261_p3 }
   0xa   : > { %p2894_p7 = scmp.ge.s32.totalorder %s3979_s16, 1  ;;  %p315_p8 = scmp.lt.s32.totalorder %s3979_s16, 3 }
   0xc   : > { %p316_p9 = pnand %p2894_p7, %p315_p8 }
   0xd   : > { %v3731_v0 = vld [vmem:[%s4871_s2] sm:$0xff] (!%p316_p9)   ;;  %v3981_v1 = vmov (!%p316_p9), 0.0   ;;  %v3732_v2 = vld [vmem:[%s4871_s2 + $0x8] sm:$0xff] (!%p316_p9)   ;;  %vm3982_vm0 = vmmov (!%p316_p9), 0   ;;  %v3734_v5 = vld [vmem:[%s4871_s2 + $0x10] sm:$0xff] (!%p316_p9)   ;;  %p353_p10 = scmp.lt.s32.totalorder (!%p316_p9), %s4063_s17, 1  ;;  %v381_v20 = vlaneseq (!%p316_p9) }
   0xe   : > { %319 = sbr.rel (%p316_p9) target bundleno = 5094 (0x13e6), region = 60  ;;  %3387 = vmatprep.subr.bf16.mxu1 (!%p316_p9), %v3981_v1  ;;  %3367 = vmatprep.subr.bf16.mxu0 (!%p316_p9), %v3981_v1  ;;  %v3733_v3 = vld [vmem:[%s4870_s1] sm:$0xff] (!%p316_p9)   ;;  %v3735_v4 = vld [vmem:[%s4870_s1 + $0x8] sm:$0xff] (!%p316_p9)   ;;  %v3737_v6 = vld [vmem:[%s4870_s1 + $0x10] sm:$0xff] (!%p316_p9)   ;;  %vm694_vm1 = vcmask (!%p316_p9), 261120   ;;  %vm742_vm2 = vcmask (!%p316_p9), 130048  }
   0xf   : > { %3388 = vmatpush3.bf16.msra.mxu1 (!%p316_p9), %v3731_v0  ;;  %3403 = vmatprep.mubr.msk.bf16.mxu1 (!%p316_p9), %vm3982_vm0, %v3981_v1  ;;  %v3736_v7 = vld [vmem:[%s4871_s2 + $0x18] sm:$0xff] (!%p316_p9)   ;;  %v3738_v9 = vld [vmem:[%s4871_s2 + $0x20] sm:$0xff] (!%p316_p9)   ;;  %v3740_v11 = vld [vmem:[%s4871_s2 + $0x28] sm:$0xff] (!%p316_p9)   ;;  %v4177_v21 = vshrl.u32 (!%p316_p9), %v381_v20, 7  ;;  %s350_s12 = sand.u32 (!%p316_p9), 1, %s3971_s14   ;;  %s3984_s29 = smov (!%p316_p9), [#allocation2]  }
  0x10   : > { %3389 = vmatprep.subr.bf16.mxu1 (!%p316_p9), %v3981_v1  ;;  %3383 = vmatprep.mubr.msk.bf16.mxu0 (!%p316_p9), %vm3982_vm0, %v3981_v1  ;;  %v3739_v8 = vld [vmem:[%s4870_s1 + $0x18] sm:$0xff] (!%p316_p9)   ;;  %v3741_v10 = vld [vmem:[%s4870_s1 + $0x20] sm:$0xff] (!%p316_p9)   ;;  %v3743_v12 = vld [vmem:[%s4870_s1 + $0x28] sm:$0xff] (!%p316_p9)   ;;  %s2895_s18 = sshll.u32 (!%p316_p9), %s350_s12, 4  ;;  %s3921_s11 = sshll.u32 (!%p316_p9), %s3984_s29, 4  ;;  %s3922_s11 = int_to_ptr.vmem [resolvable:$false] %s3921_s11 }
  0x11   : > { %3368 = vmatpush3.bf16.msra.mxu0 (!%p316_p9), %v3733_v3  ;;  %v3742_v13 = vld [vmem:[%s4871_s2 + $0x30] sm:$0xff] (!%p316_p9)   ;;  %v3744_v15 = vld [vmem:[%s4871_s2 + $0x38] sm:$0xff] (!%p316_p9)   ;;  %v492_v22 = vsub.s32 (!%p316_p9), 4, %v4177_v21  ;;  %v4181_v23 = vsub.s32 (!%p316_p9), 0, %v4177_v21  ;;  %v4186_v24 = vld [vmem:[%s4876_s7] sm:$0xff] (!%p316_p9)  ;;  %s352_s21 = scalar_lea.vmem (!%p316_p9), [#allocation2], %s2895_s18 }
  0x12   : > { %3369 = vmatprep.subr.bf16.mxu0 (!%p316_p9), %v3981_v1  ;;  %v3745_v14 = vld [vmem:[%s4870_s1 + $0x30] sm:$0xff] (!%p316_p9)   ;;  %v3746_v18 = vld [vmem:[%s4870_s1 + $0x38] sm:$0xff] (!%p316_p9)   ;;  %v3747_v42 = vld [vmem:[%s4872_s3] sm:$0xff] (!%p316_p9)   ;;  %s2829_s25 = sshll.u32 (!%p316_p9), %s352_s21, 4  ;;  %s3923_s18 = scalar_lea.vmem (!%p316_p9), %s3922_s11, 512  ;;  %s4826_s25 = int_to_ptr.vmem [resolvable:$true] %s2829_s25 }
  0x13   : > { %3390 = vmatpush3.bf16.msra.mxu1 (!%p316_p9), %v3732_v2  ;;  %v493_v25 = vrot.slane (!%p316_p9), %v4186_v24, %v492_v22  ;;  %v384_v26 = vrot.slane (!%p316_p9), %v4186_v24, %v4181_v23  ;;  %v3748_v43 = vld [vmem:[%s4872_s3 + $0x8] sm:$0xff] (!%p316_p9)   ;;  %v3749_v44 = vld [vmem:[%s4872_s3 + $0x10] sm:$0xff] (!%p316_p9)   ;;  %v3750_v45 = vld [vmem:[%s4872_s3 + $0x18] sm:$0xff] (!%p316_p9)   ;;  %p3924_p0 = scmp.lt.s32.totalorder (!%p316_p9), %s4826_s25, %s3922_s11 }
  0x14   : > { %3391 = vmatprep.subr.bf16.mxu1 (!%p316_p9), %v3981_v1  ;;  %v3751_v46 = vld [vmem:[%s4872_s3 + $0x20] sm:$0xff] (!%p316_p9)   ;;  %v3752_v47 = vld [vmem:[%s4872_s3 + $0x28] sm:$0xff] (!%p316_p9)   ;;  %v3753_v48 = vld [vmem:[%s4872_s3 + $0x30] sm:$0xff] (!%p316_p9)  }
  0x15   : > { %3370 = vmatpush3.bf16.msra.mxu0 %v3735_v4  ;;  %s354_s30 = scalar_select %p353_p10, %s4063_s17, 1  ;;  %v3754_v49 = vld [vmem:[%s4872_s3 + $0x38] sm:$0xff]   ;;  %v4240_v4 = vld [vmem:[%s4876_s7 + $0x8] sm:$0xf] }
  0x16   : > { %3371 = vmatprep.subr.bf16.mxu0 %v3981_v1  ;;  %v3767_v20 = vld [vmem:[%s4871_s2 + $0x78] sm:$0xff]  }
  0x17   : > { %3392 = vmatpush3.bf16.msra.mxu1 %v3734_v5  ;;  %s3207_s26 = sshll.u32 %s354_s30, 4  ;;  %s3208_s30 = sshll.u32 %s4063_s17, 8 }
  0x18   : > { %3393 = vmatprep.subr.bf16.mxu1 %v3981_v1  ;;  %s4150_s20 = scalar_lea.vmem %s4869_s0, %s3207_s26  ;;  %s4824_s28 = scalar_lea.hbm %s4879_s10, %s3208_s30 }
  0x19   : > { %3372 = vmatpush3.bf16.msra.mxu0 %v3737_v6  ;;  %v359_v16 = vld [vmem:[%s4150_s20] sm:$0xff]  ;;  %v360_v17 = vld [vmem:[%s4150_s20 + $0x8] sm:$0xff]  ;;  %s3917_s17 = scalar_lea.vmem %s4826_s25, 256 }
  0x1a   : > { %3373 = vmatprep.subr.bf16.mxu0 %v3981_v1  ;;  %v4166_v19 = vpack.c.bf16 %v360_v17, %v359_v16  ;;  %v3755_v6 = vld [vmem:[%s4871_s2 + $0x40] sm:$0xff]   ;;  %v3763_v17 = vld [vmem:[%s4871_s2 + $0x68] sm:$0xff]   ;;  %p3918_p11 = scmp.ne.s32.totalorder %s4826_s25, %s3917_s17  ;;  %p3925_p1 = scmp.lt.s32.totalorder %s3923_s18, %s3917_s17 }
  0x1b   : > { %3394 = vmatpush3.bf16.msra.mxu1 %v3736_v7  ;;  %v602_v7 = vrot.slane %v4240_v4, %v4181_v23  ;;  %v3761_v16 = vld [vmem:[%s4871_s2 + $0x60] sm:$0xff]  }
  0x1c   : > { %3395 = vmatprep.subr.bf16.mxu1 %v3981_v1  ;;  %p3919_p12 = pnand %p3918_p11, %p4080_p5  ;;  %p3926_p2 = por %p3925_p1, %p3924_p0 }
  0x1d   : > { %3374 = vmatpush3.bf16.msra.mxu0 %v3739_v8 }
  0x1e   : > { %3375 = vmatprep.subr.bf16.mxu0 %v3981_v1  ;;  %p3920_p13 = pneg %p3919_p12 }
  0x1f   : > { %3396 = vmatpush3.bf16.msra.mxu1 %v3738_v9 }
  0x20   : > { %3397 = vmatprep.subr.bf16.mxu1 %v3981_v1  ;;  %p3927_p3 = pnand %p3926_p2, %p3920_p13 }
  0x21   : > { %3376 = vmatpush3.bf16.msra.mxu0 %v3741_v10 }
  0x22   : > { %3377 = vmatprep.subr.bf16.mxu0 %v3981_v1 }
  0x23   : > { %3398 = vmatpush3.bf16.msra.mxu1 %v3740_v11 }
  0x24   : > { %3399 = vmatprep.subr.bf16.mxu1 %v3981_v1 }
  0x25   : > { %3378 = vmatpush3.bf16.msra.mxu0 %v3743_v12  ;;  %v3756_v12 = vld [vmem:[%s4871_s2 + $0x48] sm:$0xff]  }
  0x26   : > { %3379 = vmatprep.subr.bf16.mxu0 %v3981_v1 }
  0x27   : > { %3400 = vmatpush3.bf16.msra.mxu1 %v3742_v13 }
  0x28   : > { %3401 = vmatprep.subr.bf16.mxu1 %v3981_v1 }
  0x29   : > { %3380 = vmatpush3.bf16.msra.mxu0 %v3745_v14  ;;  %v3757_v14 = vld [vmem:[%s4871_s2 + $0x50] sm:$0xff]  }
  0x2a   : > { %3381 = vmatprep.subr.bf16.mxu0 %v3981_v1 }
  0x2b   : > { %3402 = vmatpush3.bf16.msra.mxu1 %v3744_v15  ;;  %v3759_v15 = vld [vmem:[%s4871_s2 + $0x58] sm:$0xff]  }
  0x2c   : > { %3427 = vmatprep.subr.bf16.mxu1 %v3981_v1 }
  0x2d   : > { %3382 = vmatpush3.bf16.msra.mxu0 %v3746_v18  ;;  %v3765_v18 = vld [vmem:[%s4871_s2 + $0x70] sm:$0xff]  }
  0x2e   : > { %3404 = vmatmul.mubr.bf16.vlgmr.msra.gmra.mrb[0].mxu1 %v4166_v19  ;;  %3407 = vmatprep.subr.bf16.mxu0 %v3981_v1 }
  0x2f   : > { %3429 = vmatprep.mubr.msk.bf16.mxu1 %vm3982_vm0, %v3981_v1 }
  0x30   : > { %3384 = vmatmul.mubr.bf16.vlgmr.msra.gmra.mrb[0].mxu0 %v4166_v19 }
  0x31   : > { %3423 = vmatprep.mubr.msk.bf16.mxu0 %vm3982_vm0, %v3981_v1  ;;  %3408 = vmatpush3.bf16.msra.mxu0 %v3747_v42  ;;  %v3773_v42 = vld [vmem:[%s4872_s3 + $0x50] sm:$0xff]  }
  0x32   : > { %3409 = vmatprep.subr.bf16.mxu0 %v3981_v1 }
  0x35   : > { %3410 = vmatpush3.bf16.msra.mxu0 %v3748_v43  ;;  %v3774_v43 = vld [vmem:[%s4872_s3 + $0x58] sm:$0xff]  }
  0x36   : > { %3411 = vmatprep.subr.bf16.mxu0 %v3981_v1 }
  0x39   : > { %3412 = vmatpush3.bf16.msra.mxu0 %v3749_v44  ;;  %v3775_v44 = vld [vmem:[%s4872_s3 + $0x60] sm:$0xff]  }
  0x3a   : > { %3413 = vmatprep.subr.bf16.mxu0 %v3981_v1 }
  0x3d   : > { %3414 = vmatpush3.bf16.msra.mxu0 %v3750_v45  ;;  %v3776_v45 = vld [vmem:[%s4872_s3 + $0x68] sm:$0xff]  }
  0x3e   : > { %3415 = vmatprep.subr.bf16.mxu0 %v3981_v1 }
  0x41   : > { %3416 = vmatpush3.bf16.msra.mxu0 %v3751_v46  ;;  %v3777_v46 = vld [vmem:[%s4872_s3 + $0x70] sm:$0xff]  }
  0x42   : > { %3417 = vmatprep.subr.bf16.mxu0 %v3981_v1 }
  0x45   : > { %3418 = vmatpush3.bf16.msra.mxu0 %v3752_v47  ;;  %v3778_v47 = vld [vmem:[%s4872_s3 + $0x78] sm:$0xff]  }
  0x46   : > { %3419 = vmatprep.subr.bf16.mxu0 %v3981_v1 }
  0x49   : > { %3420 = vmatpush3.bf16.msra.mxu0 %v3753_v48  ;;  %v3779_v48 = vld [vmem:[%s4873_s4] sm:$0xff]  }
  0x4a   : > { %3421 = vmatprep.subr.bf16.mxu0 %v3981_v1 }
  0x4d   : > { %3422 = vmatpush3.bf16.msra.mxu0 %v3754_v49  ;;  %v3780_v49 = vld [vmem:[%s4873_s4 + $0x8] sm:$0xff]  }
  0x4e   : > { %3459 = vmatprep.subr.bf16.mxu0 %v3981_v1 }
  0x50   : > { %3424 = vmatmul.mubr.bf16.vlgmr.msra.gmra.mrb[4].mxu0 %v4166_v19 }
  0x51   : > { %3475 = vmatprep.mubr.msk.bf16.mxu0 %vm3982_vm0, %v3981_v1  ;;  %3460 = vmatpush3.bf16.msra.mxu0 %v3755_v6 }
  0x52   : > { %3461 = vmatprep.subr.bf16.mxu0 %v3981_v1 }
  0x55   : > { %3462 = vmatpush3.bf16.msra.mxu0 %v3756_v12 }
  0x56   : > { %3463 = vmatprep.subr.bf16.mxu0 %v3981_v1 }
  0x59   : > { %3464 = vmatpush3.bf16.msra.mxu0 %v3757_v14 }
  0x5a   : > { %3465 = vmatprep.subr.bf16.mxu0 %v3981_v1 }
  0x5d   : > { %3466 = vmatpush3.bf16.msra.mxu0 %v3759_v15 }
  0x5e   : > { %3467 = vmatprep.subr.bf16.mxu0 %v3981_v1 }
  0x61   : > { %3468 = vmatpush3.bf16.msra.mxu0 %v3761_v16 }
  0x62   : > { %3469 = vmatprep.subr.bf16.mxu0 %v3981_v1 }
  0x65   : > { %3470 = vmatpush3.bf16.msra.mxu0 %v3763_v17 }
  0x66   : > { %3471 = vmatprep.subr.bf16.mxu0 %v3981_v1 }
  0x69   : > { %3472 = vmatpush3.bf16.msra.mxu0 %v3765_v18 }
  0x6a   : > { %3473 = vmatprep.subr.bf16.mxu0 %v3981_v1 }
  0x6d   : > { %3474 = vmatpush3.bf16.msra.mxu0 %v3767_v20 }
  0x6e   : > { %3499 = vmatprep.subr.bf16.mxu0 %v3981_v1 }
  0x70   : > { %3476 = vmatmul.mubr.bf16.vlgmr.msra.gmra.mrb[8].mxu0 %v4166_v19 }
  0x71   : > { %3501 = vmatprep.mubr.msk.bf16.mxu0 %vm3982_vm0, %v3981_v1 }
 0x101   : > { %v576_v27 = vpop.f32.mrb[0].mxu1 }
 0x102   : > { %v3405_v28 = vpop.f32.mrb[1].mxu1  ;;  %v577_v31 = vadd.f32 %v576_v27, %v493_v25 }
 0x103   : > { %v579_v29 = vpop.f32.mrb[2].mxu1  ;;  %v467_v30 = vpop.f32.mrb[0].mxu0 }
 0x104   : > { %v580_v32 = vadd.f32 %v579_v29, %v493_v25  ;;  %v3406_v33 = vpop.f32.mrb[3].mxu1  ;;  %v468_v34 = vadd.f32 %v467_v30, %v384_v26  ;;  %v3385_v35 = vpop.f32.mrb[1].mxu0 }
 0x105   : > { %v470_v36 = vpop.f32.mrb[2].mxu0  ;;  %v3760_v33 = vld [vmem:[%s4870_s1 + $0x48] sm:$0xff]   ;;  %v3764_v35 = vld [vmem:[%s4870_s1 + $0x58] sm:$0xff]  }
 0x106   : > { %v693_v37 = vpack.c.bf16 %v580_v32, %v577_v31  ;;  %v471_v38 = vadd.f32 %v470_v36, %v384_v26  ;;  %v3386_v39 = vpop.f32.mrb[3].mxu0  ;;  %v3758_v31 = vld [vmem:[%s4870_s1 + $0x40] sm:$0xff]  }
 0x107   : > { %v3766_v36 = vld [vmem:[%s4870_s1 + $0x60] sm:$0xff]   ;;  %v3770_v39 = vld [vmem:[%s4870_s1 + $0x78] sm:$0xff]  }
 0x108   : > { %v692_v40 = vpack.c.bf16 %v471_v38, %v468_v34  ;;  %v699_v41 = vsel %vm694_vm1, %v693_v37, 0  ;;  %v3762_v34 = vld [vmem:[%s4870_s1 + $0x50] sm:$0xff]   ;;  %v3768_v37 = vld [vmem:[%s4870_s1 + $0x68] sm:$0xff]  }
 0x109   : > { %3428 = vmatpush3.bf16.xpose.msra.mxu1 %v699_v41  ;;  %v3769_v38 = vld [vmem:[%s4870_s1 + $0x70] sm:$0xff]   ;;  %v3772_v41 = vld [vmem:[%s4872_s3 + $0x48] sm:$0xff]  }
 0x10a   : > { %3433 = vmatprep.subr.bf16.mxu1 %v3981_v1 }
 0x110   : > { %3430 = vmatmul.mubr.msk.bf16.vlgmr.msra.gmra.mrb[4].mxu1 %vm694_vm1, %v692_v40  ;;  %v3771_v40 = vld [vmem:[%s4872_s3 + $0x40] sm:$0xff]  }
 0x111   : > { %3435 = vmatprep.mubr.msk.bf16.mxu1 %vm3982_vm0, %v3981_v1 }
 0x123   : > { %v685_v3 = vpop.f32.mrb[4].mxu0 }
 0x124   : > { %v3425_v5 = vpop.f32.mrb[5].mxu0  ;;  %v686_v10 = vadd.f32 %v685_v3, %v602_v7 }
 0x125   : > { %v688_v8 = vpop.f32.mrb[6].mxu0 }
 0x126   : > { %v3426_v9 = vpop.f32.mrb[7].mxu0  ;;  %v689_v11 = vadd.f32 %v688_v8, %v602_v7 }
 0x128   : > { %v766_v13 = vpack.c.bf16 %v689_v11, %v686_v10 }
 0x12a   : > { %3434 = vmatpush3.bf16.msra.mxu1 %v766_v13 }
 0x12b   : > { %3439 = vmatprep.subr.bf16.mxu1 %v3981_v1 }
 0x1e3   : > { %v735_v50 = vpop.f32.mrb[4].mxu1 }
 0x1e4   : > { %v3431_v51 = vpop.f32.mrb[5].mxu1  ;;  %v743_v52 = vsel %vm742_vm2, %v735_v50, -inf }
 0x1e5   : > { %744 = vmax.xlane.f32.xlu0 %v743_v52  ;;  %v738_v53 = vpop.f32.mrb[6].mxu1  ;;  %v1029_v52 = vpop.f32.mrb[8].mxu0 }
 0x1e6   : > { %v3432_v54 = vpop.f32.mrb[7].mxu1  ;;  %v746_v55 = vsel %vm742_vm2, %v738_v53, -inf }
 0x1e7   : > { %v3477_v54 = vpop.f32.mrb[9].mxu0 }
 0x1e8   : > { %v3782_v54 = vld [vmem:[%s4873_s4 + $0x10] sm:$0xff]  }
 0x1e9   : > { %747 = vmax.xlane.f32.xlu0 %v746_v55  ;;  %v1032_v55 = vpop.f32.mrb[10].mxu0 }
 0x272   : > { %v745_v56 = vpop.xlane.xlu0 %744 }
 0x273   : > { %v749_v57 = vsub.f32 %v735_v50, %v745_v56  ;;  %v945_v50 = vsub.s32 5, %v4177_v21 }
 0x275   : > { %v751_v58 = vmul.f32 1.442695, %v749_v57  ;;  %v946_v51 = vrot.slane %v4186_v24, %v945_v50  ;;  %v3478_v57 = vpop.f32.mrb[11].mxu0 }
 0x276   : > { %v748_v59 = vpop.xlane.xlu0 %747  ;;  %v3785_v57 = vld [vmem:[%s4871_s2 + $0x90] sm:$0xff]  }
 0x277   : > { %3875 = vpow2.f32 %v751_v58  ;;  %v750_v60 = vsub.f32 %v738_v53, %v748_v59  ;;  %v1030_v53 = vadd.f32 %v1029_v52, %v946_v51  ;;  %v1033_v56 = vadd.f32 %v1032_v55, %v946_v51 }
 0x279   : > { %v753_v61 = vmul.f32 1.442695, %v750_v60  ;;  %v1147_v58 = vpack.c.bf16 %v1033_v56, %v1030_v53  ;;  %v3784_v56 = vld [vmem:[%s4873_s4 + $0x18] sm:$0xff]  }
 0x27b   : > { %3877 = vpow2.f32 %v753_v61  ;;  %v1152_v59 = vsel %vm694_vm1, %v1147_v58, 0  ;;  %v3787_v58 = vld [vmem:[%s4871_s2 + $0x98] sm:$0xff]  }
 0x27c   : > { %3500 = vmatpush3.bf16.xpose.msra.mxu0 %v1152_v59  ;;  %v3789_v59 = vld [vmem:[%s4871_s2 + $0xa0] sm:$0xff]  }
 0x27d   : > { %3505 = vmatprep.subr.bf16.mxu0 %v3981_v1 }
 0x281   : > { %v3876_v62 = vpop.eup %3875 }
 0x282   : > { %v755_v63 = vsel %vm742_vm2, %v3876_v62, 0.0 }
 0x283   : > { %756 = vadd.xlane.f32.xlu1 %v755_v63 }
 0x285   : > { %v3878_v0 = vpop.eup %3877 }
 0x286   : > { %v758_v2 = vsel %vm742_vm2, %v3878_v0, 0.0 }
 0x287   : > { %759 = vadd.xlane.f32.xlu1 %v758_v2  ;;  %v4371_v2 = vsub.s32 1, %v4177_v21 }
 0x289   : > { %v836_v3 = vrot.slane %v4186_v24, %v4371_v2  ;;  %v1056_v12 = vrot.slane %v4240_v4, %v4371_v2 }
 0x310   : > { %v757_v25 = vpop.xlane.xlu1 %756 }
 0x311   : > { %3879 = vrcp.f32 %v757_v25 }
 0x314   : > { %v760_v26 = vpop.xlane.xlu1 %759 }
 0x315   : > { %3881 = vrcp.f32 %v760_v26 }
 0x31b   : > { %v3880_v27 = vpop.eup %3879 }
 0x31c   : > { %v763_v29 = vmul.f32 %v3880_v27, %v3876_v62 }
 0x31f   : > { %v3882_v28 = vpop.eup %3881 }
 0x320   : > { %v764_v30 = vmul.f32 %v3882_v28, %v3878_v0 }
 0x322   : > { %v765_v32 = vpack.c.bf16 %v764_v30, %v763_v29 }
 0x324   : > { %3436 = vmatmul.mubr.msk.bf16.vlgmr.msra.gmra.mrb[8].mxu1 %vm742_vm2, %v765_v32 }
 0x325   : > { %3440 = vmatpush3.bf16.msra.mxu1 %v3758_v31  ;;  %3455 = vmatprep.mubr.msk.bf16.mxu1 %vm3982_vm0, %v3981_v1 }
 0x326   : > { %3441 = vmatprep.subr.bf16.mxu1 %v3981_v1 }
 0x329   : > { %3442 = vmatpush3.bf16.msra.mxu1 %v3760_v33 }
 0x32a   : > { %3443 = vmatprep.subr.bf16.mxu1 %v3981_v1 }
 0x32d   : > { %3444 = vmatpush3.bf16.msra.mxu1 %v3762_v34 }
 0x32e   : > { %3445 = vmatprep.subr.bf16.mxu1 %v3981_v1 }
 0x331   : > { %3446 = vmatpush3.bf16.msra.mxu1 %v3764_v35 }
 0x332   : > { %3447 = vmatprep.subr.bf16.mxu1 %v3981_v1 }
 0x335   : > { %3448 = vmatpush3.bf16.msra.mxu1 %v3766_v36 }
 0x336   : > { %3449 = vmatprep.subr.bf16.mxu1 %v3981_v1 }
 0x339   : > { %3450 = vmatpush3.bf16.msra.mxu1 %v3768_v37 }
 0x33a   : > { %3451 = vmatprep.subr.bf16.mxu1 %v3981_v1 }
 0x33d   : > { %3452 = vmatpush3.bf16.msra.mxu1 %v3769_v38 }
 0x33e   : > { %3453 = vmatprep.subr.bf16.mxu1 %v3981_v1 }
 0x341   : > { %3454 = vmatpush3.bf16.msra.mxu1 %v3770_v39 }
 0x342   : > { %3479 = vmatprep.subr.bf16.mxu1 %v3981_v1 }
 0x344   : > { %3456 = vmatmul.mubr.bf16.vlgmr.msra.gmra.mrb[12].mxu1 %v4166_v19 }
 0x345   : > { %3480 = vmatpush3.bf16.msra.mxu1 %v3771_v40  ;;  %3495 = vmatprep.mubr.msk.bf16.mxu1 %vm3982_vm0, %v3981_v1 }
 0x346   : > { %3481 = vmatprep.subr.bf16.mxu1 %v3981_v1 }
 0x349   : > { %3482 = vmatpush3.bf16.msra.mxu1 %v3772_v41 }
 0x34a   : > { %3483 = vmatprep.subr.bf16.mxu1 %v3981_v1 }
 0x34d   : > { %3484 = vmatpush3.bf16.msra.mxu1 %v3773_v42 }
 0x34e   : > { %3485 = vmatprep.subr.bf16.mxu1 %v3981_v1 }
 0x351   : > { %3486 = vmatpush3.bf16.msra.mxu1 %v3774_v43 }
 0x352   : > { %3487 = vmatprep.subr.bf16.mxu1 %v3981_v1 }
 0x355   : > { %3488 = vmatpush3.bf16.msra.mxu1 %v3775_v44 }
 0x356   : > { %3489 = vmatprep.subr.bf16.mxu1 %v3981_v1 }
 0x359   : > { %3490 = vmatpush3.bf16.msra.mxu1 %v3776_v45  ;;  %v3781_v45 = vld [vmem:[%s4871_s2 + $0x80] sm:$0xff]  }
 0x35a   : > { %3491 = vmatprep.subr.bf16.mxu1 %v3981_v1 }
 0x35d   : > { %3492 = vmatpush3.bf16.msra.mxu1 %v3777_v46  ;;  %v3783_v46 = vld [vmem:[%s4871_s2 + $0x88] sm:$0xff]  }
 0x35e   : > { %3493 = vmatprep.subr.bf16.mxu1 %v3981_v1 }
 0x361   : > { %3494 = vmatpush3.bf16.msra.mxu1 %v3778_v47 }
 0x362   : > { %3519 = vmatprep.subr.bf16.mxu1 %v3981_v1 }
 0x364   : > { %3496 = vmatmul.mubr.bf16.vlgmr.msra.gmra.mrb[16].mxu1 %v4166_v19 }
 0x365   : > { %3520 = vmatpush3.bf16.msra.mxu1 %v3779_v48  ;;  %3523 = vmatprep.mubr.msk.bf16.mxu1 %vm3982_vm0, %v3981_v1 }
 0x366   : > { %3521 = vmatprep.subr.bf16.mxu1 %v3981_v1 }
 0x369   : > { %3522 = vmatpush3.bf16.msra.mxu1 %v3780_v49 }
 0x36a   : > { %3547 = vmatprep.subr.bf16.mxu1 %v3981_v1 }
 0x3f7   : > { %v804_v60 = vpop.f32.mrb[8].mxu1 }
 0x3f8   : > { %v3437_v61 = vpop.f32.mrb[9].mxu1 }
 0x3f9   : > { %v807_v62 = vpop.f32.mrb[10].mxu1  ;;  %v3793_v61 = vld [vmem:[%s4871_s2 + $0xb0] sm:$0xff]  }
 0x3fa   : > { %v811_v63 = vpack.c.bf16 %v807_v62, %v804_v60  ;;  %v3438_v0 = vpop.f32.mrb[11].mxu1  ;;  %v3791_v60 = vld [vmem:[%s4871_s2 + $0xa8] sm:$0xff]   ;;  %v3795_v62 = vld [vmem:[%s4871_s2 + $0xb8] sm:$0xff]  }
 0x3fc   : > { %3524 = vmatmul.mubr.msk.bf16.vlgmr.msra.gmra.mrb[20].mxu1 %vm694_vm1, %v811_v63 }
 0x3fd   : > { %3563 = vmatprep.mubr.msk.bf16.mxu1 %vm3982_vm0, %v3981_v1  ;;  %3548 = vmatpush3.bf16.msra.mxu1 %v3781_v45 }
 0x3fe   : > { %3549 = vmatprep.subr.bf16.mxu1 %v3981_v1 }
 0x401   : > { %3550 = vmatpush3.bf16.msra.mxu1 %v3783_v46  ;;  %v3800_v46 = vld [vmem:[%s4872_s3 + $0x88] sm:$0xff]  }
 0x402   : > { %3551 = vmatprep.subr.bf16.mxu1 %v3981_v1 }
 0x405   : > { %3552 = vmatpush3.bf16.msra.mxu1 %v3785_v57 }
 0x406   : > { %3553 = vmatprep.subr.bf16.mxu1 %v3981_v1 }
 0x409   : > { %3554 = vmatpush3.bf16.msra.mxu1 %v3787_v58 }
 0x40a   : > { %3555 = vmatprep.subr.bf16.mxu1 %v3981_v1 }
 0x40d   : > { %3556 = vmatpush3.bf16.msra.mxu1 %v3789_v59 }
 0x40e   : > { %3557 = vmatprep.subr.bf16.mxu1 %v3981_v1 }
 0x411   : > { %3558 = vmatpush3.bf16.msra.mxu1 %v3791_v60 }
 0x412   : > { %3559 = vmatprep.subr.bf16.mxu1 %v3981_v1 }
 0x415   : > { %3560 = vmatpush3.bf16.msra.mxu1 %v3793_v61 }
 0x416   : > { %3561 = vmatprep.subr.bf16.mxu1 %v3981_v1 }
 0x417   : > { %v919_v5 = vpop.f32.mrb[12].mxu1 }
 0x418   : > { %v3457_v6 = vpop.f32.mrb[13].mxu1  ;;  %v920_v8 = vadd.f32 %v919_v5, %v836_v3  ;;  %v3786_v5 = vld [vmem:[%s4870_s1 + $0x80] sm:$0xff]  }
 0x419   : > { %v922_v7 = vpop.f32.mrb[14].mxu1  ;;  %3562 = vmatpush3.bf16.msra.mxu1 %v3795_v62 }
 0x41a   : > { %v923_v9 = vadd.f32 %v922_v7, %v836_v3  ;;  %v3458_v10 = vpop.f32.mrb[15].mxu1  ;;  %3587 = vmatprep.subr.bf16.mxu1 %v3981_v1 }
 0x41b   : > { %v3792_v10 = vld [vmem:[%s4870_s1 + $0x98] sm:$0xff]  }
 0x41c   : > { %v1146_v11 = vpack.c.bf16 %v923_v9, %v920_v8  ;;  %3564 = vmatmul.mubr.bf16.vlgmr.msra.gmra.mrb[24].mxu1 %v4166_v19  ;;  %v3788_v8 = vld [vmem:[%s4870_s1 + $0x88] sm:$0xff]   ;;  %v3790_v9 = vld [vmem:[%s4870_s1 + $0x90] sm:$0xff]  }
 0x41d   : > { %3589 = vmatprep.mubr.msk.bf16.mxu1 %vm3982_vm0, %v3981_v1 }
 0x41e   : > { %3502 = vmatmul.mubr.msk.bf16.vlgmr.msra.gmra.mrb[12].mxu0 %vm694_vm1, %v1146_v11  ;;  %v3794_v11 = vld [vmem:[%s4870_s1 + $0xa0] sm:$0xff]  }
 0x41f   : > { %3507 = vmatprep.mubr.msk.bf16.mxu0 %vm3982_vm0, %v3981_v1 }
 0x437   : > { %v1139_v13 = vpop.f32.mrb[16].mxu1 }
 0x438   : > { %v1140_v14 = vadd.f32 %v1139_v13, %v1056_v12  ;;  %v3497_v15 = vpop.f32.mrb[17].mxu1  ;;  %v3797_v13 = vld [vmem:[%s4870_s1 + $0xb0] sm:$0xff]  }
 0x439   : > { %v1142_v16 = vpop.f32.mrb[18].mxu1  ;;  %v1510_v15 = vsub.s32 6, %v4177_v21 }
 0x43a   : > { %v1143_v17 = vadd.f32 %v1142_v16, %v1056_v12  ;;  %v3498_v18 = vpop.f32.mrb[19].mxu1  ;;  %v3796_v12 = vld [vmem:[%s4870_s1 + $0xa8] sm:$0xff]  }
 0x43b   : > { %v1511_v16 = vrot.slane %v4186_v24, %v1510_v15 }
 0x43c   : > { %v1218_v20 = vpack.c.bf16 %v1143_v17, %v1140_v14  ;;  %v3798_v14 = vld [vmem:[%s4870_s1 + $0xb8] sm:$0xff]  }
 0x43e   : > { %3506 = vmatpush3.bf16.msra.mxu0 %v1218_v20 }
 0x43f   : > { %3511 = vmatprep.subr.bf16.mxu0 %v3981_v1 }
 0x4cf   : > { %v4381_v25 = vpop.f32.mrb[20].mxu1 }
 0x4d0   : > { %v3525_v26 = vpop.f32.mrb[21].mxu1 }
 0x4d1   : > { %v4383_v27 = vpop.f32.mrb[22].mxu1 }
 0x4d2   : > { %v3526_v28 = vpop.f32.mrb[23].mxu1 }
 0x4ef   : > { %v1594_v17 = vpop.f32.mrb[24].mxu1 }
 0x4f0   : > { %v1595_v18 = vadd.f32 %v1594_v17, %v1511_v16  ;;  %v3565_v20 = vpop.f32.mrb[25].mxu1  ;;  %v3807_v17 = vld [vmem:[%s4871_s2 + $0xc0] sm:$0xff]  }
 0x4f1   : > { %v1188_v29 = vpop.f32.mrb[12].mxu0  ;;  %v1597_v26 = vpop.f32.mrb[26].mxu1 }
 0x4f2   : > { %v3503_v30 = vpop.f32.mrb[13].mxu0  ;;  %v1195_v31 = vsel %vm742_vm2, %v1188_v29, -inf  ;;  %v1598_v28 = vadd.f32 %v1597_v26, %v1511_v16 }
 0x4f3   : > { %1196 = vmax.xlane.f32.xlu0 %v1195_v31  ;;  %v1191_v32 = vpop.f32.mrb[14].mxu0 }
 0x4f4   : > { %v3504_v33 = vpop.f32.mrb[15].mxu0  ;;  %v1198_v34 = vsel %vm742_vm2, %v1191_v32, -inf  ;;  %v1712_v30 = vpack.c.bf16 %v1598_v28, %v1595_v18  ;;  %v3809_v18 = vld [vmem:[%s4871_s2 + $0xc8] sm:$0xff]  }
 0x4f5   : > { %1199 = vmax.xlane.f32.xlu1 %v1198_v34 }
 0x4f6   : > { %v1717_v31 = vsel %vm694_vm1, %v1712_v30, 0 }
 0x4f7   : > { %3588 = vmatpush3.bf16.xpose.msra.mxu1 %v1717_v31 }
 0x4f8   : > { %3593 = vmatprep.subr.bf16.mxu1 %v3981_v1 }
 0x580   : > { %v1197_v35 = vpop.xlane.xlu0 %1196 }
 0x581   : > { %v1201_v36 = vsub.f32 %v1188_v29, %v1197_v35  ;;  %v3566_v29 = vpop.f32.mrb[27].mxu1 }
 0x582   : > { %v1200_v37 = vpop.xlane.xlu1 %1199 }
 0x583   : > { %v1203_v38 = vmul.f32 1.442695, %v1201_v36  ;;  %v1202_v39 = vsub.f32 %v1191_v32, %v1200_v37 }
 0x585   : > { %3883 = vpow2.f32 %v1203_v38  ;;  %v1205_v40 = vmul.f32 1.442695, %v1202_v39  ;;  %v4484_v38 = vsub.s32 2, %v4177_v21 }
 0x587   : > { %3885 = vpow2.f32 %v1205_v40  ;;  %v1401_v39 = vrot.slane %v4186_v24, %v4484_v38 }
 0x58f   : > { %v3884_v41 = vpop.eup %3883 }
 0x590   : > { %v1207_v42 = vsel %vm742_vm2, %v3884_v41, 0.0 }
 0x591   : > { %v3886_v43 = vpop.eup %3885  ;;  %1208 = vadd.xlane.f32.xlu0 %v1207_v42 }
 0x592   : > { %v1210_v44 = vsel %vm742_vm2, %v3886_v43, 0.0 }
 0x593   : > { %1211 = vadd.xlane.f32.xlu1 %v1210_v44 }
 0x61e   : > { %v1209_v47 = vpop.xlane.xlu0 %1208 }
 0x61f   : > { %3887 = vrcp.f32 %v1209_v47  ;;  %v3801_v47 = vld [vmem:[%s4872_s3 + $0x90] sm:$0xff]  }
 0x620   : > { %v1212_v48 = vpop.xlane.xlu1 %1211 }
 0x621   : > { %3889 = vrcp.f32 %v1212_v48  ;;  %v3802_v48 = vld [vmem:[%s4872_s3 + $0x98] sm:$0xff]  }
 0x629   : > { %v3888_v49 = vpop.eup %3887 }
 0x62a   : > { %v1215_v52 = vmul.f32 %v3888_v49, %v3884_v41  ;;  %v3803_v49 = vld [vmem:[%s4872_s3 + $0xa0] sm:$0xff]  }
 0x62b   : > { %v3890_v51 = vpop.eup %3889 }
 0x62c   : > { %v1216_v53 = vmul.f32 %v3890_v51, %v3886_v43  ;;  %v3804_v51 = vld [vmem:[%s4872_s3 + $0xa8] sm:$0xff]  }
 0x62e   : > { %v1217_v55 = vpack.c.bf16 %v1216_v53, %v1215_v52  ;;  %v3805_v52 = vld [vmem:[%s4872_s3 + $0xb0] sm:$0xff]   ;;  %v3806_v53 = vld [vmem:[%s4872_s3 + $0xb8] sm:$0xff]  }
 0x630   : > { %3508 = vmatmul.mubr.msk.bf16.vlgmr.msra.gmra.mrb[16].mxu0 %vm742_vm2, %v1217_v55 }
 0x631   : > { %3512 = vmatpush3.bf16.msra.mxu0 %v3782_v54  ;;  %3515 = vmatprep.mubr.msk.bf16.mxu0 %vm3982_vm0, %v3981_v1 }
 0x632   : > { %3513 = vmatprep.subr.bf16.mxu0 %v3981_v1 }
 0x635   : > { %3514 = vmatpush3.bf16.msra.mxu0 %v3784_v56 }
 0x636   : > { %3527 = vmatprep.subr.bf16.mxu0 %v3981_v1 }
 0x703   : > { %v1256_v63 = vpop.f32.mrb[16].mxu0 }
 0x704   : > { %v3509_v0 = vpop.f32.mrb[17].mxu0 }
 0x705   : > { %v1259_v3 = vpop.f32.mrb[18].mxu0 }
 0x706   : > { %v1263_v6 = vpack.c.bf16 %v1259_v3, %v1256_v63  ;;  %v3510_v7 = vpop.f32.mrb[19].mxu0 }
 0x708   : > { %3516 = vmatmul.mubr.msk.bf16.vlgmr.msra.gmra.mrb[20].mxu0 %vm694_vm1, %v1263_v6 }
 0x709   : > { %3528 = vmatpush3.bf16.msra.mxu0 %v3786_v5  ;;  %3543 = vmatprep.mubr.msk.bf16.mxu0 %vm3982_vm0, %v3981_v1 }
 0x70a   : > { %3529 = vmatprep.subr.bf16.mxu0 %v3981_v1 }
 0x70d   : > { %3530 = vmatpush3.bf16.msra.mxu0 %v3788_v8 }
 0x70e   : > { %3531 = vmatprep.subr.bf16.mxu0 %v3981_v1 }
 0x711   : > { %3532 = vmatpush3.bf16.msra.mxu0 %v3790_v9 }
 0x712   : > { %3533 = vmatprep.subr.bf16.mxu0 %v3981_v1 }
 0x715   : > { %3534 = vmatpush3.bf16.msra.mxu0 %v3792_v10 }
 0x716   : > { %3535 = vmatprep.subr.bf16.mxu0 %v3981_v1 }
 0x719   : > { %3536 = vmatpush3.bf16.msra.mxu0 %v3794_v11  ;;  %v1621_v11 = vrot.slane %v4240_v4, %v4484_v38 }
 0x71a   : > { %3537 = vmatprep.subr.bf16.mxu0 %v3981_v1 }
 0x71d   : > { %3538 = vmatpush3.bf16.msra.mxu0 %v3796_v12 }
 0x71e   : > { %3539 = vmatprep.subr.bf16.mxu0 %v3981_v1 }
 0x721   : > { %3540 = vmatpush3.bf16.msra.mxu0 %v3797_v13 }
 0x722   : > { %3541 = vmatprep.subr.bf16.mxu0 %v3981_v1 }
 0x725   : > { %3542 = vmatpush3.bf16.msra.mxu0 %v3798_v14 }
 0x726   : > { %3567 = vmatprep.subr.bf16.mxu0 %v3981_v1 }
 0x728   : > { %3544 = vmatmul.mubr.bf16.vlgmr.msra.gmra.mrb[24].mxu0 %v4166_v19 }
 0x729   : > { %3583 = vmatprep.mubr.msk.bf16.mxu0 %vm3982_vm0, %v3981_v1 }
 0x7db   : > { %v1318_v32 = vpop.f32.mrb[20].mxu0 }
 0x7dc   : > { %v4478_v33 = vadd.f32 %v4381_v25, %v1318_v32  ;;  %v3517_v34 = vpop.f32.mrb[21].mxu0  ;;  %v3808_v32 = vld [vmem:[%s4873_s4 + $0x20] sm:$0xff]  }
 0x7dd   : > { %v1321_v35 = vpop.f32.mrb[22].mxu0 }
 0x7de   : > { %v4481_v36 = vadd.f32 %v4383_v27, %v1321_v35  ;;  %v3518_v37 = vpop.f32.mrb[23].mxu0  ;;  %v3799_v27 = vld [vmem:[%s4872_s3 + $0x80] sm:$0xff]   ;;  %v3810_v35 = vld [vmem:[%s4873_s4 + $0x28] sm:$0xff]  }
 0x7df   : > { %3568 = vmatpush3.bf16.msra.mxu0 %v3799_v27  ;;  %v3811_v37 = vld [vmem:[%s4871_s2 + $0xd0] sm:$0xff]   ;;  %v3812_v27 = vld [vmem:[%s4870_s1 + $0xc0] sm:$0xff]  }
 0x7e0   : > { %3569 = vmatprep.subr.bf16.mxu0 %v3981_v1 }
 0x7e3   : > { %3570 = vmatpush3.bf16.msra.mxu0 %v3800_v46 }
 0x7e4   : > { %3571 = vmatprep.subr.bf16.mxu0 %v3981_v1 }
 0x7e7   : > { %3572 = vmatpush3.bf16.msra.mxu0 %v3801_v47 }
 0x7e8   : > { %3573 = vmatprep.subr.bf16.mxu0 %v3981_v1 }
 0x7eb   : > { %3574 = vmatpush3.bf16.msra.mxu0 %v3802_v48  ;;  %v3814_v48 = vld [vmem:[%s4870_s1 + $0xc8] sm:$0xff]  }
 0x7ec   : > { %3575 = vmatprep.subr.bf16.mxu0 %v3981_v1 }
 0x7ef   : > { %3576 = vmatpush3.bf16.msra.mxu0 %v3803_v49  ;;  %v3816_v49 = vld [vmem:[%s4870_s1 + $0xd0] sm:$0xff]  }
 0x7f0   : > { %3577 = vmatprep.subr.bf16.mxu0 %v3981_v1 }
 0x7f3   : > { %3578 = vmatpush3.bf16.msra.mxu0 %v3804_v51  ;;  %v3818_v51 = vld [vmem:[%s4870_s1 + $0xd8] sm:$0xff]  }
 0x7f4   : > { %3579 = vmatprep.subr.bf16.mxu0 %v3981_v1 }
 0x7f7   : > { %3580 = vmatpush3.bf16.msra.mxu0 %v3805_v52  ;;  %v3820_v52 = vld [vmem:[%s4870_s1 + $0xe0] sm:$0xff]  }
 0x7f8   : > { %3581 = vmatprep.subr.bf16.mxu0 %v3981_v1 }
 0x7fb   : > { %v1484_v40 = vpop.f32.mrb[24].mxu0  ;;  %3582 = vmatpush3.bf16.msra.mxu0 %v3806_v53  ;;  %v3822_v53 = vld [vmem:[%s4870_s1 + $0xe8] sm:$0xff]  }
 0x7fc   : > { %v3545_v41 = vpop.f32.mrb[25].mxu0  ;;  %v1485_v43 = vadd.f32 %v1484_v40, %v1401_v39  ;;  %3627 = vmatprep.subr.bf16.mxu0 %v3981_v1  ;;  %v3815_v40 = vld [vmem:[%s4871_s2 + $0xe0] sm:$0xff]  }
 0x7fd   : > { %v1487_v42 = vpop.f32.mrb[26].mxu0  ;;  %v3817_v41 = vld [vmem:[%s4871_s2 + $0xe8] sm:$0xff]  }
 0x7fe   : > { %v1488_v44 = vadd.f32 %v1487_v42, %v1401_v39  ;;  %v3546_v45 = vpop.f32.mrb[27].mxu0  ;;  %3584 = vmatmul.mubr.bf16.vlgmr.msra.gmra.mrb[28].mxu0 %v4166_v19  ;;  %v3813_v39 = vld [vmem:[%s4871_s2 + $0xd8] sm:$0xff]   ;;  %v3819_v42 = vld [vmem:[%s4871_s2 + $0xf0] sm:$0xff]  }
 0x7ff   : > { %3643 = vmatprep.mubr.msk.bf16.mxu0 %vm3982_vm0, %v3981_v1  ;;  %3628 = vmatpush3.bf16.msra.mxu0 %v3807_v17 }
 0x800   : > { %v1711_v25 = vpack.c.bf16 %v1488_v44, %v1485_v43  ;;  %3629 = vmatprep.subr.bf16.mxu0 %v3981_v1  ;;  %v3821_v43 = vld [vmem:[%s4871_s2 + $0xf8] sm:$0xff]  }
 0x802   : > { %3590 = vmatmul.mubr.msk.bf16.vlgmr.msra.gmra.mrb[28].mxu1 %vm694_vm1, %v1711_v25 }
 0x803   : > { %3595 = vmatprep.mubr.msk.bf16.mxu1 %vm3982_vm0, %v3981_v1  ;;  %3630 = vmatpush3.bf16.msra.mxu0 %v3809_v18 }
 0x804   : > { %3631 = vmatprep.subr.bf16.mxu0 %v3981_v1 }
 0x807   : > { %3632 = vmatpush3.bf16.msra.mxu0 %v3811_v37 }
 0x808   : > { %3633 = vmatprep.subr.bf16.mxu0 %v3981_v1 }
 0x80b   : > { %3634 = vmatpush3.bf16.msra.mxu0 %v3813_v39 }
 0x80c   : > { %3635 = vmatprep.subr.bf16.mxu0 %v3981_v1 }
 0x80f   : > { %3636 = vmatpush3.bf16.msra.mxu0 %v3815_v40 }
 0x810   : > { %3637 = vmatprep.subr.bf16.mxu0 %v3981_v1 }
 0x813   : > { %3638 = vmatpush3.bf16.msra.mxu0 %v3817_v41 }
 0x814   : > { %3639 = vmatprep.subr.bf16.mxu0 %v3981_v1 }
 0x817   : > { %3640 = vmatpush3.bf16.msra.mxu0 %v3819_v42 }
 0x818   : > { %3641 = vmatprep.subr.bf16.mxu0 %v3981_v1 }
 0x81b   : > { %3642 = vmatpush3.bf16.msra.mxu0 %v3821_v43 }
 0x81c   : > { %3667 = vmatprep.subr.bf16.mxu0 %v3981_v1 }
 0x81e   : > { %3644 = vmatmul.mubr.bf16.vlgmr.msra.gmra.mrb[32].mxu0 %v4166_v19 }
 0x81f   : > { %3669 = vmatprep.mubr.msk.bf16.mxu0 %vm3982_vm0, %v3981_v1 }
 0x8d1   : > { %v1704_v9 = vpop.f32.mrb[28].mxu0 }
 0x8d2   : > { %v3585_v10 = vpop.f32.mrb[29].mxu0  ;;  %v1705_v14 = vadd.f32 %v1704_v9, %v1621_v11 }
 0x8d3   : > { %v1707_v12 = vpop.f32.mrb[30].mxu0 }
 0x8d4   : > { %v3586_v13 = vpop.f32.mrb[31].mxu0  ;;  %v1708_v15 = vadd.f32 %v1707_v12, %v1621_v11  ;;  %v4628_v11 = vsub.s32 3, %v4177_v21 }
 0x8d5   : > { %v1753_v54 = vpop.f32.mrb[28].mxu1 }
 0x8d6   : > { %v3591_v55 = vpop.f32.mrb[29].mxu1  ;;  %v1760_v56 = vsel %vm742_vm2, %v1753_v54, -inf  ;;  %v1783_v16 = vpack.c.bf16 %v1708_v15, %v1705_v14  ;;  %v1912_v12 = vrot.slane %v4186_v24, %v4628_v11 }
 0x8d7   : > { %1761 = vmax.xlane.f32.xlu0 %v1760_v56  ;;  %v1756_v57 = vpop.f32.mrb[30].mxu1  ;;  %v3824_v55 = vld [vmem:[%s4870_s1 + $0xf8] sm:$0xff]   ;;  %v2021_v56 = vsub.s32 7, %v4177_v21 }
 0x8d8   : > { %v3592_v58 = vpop.f32.mrb[31].mxu1  ;;  %v1763_v59 = vsel %vm742_vm2, %v1756_v57, -inf  ;;  %3594 = vmatpush3.bf16.msra.mxu1 %v1783_v16 }
 0x8d9   : > { %1764 = vmax.xlane.f32.xlu1 %v1763_v59  ;;  %3599 = vmatprep.subr.bf16.mxu1 %v3981_v1 }
 0x8f1   : > { %v2105_v58 = vpop.f32.mrb[32].mxu0 }
 0x964   : > { %v1762_v60 = vpop.xlane.xlu0 %1761 }
 0x965   : > { %v1766_v61 = vsub.f32 %v1753_v54, %v1762_v60  ;;  %v3823_v54 = vld [vmem:[%s4870_s1 + $0xf0] sm:$0xff]   ;;  %v3645_v60 = vpop.f32.mrb[33].mxu0 }
 0x966   : > { %v1765_v62 = vpop.xlane.xlu1 %1764 }
 0x967   : > { %v1768_v63 = vmul.f32 1.442695, %v1766_v61  ;;  %v1767_v0 = vsub.f32 %v1756_v57, %v1765_v62  ;;  %v2022_v57 = vrot.slane %v4186_v24, %v2021_v56  ;;  %v2108_v61 = vpop.f32.mrb[34].mxu0  ;;  %v3826_v24 = vld [vmem:[%s4872_s3 + $0xc8] sm:$0xff]  }
 0x969   : > { %3891 = vpow2.f32 %v1768_v63  ;;  %v1770_v3 = vmul.f32 1.442695, %v1767_v0  ;;  %v2106_v59 = vadd.f32 %v2105_v58, %v2022_v57  ;;  %v2109_v62 = vadd.f32 %v2108_v61, %v2022_v57  ;;  %v3646_v63 = vpop.f32.mrb[35].mxu0 }
 0x96b   : > { %3893 = vpow2.f32 %v1770_v3  ;;  %v2223_v0 = vpack.c.bf16 %v2109_v62, %v2106_v59 }
 0x96d   : > { %v2228_v3 = vsel %vm694_vm1, %v2223_v0, 0  ;;  %v3834_v0 = vld [vmem:[%s4873_s4 + $0x38] sm:$0xff]  }
 0x96e   : > { %3668 = vmatpush3.bf16.xpose.msra.mxu0 %v2228_v3 }
 0x96f   : > { %3673 = vmatprep.subr.bf16.mxu0 %v3981_v1 }
 0x973   : > { %v3892_v5 = vpop.eup %3891 }
 0x974   : > { %v1772_v6 = vsel %vm742_vm2, %v3892_v5, 0.0 }
 0x975   : > { %v3894_v7 = vpop.eup %3893  ;;  %1773 = vadd.xlane.f32.xlu0 %v1772_v6 }
 0x976   : > { %v1775_v8 = vsel %vm742_vm2, %v3894_v7, 0.0 }
 0x977   : > { %1776 = vadd.xlane.f32.xlu1 %v1775_v8 }
 0xa02   : > { %v1774_v20 = vpop.xlane.xlu0 %1773 }
 0xa03   : > { %3895 = vrcp.f32 %v1774_v20  ;;  %v3827_v20 = vld [vmem:[%s4872_s3 + $0xd0] sm:$0xff]  }
 0xa04   : > { %v1777_v26 = vpop.xlane.xlu1 %1776 }
 0xa05   : > { %3897 = vrcp.f32 %v1777_v26  ;;  %v3828_v26 = vld [vmem:[%s4872_s3 + $0xd8] sm:$0xff]  }
 0xa0d   : > { %v3896_v28 = vpop.eup %3895 }
 0xa0e   : > { %v1780_v30 = vmul.f32 %v3896_v28, %v3892_v5  ;;  %v3829_v28 = vld [vmem:[%s4872_s3 + $0xe0] sm:$0xff]  }
 0xa0f   : > { %v3898_v29 = vpop.eup %3897 }
 0xa10   : > { %v1781_v31 = vmul.f32 %v3898_v29, %v3894_v7  ;;  %v3830_v29 = vld [vmem:[%s4872_s3 + $0xe8] sm:$0xff]  }
 0xa12   : > { %v1782_v34 = vpack.c.bf16 %v1781_v31, %v1780_v30  ;;  %v3831_v30 = vld [vmem:[%s4872_s3 + $0xf0] sm:$0xff]   ;;  %v3832_v31 = vld [vmem:[%s4872_s3 + $0xf8] sm:$0xff]  }
 0xa14   : > { %3596 = vmatmul.mubr.msk.bf16.vlgmr.msra.gmra.mrb[32].mxu1 %vm742_vm2, %v1782_v34 }
 0xa15   : > { %3600 = vmatpush3.bf16.msra.mxu1 %v3808_v32  ;;  %3603 = vmatprep.mubr.msk.bf16.mxu1 %vm3982_vm0, %v3981_v1 }
 0xa16   : > { %3601 = vmatprep.subr.bf16.mxu1 %v3981_v1 }
 0xa19   : > { %3602 = vmatpush3.bf16.msra.mxu1 %v3810_v35 }
 0xa1a   : > { %3607 = vmatprep.subr.bf16.mxu1 %v3981_v1 }
 0xae7   : > { %v1821_v44 = vpop.f32.mrb[32].mxu1 }
 0xae8   : > { %v3597_v45 = vpop.f32.mrb[33].mxu1 }
 0xae9   : > { %v1824_v25 = vpop.f32.mrb[34].mxu1 }
 0xaea   : > { %v1828_v46 = vpack.c.bf16 %v1824_v25, %v1821_v44  ;;  %v3598_v47 = vpop.f32.mrb[35].mxu1 }
 0xaec   : > { %3604 = vmatmul.mubr.msk.bf16.vlgmr.msra.gmra.mrb[36].mxu1 %vm694_vm1, %v1828_v46 }
 0xaed   : > { %3608 = vmatpush3.bf16.msra.mxu1 %v3812_v27  ;;  %3623 = vmatprep.mubr.msk.bf16.mxu1 %vm3982_vm0, %v3981_v1 }
 0xaee   : > { %3609 = vmatprep.subr.bf16.mxu1 %v3981_v1 }
 0xaf1   : > { %3610 = vmatpush3.bf16.msra.mxu1 %v3814_v48 }
 0xaf2   : > { %3611 = vmatprep.subr.bf16.mxu1 %v3981_v1 }
 0xaf5   : > { %3612 = vmatpush3.bf16.msra.mxu1 %v3816_v49 }
 0xaf6   : > { %3613 = vmatprep.subr.bf16.mxu1 %v3981_v1 }
 0xaf9   : > { %3614 = vmatpush3.bf16.msra.mxu1 %v3818_v51  ;;  %v2132_v51 = vrot.slane %v4240_v4, %v4628_v11  ;;  %v3833_v4 = vld [vmem:[%s4873_s4 + $0x30] sm:$0xff]  }
 0xafa   : > { %3615 = vmatprep.subr.bf16.mxu1 %v3981_v1 }
 0xafd   : > { %3616 = vmatpush3.bf16.msra.mxu1 %v3820_v52 }
 0xafe   : > { %3617 = vmatprep.subr.bf16.mxu1 %v3981_v1 }
 0xb01   : > { %3618 = vmatpush3.bf16.msra.mxu1 %v3822_v53 }
 0xb02   : > { %3619 = vmatprep.subr.bf16.mxu1 %v3981_v1 }
 0xb05   : > { %3620 = vmatpush3.bf16.msra.mxu1 %v3823_v54 }
 0xb06   : > { %3621 = vmatprep.subr.bf16.mxu1 %v3981_v1 }
 0xb09   : > { %3622 = vmatpush3.bf16.msra.mxu1 %v3824_v55 }
 0xb0a   : > { %3647 = vmatprep.subr.bf16.mxu1 %v3981_v1 }
 0xb0c   : > { %3624 = vmatmul.mubr.bf16.vlgmr.msra.gmra.mrb[40].mxu1 %v4166_v19 }
 0xb0d   : > { %3663 = vmatprep.mubr.msk.bf16.mxu1 %vm3982_vm0, %v3981_v1 }
 0xbbf   : > { %v1883_v5 = vpop.f32.mrb[36].mxu1 }
 0xbc0   : > { %v4622_v6 = vadd.f32 %v1883_v5, %v4478_v33  ;;  %v3605_v7 = vpop.f32.mrb[37].mxu1 }
 0xbc1   : > { %v1886_v8 = vpop.f32.mrb[38].mxu1 }
 0xbc2   : > { %v4625_v9 = vadd.f32 %v1886_v8, %v4481_v36  ;;  %v3606_v10 = vpop.f32.mrb[39].mxu1  ;;  %v3825_v36 = vld [vmem:[%s4872_s3 + $0xc0] sm:$0xff]  }
 0xbc3   : > { %3648 = vmatpush3.bf16.msra.mxu1 %v3825_v36 }
 0xbc4   : > { %3649 = vmatprep.subr.bf16.mxu1 %v3981_v1 }
 0xbc7   : > { %3650 = vmatpush3.bf16.msra.mxu1 %v3826_v24  ;;  %v3915_v24 = vld [vmem:[%s4150_s20] sm:$0xff] }
 0xbc8   : > { %3651 = vmatprep.subr.bf16.mxu1 %v3981_v1 }
 0xbcb   : > { %3652 = vmatpush3.bf16.msra.mxu1 %v3827_v20 }
 0xbcc   : > { %3653 = vmatprep.subr.bf16.mxu1 %v3981_v1 }
 0xbcf   : > { %3654 = vmatpush3.bf16.msra.mxu1 %v3828_v26  ;;  %v3916_v26 = vld [vmem:[%s4150_s20 + $0x8] sm:$0xff]  ;;  %s4828_s20 = scalar_lea.sflag [#allocation3], %s350_s12 }
 0xbd0   : > { %3655 = vmatprep.subr.bf16.mxu1 %v3981_v1 }
 0xbd3   : > { %3656 = vmatpush3.bf16.msra.mxu1 %v3829_v28 }
 0xbd4   : > { %3657 = vmatprep.subr.bf16.mxu1 %v3981_v1 }
 0xbd7   : > { %3658 = vmatpush3.bf16.msra.mxu1 %v3830_v29  ;;  %v3835_v29 = vld [vmem:[%s4874_s5] ss:$8 sps:$4 sm:$0xff]  }
 0xbd8   : > { %3659 = vmatprep.subr.bf16.mxu1 %v3981_v1 }
 0xbdb   : > { %3660 = vmatpush3.bf16.msra.mxu1 %v3831_v30  ;;  %v3838_v30 = vld [vmem:[%s4874_s5 + $0x10] ss:$8 sps:$4 sm:$0xff]  }
 0xbdc   : > { %3661 = vmatprep.subr.bf16.mxu1 %v3981_v1 }
 0xbdf   : > { %v1995_v13 = vpop.f32.mrb[40].mxu1  ;;  %3662 = vmatpush3.bf16.msra.mxu1 %v3832_v31 }
 0xbe0   : > { %v3625_v14 = vpop.f32.mrb[41].mxu1  ;;  %v1996_v16 = vadd.f32 %v1995_v13, %v1912_v12 }
 0xbe1   : > { %v1998_v15 = vpop.f32.mrb[42].mxu1 }
 0xbe2   : > { %v1999_v17 = vadd.f32 %v1998_v15, %v1912_v12  ;;  %v3626_v18 = vpop.f32.mrb[43].mxu1  ;;  %3664 = vmatmul.mubr.bf16.vlgmr.msra.gmra.mrb[44].mxu1 %v4166_v19  ;;  %v4688_v12 = vld [vmem:[%s4877_s8] sm:$0xff] }
 0xbe4   : > { %v2222_v33 = vpack.c.bf16 %v1999_v17, %v1996_v16 }
 0xbe6   : > { %3670 = vmatmul.mubr.msk.bf16.vlgmr.msra.gmra.mrb[36].mxu0 %vm694_vm1, %v2222_v33 }
 0xbe7   : > { %3675 = vmatprep.mubr.msk.bf16.mxu0 %vm3982_vm0, %v3981_v1 }
 0xcb5   : > { %v2215_v48 = vpop.f32.mrb[44].mxu1 }
 0xcb6   : > { %v3665_v49 = vpop.f32.mrb[45].mxu1  ;;  %v2216_v54 = vadd.f32 %v2215_v48, %v2132_v51  ;;  %v3853_v48 = vld [vmem:[%s4874_s5 + $0x60] ss:$8 sps:$4 sm:$0xff]  }
 0xcb7   : > { %v2218_v52 = vpop.f32.mrb[46].mxu1  ;;  %v3858_v49 = vld [vmem:[%s4874_s5 + $0x74] ss:$8 sps:$4 sm:$0xff]  }
 0xcb8   : > { %v3666_v53 = vpop.f32.mrb[47].mxu1  ;;  %v2219_v55 = vadd.f32 %v2218_v52, %v2132_v51  ;;  %v3856_v51 = vld [vmem:[%s4874_s5 + $0x70] ss:$8 sps:$4 sm:$0xff]   ;;  %v3983_v52 = vmov 0  }
 0xcb9   : > { %v2264_v32 = vpop.f32.mrb[36].mxu0  ;;  %v3859_v53 = vld [vmem:[%s4875_s6 + $0x40] sm:$0xff]  }
 0xcba   : > { %v3671_v34 = vpop.f32.mrb[37].mxu0  ;;  %v2271_v35 = vsel %vm742_vm2, %v2264_v32, -inf  ;;  %v2294_v56 = vpack.c.bf16 %v2219_v55, %v2216_v54  ;;  %v3860_v54 = vld [vmem:[%s4875_s6] sm:$0xff]   ;;  %v3861_v55 = vld [vmem:[%s4875_s6 + $0x48] sm:$0xff]   ;;  %3345 = vmatprep.subr.bf16.mxu1 %v3859_v53 }
 0xcbb   : > { %2272 = vmax.xlane.f32.xlu0 %v2271_v35  ;;  %v2267_v37 = vpop.f32.mrb[38].mxu0  ;;  %3346 = vmatpush3.bf16.msra.mxu1 %v3860_v54 }
 0xcbc   : > { %v3672_v39 = vpop.f32.mrb[39].mxu0  ;;  %v2274_v40 = vsel %vm742_vm2, %v2267_v37, -inf  ;;  %3674 = vmatpush3.bf16.msra.mxu0 %v2294_v56  ;;  %v3862_v56 = vld [vmem:[%s4875_s6 + $0x8] sm:$0xff]   ;;  %3347 = vmatprep.subr.bf16.mxu1 %v3861_v55 }
 0xcbd   : > { %2275 = vmax.xlane.f32.xlu1 %v2274_v40  ;;  %3679 = vmatprep.subr.bf16.mxu0 %v3981_v1 }
 0xcbf   : > { %3348 = vmatpush3.bf16.msra.mxu1 %v3862_v56 }
 0xd48   : > { %v2273_v41 = vpop.xlane.xlu0 %2272 }
 0xd49   : > { %v2277_v42 = vsub.f32 %v2264_v32, %v2273_v41 }
 0xd4a   : > { %v2276_v43 = vpop.xlane.xlu1 %2275 }
 0xd4b   : > { %v2279_v44 = vmul.f32 1.442695, %v2277_v42  ;;  %v2278_v45 = vsub.f32 %v2267_v37, %v2276_v43  ;;  %v3843_v42 = vld [vmem:[%s4874_s5 + $0x24] ss:$8 sps:$4 sm:$0xff]   ;;  %v3841_v43 = vld [vmem:[%s4874_s5 + $0x20] ss:$8 sps:$4 sm:$0xff]  }
 0xd4d   : > { %3899 = vpow2.f32 %v2279_v44  ;;  %v2281_v25 = vmul.f32 1.442695, %v2278_v45  ;;  %v3846_v44 = vld [vmem:[%s4874_s5 + $0x34] ss:$8 sps:$4 sm:$0xff]   ;;  %v3844_v45 = vld [vmem:[%s4874_s5 + $0x30] ss:$8 sps:$4 sm:$0xff]  }
 0xd4f   : > { %3901 = vpow2.f32 %v2281_v25  ;;  %v3849_v25 = vld [vmem:[%s4874_s5 + $0x44] ss:$8 sps:$4 sm:$0xff]  }
 0xd57   : > { %v3900_v27 = vpop.eup %3899 }
 0xd58   : > { %v2283_v19 = vsel %vm742_vm2, %v3900_v27, 0.0 }
 0xd59   : > { %v3902_v46 = vpop.eup %3901  ;;  %2284 = vadd.xlane.f32.xlu0 %v2283_v19  ;;  %v3852_v19 = vld [vmem:[%s4874_s5 + $0x54] ss:$8 sps:$4 sm:$0xff]  }
 0xd5a   : > { %v2286_v47 = vsel %vm742_vm2, %v3902_v46, 0.0 }
 0xd5b   : > { %2287 = vadd.xlane.f32.xlu1 %v2286_v47  ;;  %v3855_v47 = vld [vmem:[%s4874_s5 + $0x64] ss:$8 sps:$4 sm:$0xff]  }
 0xde6   : > { %v2285_v57 = vpop.xlane.xlu0 %2284 }
 0xde7   : > { %3903 = vrcp.f32 %v2285_v57  ;;  %v3863_v57 = vld [vmem:[%s4875_s6 + $0x50] sm:$0xff]  }
 0xde8   : > { %v2288_v58 = vpop.xlane.xlu1 %2287  ;;  %3349 = vmatprep.subr.bf16.mxu1 %v3863_v57 }
 0xde9   : > { %3905 = vrcp.f32 %v2288_v58  ;;  %v3864_v58 = vld [vmem:[%s4875_s6 + $0x10] sm:$0xff]  }
 0xdea   : > { %3350 = vmatpush3.bf16.msra.mxu1 %v3864_v58 }
 0xdf1   : > { %v3904_v59 = vpop.eup %3903 }
 0xdf2   : > { %v2291_v61 = vmul.f32 %v3904_v59, %v3900_v27  ;;  %v3847_v27 = vld [vmem:[%s4874_s5 + $0x40] ss:$8 sps:$4 sm:$0xff]   ;;  %v3865_v59 = vld [vmem:[%s4875_s6 + $0x58] sm:$0xff]  }
 0xdf3   : > { %v3906_v60 = vpop.eup %3905  ;;  %3351 = vmatprep.subr.bf16.mxu1 %v3865_v59 }
 0xdf4   : > { %v2292_v62 = vmul.f32 %v3906_v60, %v3902_v46  ;;  %v3850_v46 = vld [vmem:[%s4874_s5 + $0x50] ss:$8 sps:$4 sm:$0xff]  }
 0xdf5   : > { %v3866_v60 = vld [vmem:[%s4875_s6 + $0x18] sm:$0xff]  }
 0xdf6   : > { %v2293_v63 = vpack.c.bf16 %v2292_v62, %v2291_v61  ;;  %v3867_v61 = vld [vmem:[%s4875_s6 + $0x60] sm:$0xff]   ;;  %3352 = vmatpush3.bf16.msra.mxu1 %v3866_v60 }
 0xdf7   : > { %v3868_v62 = vld [vmem:[%s4875_s6 + $0x20] sm:$0xff]   ;;  %3353 = vmatprep.subr.bf16.mxu1 %v3867_v61 }
 0xdf8   : > { %3676 = vmatmul.mubr.msk.bf16.vlgmr.msra.gmra.mrb[40].mxu0 %vm742_vm2, %v2293_v63 }
 0xdf9   : > { %3680 = vmatpush3.bf16.msra.mxu0 %v3833_v4  ;;  %3683 = vmatprep.mubr.msk.bf16.mxu0 %vm3982_vm0, %v3981_v1  ;;  %v3869_v4 = vld [vmem:[%s4875_s6 + $0x68] sm:$0xff]  }
 0xdfa   : > { %3681 = vmatprep.subr.bf16.mxu0 %v3981_v1  ;;  %v2406_v1 = vrot.slane %v4688_v12, %v4181_v23  ;;  %3354 = vmatpush3.bf16.msra.mxu1 %v3868_v62 }
 0xdfb   : > { %3355 = vmatprep.subr.bf16.mxu1 %v3869_v4 }
 0xdfd   : > { %3682 = vmatpush3.bf16.msra.mxu0 %v3834_v0 }
 0xecb   : > { %v2332_v3 = vpop.f32.mrb[40].mxu0 }
 0xecc   : > { %v3677_v5 = vpop.f32.mrb[41].mxu0 }
 0xecd   : > { %v2335_v7 = vpop.f32.mrb[42].mxu0 }
 0xece   : > { %v2339_v8 = vpack.c.bf16 %v2335_v7, %v2332_v3  ;;  %v3678_v10 = vpop.f32.mrb[43].mxu0 }
 0xecf   : > { %v2437_v10 = vrot.slane %v4688_v12, %v4484_v38  ;;  %v3871_v38 = vld [vmem:[%s4875_s6 + $0x70] sm:$0xff]  }
 0xed0   : > { %3684 = vmatmul.mubr.msk.bf16.vlgmr.msra.gmra.mrb[44].mxu0 %vm694_vm1, %v2339_v8 }
 0xed1   : > { %2587 = vmatprep.mubr.bf16.mxu0 %v3983_v52 }
 0xfa3   : > { %v2394_v13 = vpop.f32.mrb[44].mxu0 }
 0xfa4   : > { %v2401_v14 = vadd.f32 %v2394_v13, %v4622_v6  ;;  %v3685_v15 = vpop.f32.mrb[45].mxu0  ;;  %v3837_v6 = vld [vmem:[%s4874_s5 + $0x4] ss:$8 sps:$4 sm:$0xff]  }
 0xfa5   : > { %v2397_v16 = vpop.f32.mrb[46].mxu0  ;;  %2555 = vmatprep.subr.bf16.mxu0 %v3837_v6 }
 0xfa6   : > { %v2407_v17 = vadd.f32 %v2406_v1, %v2401_v14  ;;  %v2402_v18 = vadd.f32 %v2397_v16, %v4625_v9  ;;  %v3686_v33 = vpop.f32.mrb[47].mxu0  ;;  %v3840_v9 = vld [vmem:[%s4874_s5 + $0x14] ss:$8 sps:$4 sm:$0xff]   ;;  %2556 = vmatpush1.bf16.msra.mxu0 %v3835_v29  ;;  %v2463_v29 = vld [vmem:[%s4878_s9] sm:$0x3] }
 0xfa7   : > { %2557 = vmatprep.subr.bf16.mxu0 %v3840_v9  ;;  %v2468_v6 = vrot.slane %v2463_v29, %v4181_v23  ;;  %v2472_v9 = vrot.slane %v2463_v29, %v4371_v2  ;;  %v2639_v23 = vrot.slane %v4688_v12, %v4371_v2 }
 0xfa8   : > { %v2408_v36 = vadd.f32 %v2406_v1, %v2402_v18  ;;  %v2409_v20 = vadd.f32 %v3915_v24, %v2407_v17  ;;  %v2443_v17 = vrot.slane %v4688_v12, %v4628_v11  ;;  %v3873_v11 = vld [vmem:[%s4875_s6 + $0x78] sm:$0xff]  }
 0xfaa   : > { %2411 = vadd.xlane.f32.xlu0 %v2409_v20  ;;  %v2410_v28 = vadd.f32 %v3916_v26, %v2408_v36  ;;  %2558 = vmatpush1.bf16.msra.mxu0 %v3838_v30  ;;  %v3872_v26 = vld [vmem:[%s4875_s6 + $0x30] sm:$0xff]  }
 0xfab   : > { %2559 = vmatprep.subr.bf16.mxu0 %v3843_v42 }
 0xfac   : > { %2413 = vadd.xlane.f32.xlu1 %v2410_v28 }
 0xfae   : > { %2560 = vmatpush1.bf16.msra.mxu0 %v3841_v43 }
 0xfaf   : > { %2561 = vmatprep.subr.bf16.mxu0 %v3846_v44 }
 0xfb2   : > { %2562 = vmatpush1.bf16.msra.mxu0 %v3844_v45 }
 0xfb3   : > { %2563 = vmatprep.subr.bf16.mxu0 %v3849_v25 }
 0xfb6   : > { %2564 = vmatpush1.bf16.msra.mxu0 %v3847_v27 }
 0xfb7   : > { %2565 = vmatprep.subr.bf16.mxu0 %v3852_v19 }
 0xfba   : > { %2566 = vmatpush1.bf16.msra.mxu0 %v3850_v46 }
 0xfbb   : > { %2567 = vmatprep.subr.bf16.mxu0 %v3855_v47 }
 0xfbe   : > { %2568 = vmatpush1.bf16.msra.mxu0 %v3853_v48 }
 0xfbf   : > { %2569 = vmatprep.subr.bf16.mxu0 %v3858_v49 }
 0xfc2   : > { %2570 = vmatpush1.bf16.msra.mxu0 %v3856_v51 }
0x1037   : > { %v2412_v31 = vpop.xlane.xlu0 %2411 }
0x1038   : > { %v2416_v32 = vmul.f32 0.0078125, %v2412_v31 }
0x1039   : > { %v2414_v34 = vpop.xlane.xlu1 %2413 }
0x103a   : > { %v4708_v35 = vsub.f32 %v2409_v20, %v2416_v32  ;;  %v2417_v37 = vmul.f32 0.0078125, %v2414_v34  ;;  %v3870_v20 = vld [vmem:[%s4875_s6 + $0x28] sm:$0xff]  }
0x103b   : > { %3356 = vmatpush3.bf16.msra.mxu1 %v3870_v20 }
0x103c   : > { %v4710_v39 = vsub.f32 %v2410_v28, %v2417_v37  ;;  %v2420_v40 = vmul.f32 %v4708_v35, %v4708_v35  ;;  %3357 = vmatprep.subr.bf16.mxu1 %v3871_v38  ;;  %v3874_v28 = vld [vmem:[%s4875_s6 + $0x38] sm:$0xff]  }
0x103e   : > { %2422 = vadd.xlane.f32.xlu0 %v2420_v40  ;;  %v2421_v41 = vmul.f32 %v4710_v39, %v4710_v39 }
0x103f   : > { %3358 = vmatpush3.bf16.msra.mxu1 %v3872_v26 }
0x1040   : > { %2424 = vadd.xlane.f32.xlu1 %v2421_v41  ;;  %3359 = vmatprep.subr.bf16.mxu1 %v3873_v11 }
0x1043   : > { %3360 = vmatpush3.bf16.msra.mxu1 %v3874_v28 }
0x10cb   : > { %v2423_v63 = vpop.xlane.xlu0 %2422 }
0x10cc   : > { %v2426_v0 = vmul.f32 0.0078125, %v2423_v63 }
0x10cd   : > { %v2425_v3 = vpop.xlane.xlu1 %2424 }
0x10ce   : > { %v2428_v5 = vadd.f32 1e-05, %v2426_v0  ;;  %v2427_v7 = vmul.f32 0.0078125, %v2425_v3 }
0x10d0   : > { %3907 = vrsqrt.f32 %v2428_v5  ;;  %v2429_v8 = vadd.f32 1e-05, %v2427_v7  ;;  %v2804_v7 = vrot.slane %v4688_v12, %v492_v22 }
0x10d2   : > { %3909 = vrsqrt.f32 %v2429_v8 }
0x10da   : > { %v3908_v1 = vpop.eup %3907 }
0x10db   : > { %v2432_v13 = vmul.f32 %v3908_v1, %v4708_v35 }
0x10dc   : > { %v3910_v14 = vpop.eup %3909 }
0x10dd   : > { %v2433_v15 = vmul.f32 %v3910_v14, %v4710_v39  ;;  %v2438_v16 = vmul.f32 %v2437_v10, %v2432_v13 }
0x10df   : > { %v2439_v18 = vmul.f32 %v2437_v10, %v2433_v15  ;;  %v2444_v33 = vadd.f32 %v2443_v17, %v2438_v16  ;;  %v2810_v10 = vrot.slane %v4688_v12, %v945_v50 }
0x10e1   : > { %v2445_v36 = vadd.f32 %v2443_v17, %v2439_v18 }
0x10e3   : > { %v2446_v24 = vpack.c.bf16 %v2445_v36, %v2444_v33 }
0x10e5   : > { %2588 = vmatmul.mubr.bf16.vlgmr.msra.gmra.mrb[48].mxu0 %v2446_v24 }
0x11b8   : > { %v2589_v30 = vpop.f32.mrb[48].mxu0 }
0x11b9   : > { %v2590_v31 = vadd.f32 %v2589_v30, %v2468_v6  ;;  %v2591_v32 = vpop.f32.mrb[49].mxu0 }
0x11ba   : > { %v2592_v34 = vadd.f32 %v2591_v32, %v2472_v9  ;;  %v2593_v35 = vpop.f32.mrb[50].mxu0 }
0x11bb   : > { %v2594_v37 = vadd.f32 %v2593_v35, %v2468_v6  ;;  %v2595_v39 = vpop.f32.mrb[51].mxu0  ;;  %v2598_v41 = vmax.f32 %v2590_v31, 0.0 }
0x11bc   : > { %v2596_v40 = vadd.f32 %v2595_v39, %v2472_v9  ;;  %v2599_v43 = vmax.f32 %v2592_v34, 0.0 }
0x11bd   : > { %v2600_v42 = vmax.f32 %v2594_v37, 0.0 }
0x11be   : > { %v2601_v44 = vmax.f32 %v2596_v40, 0.0 }
0x11bf   : > { %v2602_v45 = vpack.c.bf16 %v2600_v42, %v2598_v41 }
0x11c0   : > { %v2603_v25 = vpack.c.bf16 %v2601_v44, %v2599_v43 }
0x11c2   : > { %2768 = vmatprep.mubr.bf16.mxu1 %v2603_v25 }
0x11c3   : > { %2769 = vmatmul.mubr.bf16.vlgmr.msra.gmra.mrb[48].mxu1 %v2602_v45 }
0x1296   : > { %v3361_v27 = vpop.f32.mrb[48].mxu1 }
0x1297   : > { %v3362_v19 = vpop.f32.mrb[49].mxu1 }
0x1298   : > { %v3363_v46 = vadd.f32 %v3362_v19, %v3361_v27  ;;  %v3364_v47 = vpop.f32.mrb[50].mxu1 }
0x1299   : > { %v3365_v48 = vpop.f32.mrb[51].mxu1 }
0x129a   : > { %v2771_v49 = vadd.f32 %v3363_v46, %v2639_v23  ;;  %v3366_v51 = vadd.f32 %v3365_v48, %v3364_v47 }
0x129c   : > { %v2774_v52 = vadd.f32 %v3366_v51, %v2639_v23  ;;  %v2777_v53 = vadd.f32 %v2771_v49, %v2444_v33 }
0x129e   : > { %2779 = vadd.xlane.f32.xlu0 %v2777_v53  ;;  %v2778_v54 = vadd.f32 %v2774_v52, %v2445_v36 }
0x12a0   : > { %2781 = vadd.xlane.f32.xlu1 %v2778_v54 }
0x132b   : > { %v2780_v55 = vpop.xlane.xlu0 %2779 }
0x132c   : > { %v2783_v56 = vmul.f32 0.0078125, %v2780_v55 }
0x132d   : > { %v2782_v57 = vpop.xlane.xlu1 %2781 }
0x132e   : > { %v2785_v58 = vsub.f32 %v2777_v53, %v2783_v56  ;;  %v2784_v59 = vmul.f32 0.0078125, %v2782_v57 }
0x1330   : > { %v2786_v60 = vsub.f32 %v2778_v54, %v2784_v59  ;;  %v2787_v61 = vmul.f32 %v2785_v58, %v2785_v58 }
0x1332   : > { %2789 = vadd.xlane.f32.xlu0 %v2787_v61  ;;  %v2788_v2 = vmul.f32 %v2786_v60, %v2786_v60 }
0x1334   : > { %2791 = vadd.xlane.f32.xlu1 %v2788_v2 }
0x13bf   : > { %v2790_v62 = vpop.xlane.xlu0 %2789 }
0x13c0   : > { %v2793_v4 = vmul.f32 0.0078125, %v2790_v62 }
0x13c1   : > { %v2792_v63 = vpop.xlane.xlu1 %2791 }
0x13c2   : > { %v2795_v0 = vadd.f32 1e-05, %v2793_v4  ;;  %v2794_v3 = vmul.f32 0.0078125, %v2792_v63 }
0x13c4   : > { %3911 = vrsqrt.f32 %v2795_v0  ;;  %v2796_v5 = vadd.f32 1e-05, %v2794_v3 }
0x13c6   : > { %3913 = vrsqrt.f32 %v2796_v5 }
0x13ce   : > { %v3912_v8 = vpop.eup %3911 }
0x13cf   : > { %v2799_v1 = vmul.f32 %v3912_v8, %v2785_v58 }
0x13d0   : > { %v3914_v13 = vpop.eup %3913 }
0x13d1   : > { %v2805_v14 = vmul.f32 %v2804_v7, %v2799_v1  ;;  %v2800_v15 = vmul.f32 %v3914_v13, %v2786_v60 }
0x13d3   : > { %v2806_v16 = vmul.f32 %v2804_v7, %v2800_v15  ;;  %v2811_v17 = vadd.f32 %v2810_v10, %v2805_v14 }
0x13d5   : > { %v2812_v21 = vadd.f32 %v2810_v10, %v2806_v16  ;;  %2813 = vst [vmem:[%s352_s21] sm:$0xff] %v2811_v17 }
0x13d7   : > { %2814 = vst [vmem:[%s352_s21 + $0x8] sm:$0xff] %v2812_v21 }
0x13d8   : > { %3930 = shalt.err (!%p3927_p3)
}
0x13d9   : > { %s3931_s12 = scalar_lea.hbm %s4824_s28, 256  ;;  %s3935_s27 = scalar_lea.hbm %s4879_s10, 512 }
0x13da   : > { %p3932_p4 = scmp.ne.s32.totalorder %s4824_s28, %s3931_s12  ;;  %p3936_p9 = scmp.lt.u32.totalorder %s4824_s28, %s4879_s10 }
0x13db   : > { %p3937_p10 = scmp.lt.u32.totalorder %s3935_s27, %s3931_s12  ;;  %p3939_p12 = scmp.lt.u32.totalorder %s3931_s12, %s4824_s28 }
0x13dc   : > { %p3933_p7 = pnand %p3932_p4, %p4080_p5 }
0x13dd   : > { %p3938_p11 = por %p3937_p10, %p3936_p9 }
0x13de   : > { %p3934_p8 = pneg %p3933_p7 }
0x13df   : > { %p3940_p13 = por %p3939_p12, %p3938_p11 }
0x13e1   : > { %p3941_p0 = pnand %p3940_p13, %p3934_p8 }
0x13e3   : > { %3944 = shalt.err (!%p3941_p0)
}
0x13e4   : > { %s3985_s17 = smov 128   ;;  %s3986_s11 = smov 8  }
0x13e5   : > { %3687 = dma.vmem_to_hbm [thread:$0]  (%p4080_p5), %s4826_s25, 256, %s4824_s28, %s4828_s20, %s3985_s17, %s3985_s17, %s3986_s11  }
0x13e6 PF: > { %p3693_p1 = scmp.ge.s32.totalorder %s3979_s16, 2  ;;  %s2844_s18 = sand.u32 1, %s3967_s13  }
0x13e7   : > { %s2845_s12 = scalar_lea.sflag [#allocation3], %s2844_s18 }
0x13e8   : > { %p3690_p2 = pnand %p3693_p1, %p4084_p6 }
0x13ea   : > { %3962 = dma.done.wait (!%p3690_p2), %s2845_s12, 256  }
0x13eb   : > { %3964 = vsyncadd (!%p3690_p2), %s2845_s12, 4294967040  ;;  %p20_p3 = scmp.ge.s32.totalorder %s4067_s19, 4   ;;  %s4882_s13 = smov %s3971_s14 }
0x13ec   : > { %s4883_s14 = smov %s3975_s15  ;;  %s4884_s15 = smov %s4078_s22 }
0x13ed   : > { %s4885_s16 = smov %s4067_s19  ;;  %22 = sbr.rel (!%p20_p3) target bundleno = 3 (0x3), region = 107 }
0x13f4   :  { %2850 = vsyncpa [#allocation3], 1 }
0x13f5   :  { %2852 = vsyncpa [#allocation3 + $0x1], 1 }

</bundles_post_ra>
